<compile_context>
chip_gen: v7x
topology: tpu7x:2x2x1
jax: 0.10.0
libtpu: 0.0.40
codegen_flags: <defaults>
</compile_context>

<pallas_src>
import functools
import math

import numpy as np
import jax
import jax.numpy as jnp
from jax import lax
from jax.experimental import pallas as pl
from jax.experimental.pallas import tpu as pltpu


def _up_kernel(x1_ref, x2_ref, b_ref, mask_ref,
               w1_ref, t1_ref, w2_ref, t2_ref,
               o_ref, xpad_ref, h1pad_ref,
               *, C1, C2, OC1, OC2, H, W):
    f32 = jnp.float32
    HW = H * W
    Cin = C1 + C2
    PAD = W + 1                      # flat halo wide enough for any +-(W+1) tap shift
    taps = tuple((kh, kw) for kh in range(3) for kw in range(3))

    # --- bilinear upsample (align_corners=True) of all C1 channels + F.pad,
    #     as ONE matmul against the precomputed placement matrix B.
    up = jnp.dot(x1_ref[...].astype(f32), b_ref[...],
                 preferred_element_type=f32,
                 precision=lax.Precision.HIGHEST)             # (C1, HW)

    # --- concat([x2, up], channel dim) into the flat-padded plane.
    #     Zero only the two halo strips; the interior is fully overwritten each
    #     grid step (parallel-grid safe, no full-scratch zeroing pass).
    xpad_ref[:, 0:PAD] = jnp.zeros((Cin, PAD), f32)
    xpad_ref[:, PAD + HW:] = jnp.zeros((Cin, PAD), f32)
    xpad_ref[0:C2, PAD:PAD + HW] = x2_ref[...].astype(f32)
    xpad_ref[C2:Cin, PAD:PAD + HW] = up

    def conv3x3_bn_relu(src_ref, w_ref, t_ref):
        # 3x3 conv (padding=1) as 9 tap matmuls on the lane-dense flat spatial
        # axis: acc[OC, HW] += W_tap[OC, C] @ x_shift[C, HW].  The tap shift is a
        # static slice of the flat-padded plane; the border-validity mask zeroes
        # positions whose source pixel lies outside the image.
        acc = None
        for t, (kh, kw) in enumerate(taps):
            d = (kh - 1) * W + (kw - 1)
            xs = src_ref[:, PAD + d:PAD + d + HW]
            if not (kh == 1 and kw == 1):
                xs = xs * mask_ref[t]
            p = jnp.dot(w_ref[t], xs, preferred_element_type=f32,
                        precision=lax.Precision.HIGHEST)
            acc = p if acc is None else acc + p
        # Folded conv-bias + eval-mode BN shift (scale already folded into w), ReLU.
        return jnp.maximum(acc + t_ref[...], 0.0)

    h1 = conv3x3_bn_relu(xpad_ref, w1_ref, t1_ref)            # (OC1, HW)

    h1pad_ref[:, 0:PAD] = jnp.zeros((OC1, PAD), f32)
    h1pad_ref[:, PAD + HW:] = jnp.zeros((OC1, PAD), f32)
    h1pad_ref[:, PAD:PAD + HW] = h1

    o_ref[...] = conv3x3_bn_relu(h1pad_ref, w2_ref, t2_ref).astype(o_ref.dtype)


def _interp_matrix(n_out, n_in):
    """1-D bilinear (align_corners=True) resample matrix A: A @ v resamples v."""
    A = np.zeros((n_out, n_in), dtype=np.float32)
    if n_out == 1 or n_in == 1:
        A[:, 0] = 1.0
        return A
    for o in range(n_out):
        src = o * (n_in - 1) / (n_out - 1)
        i0 = min(int(math.floor(src)), n_in - 2)
        f = src - i0
        A[o, i0] += 1.0 - f
        A[o, i0 + 1] += f
    return A


def _upsample_pad_matrix(H1, W1, H, W, padT, padL):
    """B of shape (H1*W1, H*W): x1_flat @ B == bilinear 2x upsample + F.pad."""
    Hup, Wup = 2 * H1, 2 * W1
    A_h = _interp_matrix(Hup, H1)                 # (Hup, H1)
    A_w = _interp_matrix(Wup, W1)                 # (Wup, W1)
    # B4[i1, j1, i2, j2] = A_h[i2, i1] * A_w[j2, j1]
    B4 = np.einsum('ab,cd->bdac', A_h, A_w)
    Bp = np.zeros((H1, W1, H, W), dtype=np.float32)
    Bp[:, :, padT:padT + Hup, padL:padL + Wup] = B4
    return jnp.asarray(Bp.reshape(H1 * W1, H * W))


def _tap_masks(H, W):
    """(9, 1, H*W) validity masks: zero where the tap's source pixel is outside."""
    m = np.ones((3, 3, H, W), dtype=np.float32)
    m[0, :, 0, :] = 0.0
    m[2, :, H - 1, :] = 0.0
    m[:, 0, :, 0] = 0.0
    m[:, 2, :, W - 1] = 0.0
    return jnp.asarray(m.reshape(9, 1, H * W))


def up_forward(x1, x2, params, eps=1e-5):
    """Pallas implementation of Up.forward (bilinear=True, eval-mode BN)."""
    N, C1, H1, W1 = x1.shape
    N2, C2, H, W = x2.shape
    assert N == N2
    (w1, b1, g1, be1, m1, v1, w2, b2, g2, be2, m2, v2) = params
    OC1, OC2 = w1.shape[0], w2.shape[0]
    Cin = C1 + C2
    assert w1.shape == (OC1, Cin, 3, 3) and w2.shape == (OC2, OC1, 3, 3)

    Hup, Wup = 2 * H1, 2 * W1
    diffY, diffX = H - Hup, W - Wup
    assert diffY >= 0 and diffX >= 0      # TODO(synk): negative diffs (cropping) unsupported
    padT, padL = diffY // 2, diffX // 2

    B = _upsample_pad_matrix(H1, W1, H, W, padT, padL)     # (H1*W1, H*W)
    masks = _tap_masks(H, W)                               # (9, 1, H*W)

    # Fold conv bias + eval-mode BN: scale goes into the weights, shift is added.
    s1 = (g1 / jnp.sqrt(v1 + eps)).astype(jnp.float32)
    t1 = ((b1 - m1) * s1 + be1).astype(jnp.float32)[:, None]
    s2 = (g2 / jnp.sqrt(v2 + eps)).astype(jnp.float32)
    t2 = ((b2 - m2) * s2 + be2).astype(jnp.float32)[:, None]

    # Per-tap weight tiles (9, OC, C) with the BN scale folded in.
    w1t = jnp.transpose(w1.astype(jnp.float32) * s1[:, None, None, None],
                        (2, 3, 0, 1)).reshape(9, OC1, Cin)
    w2t = jnp.transpose(w2.astype(jnp.float32) * s2[:, None, None, None],
                        (2, 3, 0, 1)).reshape(9, OC2, OC1)

    HW, HW1 = H * W, H1 * W1
    x1f = x1.reshape(N, C1, HW1)        # free, contiguous NCHW flatten
    x2f = x2.reshape(N, C2, HW)

    kernel = functools.partial(_up_kernel, C1=C1, C2=C2, OC1=OC1, OC2=OC2, H=H, W=W)

    out = pl.pallas_call(
        kernel,
        out_shape=jax.ShapeDtypeStruct((N, OC2, HW), x2.dtype),
        grid_spec=pltpu.PrefetchScalarGridSpec(
            num_scalar_prefetch=0,
            grid=(N,),
            in_specs=[
                pl.BlockSpec((None, C1, HW1), lambda n: (n, 0, 0)),   # x1 (flat)
                pl.BlockSpec((None, C2, HW), lambda n: (n, 0, 0)),    # x2 (flat)
                pl.BlockSpec((HW1, HW), lambda n: (0, 0)),            # upsample+pad matrix
                pl.BlockSpec((9, 1, HW), lambda n: (0, 0, 0)),        # tap validity masks
                pl.BlockSpec((9, OC1, Cin), lambda n: (0, 0, 0)),     # conv1 tap weights
                pl.BlockSpec((OC1, 1), lambda n: (0, 0)),             # conv1 folded shift
                pl.BlockSpec((9, OC2, OC1), lambda n: (0, 0, 0)),     # conv2 tap weights
                pl.BlockSpec((OC2, 1), lambda n: (0, 0)),             # conv2 folded shift
            ],
            out_specs=pl.BlockSpec((None, OC2, HW), lambda n: (n, 0, 0)),
            scratch_shapes=[
                pltpu.VMEM((Cin, HW + 2 * (W + 1)), jnp.float32),     # flat-padded concat
                pltpu.VMEM((OC1, HW + 2 * (W + 1)), jnp.float32),     # flat-padded conv1 out
            ],
        ),
        compiler_params=pltpu.CompilerParams(
            dimension_semantics=("parallel",),
            vmem_limit_bytes=32 * 1024 * 1024,
        ),
    )(x1f, x2f, B, masks, w1t, t1, w2t, t2)

    return out.reshape(N, OC2, H, W)


# ---------------- pure-JAX reference (independent path) ----------------

def _ref_upsample_bilinear_ac(x, Hout, Wout):
    N, C, Hin, Win = x.shape

    def coords(n_out, n_in):
        if n_out == 1 or n_in == 1:
            z = jnp.zeros((n_out,), jnp.int32)
            return jnp.zeros((n_out,), jnp.float32), z, z
        src = jnp.arange(n_out, dtype=jnp.float32) * (n_in - 1) / (n_out - 1)
        i0 = jnp.clip(jnp.floor(src).astype(jnp.int32), 0, n_in - 2)
        f = src - i0.astype(jnp.float32)
        return f, i0, i0 + 1

    fh, h0, h1 = coords(Hout, Hin)
    fw, w0, w1 = coords(Wout, Win)
    xh = (x[:, :, h0, :] * (1.0 - fh)[None, None, :, None]
          + x[:, :, h1, :] * fh[None, None, :, None])
    return (xh[:, :, :, w0] * (1.0 - fw)[None, None, None, :]
            + xh[:, :, :, w1] * fw[None, None, None, :])


def _ref_up_forward(x1, x2, params, eps=1e-5):
    (w1, b1, g1, be1, m1, v1, w2, b2, g2, be2, m2, v2) = params
    _, _, H1, W1 = x1.shape
    _, _, H, W = x2.shape
    up = _ref_upsample_bilinear_ac(x1, 2 * H1, 2 * W1)
    diffY, diffX = H - 2 * H1, W - 2 * W1
    up = jnp.pad(up, ((0, 0), (0, 0),
                      (diffY // 2, diffY - diffY // 2),
                      (diffX // 2, diffX - diffX // 2)))
    x = jnp.concatenate([x2, up], axis=1)

    def conv_bn_relu(inp, w, b, g, be, m, v):
        y = lax.conv_general_dilated(
            inp, w, window_strides=(1, 1), padding=((1, 1), (1, 1)),
            dimension_numbers=("NCHW", "OIHW", "NCHW"),
            precision=lax.Precision.HIGHEST)
        y = y + b[None, :, None, None]
        y = (y - m[None, :, None, None]) / jnp.sqrt(v + eps)[None, :, None, None]
        y = y * g[None, :, None, None] + be[None, :, None, None]
        return jnp.maximum(y, 0.0)

    h = conv_bn_relu(x, w1, b1, g1, be1, m1, v1)
    return conv_bn_relu(h, w2, b2, g2, be2, m2, v2)


if __name__ == "__main__":
    key = jax.random.PRNGKey(0)
    keys = jax.random.split(key, 16)

    N = 2
    in_channels, out_channels = 8, 4          # Up(8, 4, bilinear=True)
    C1 = in_channels // 2                     # deeper branch (gets upsampled)
    C2 = in_channels - C1                     # skip-connection branch
    H1 = W1 = 8
    H = W = 16

    x1 = jax.random.normal(keys[0], (N, C1, H1, W1), dtype=jnp.float32)
    x2 = jax.random.normal(keys[1], (N, C2, H, W), dtype=jnp.float32)

    def conv_init(kw, kb, oc, ic, k=3):
        bound = 1.0 / math.sqrt(ic * k * k)
        w = jax.random.uniform(kw, (oc, ic, k, k), minval=-bound, maxval=bound,
                               dtype=jnp.float32)
        b = jax.random.uniform(kb, (oc,), minval=-bound, maxval=bound,
                               dtype=jnp.float32)
        return w, b

    w1, b1 = conv_init(keys[2], keys[3], out_channels, in_channels)
    w2, b2 = conv_init(keys[4], keys[5], out_channels, out_channels)

    # BatchNorm (eval mode) parameters / running stats.
    g1 = jax.random.uniform(keys[6], (out_channels,), minval=0.5, maxval=1.5)
    be1 = jax.random.normal(keys[7], (out_channels,)) * 0.1
    m1 = jax.random.normal(keys[8], (out_channels,)) * 0.1
    v1 = jax.random.uniform(keys[9], (out_channels,), minval=0.5, maxval=1.5)
    g2 = jax.random.uniform(keys[10], (out_channels,), minval=0.5, maxval=1.5)
    be2 = jax.random.normal(keys[11], (out_channels,)) * 0.1
    m2 = jax.random.normal(keys[12], (out_channels,)) * 0.1
    v2 = jax.random.uniform(keys[13], (out_channels,), minval=0.5, maxval=1.5)

    params = (w1, b1, g1, be1, m1, v1, w2, b2, g2, be2, m2, v2)

    out = up_forward(x1, x2, params)
    out = jax.block_until_ready(out)

    ref = _ref_up_forward(x1, x2, params)
    assert out.shape == (N, out_channels, H, W)
    max_err = float(jnp.max(jnp.abs(out - ref)))
    assert jnp.allclose(out, ref, atol=1e-3, rtol=1e-3), max_err

    print("KERNEL_OK")
</pallas_src>

<mosaic_0001>
module attributes {stable_mosaic.version = 11 : i64} {
  func.func @_up_kernel(%arg0: i32, %arg1: memref<1x4x64xf32, #tpu.memory_space<vmem>>, %arg2: memref<1x4x256xf32, #tpu.memory_space<vmem>>, %arg3: memref<64x256xf32, #tpu.memory_space<vmem>>, %arg4: memref<9x1x256xf32, #tpu.memory_space<vmem>>, %arg5: memref<9x4x8xf32, #tpu.memory_space<vmem>>, %arg6: memref<4x1xf32, #tpu.memory_space<vmem>>, %arg7: memref<9x4x4xf32, #tpu.memory_space<vmem>>, %arg8: memref<4x1xf32, #tpu.memory_space<vmem>>, %arg9: memref<1x4x256xf32, #tpu.memory_space<vmem>>, %arg10: memref<8x290xf32, #tpu.memory_space<vmem>>, %arg11: memref<4x290xf32, #tpu.memory_space<vmem>>) attributes {dimension_semantics = [#tpu.dimension_semantics<parallel>], iteration_bounds = array<i64: 2>, scalar_prefetch = 0 : i64, scratch_operands = 2 : i64, tpu.core_type = #tpu.core_type<tc>, window_params = [{transform_indices = @transform_0, window_bounds = array<i64: 1, 4, 64>}, {transform_indices = @transform_1, window_bounds = array<i64: 1, 4, 256>}, {pipeline_mode = #tpu.pipeline_mode<synchronous>, transform_indices = @transform_2, window_bounds = array<i64: 64, 256>}, {pipeline_mode = #tpu.pipeline_mode<synchronous>, transform_indices = @transform_3, window_bounds = array<i64: 9, 1, 256>}, {pipeline_mode = #tpu.pipeline_mode<synchronous>, transform_indices = @transform_4, window_bounds = array<i64: 9, 4, 8>}, {pipeline_mode = #tpu.pipeline_mode<synchronous>, transform_indices = @transform_5, window_bounds = array<i64: 4, 1>}, {pipeline_mode = #tpu.pipeline_mode<synchronous>, transform_indices = @transform_6, window_bounds = array<i64: 9, 4, 4>}, {pipeline_mode = #tpu.pipeline_mode<synchronous>, transform_indices = @transform_7, window_bounds = array<i64: 4, 1>}, {transform_indices = @transform_8, window_bounds = array<i64: 1, 4, 256>}]} {
    %c0 = arith.constant 0 : index
    %c0_0 = arith.constant 0 : index
    %c0_1 = arith.constant 0 : index
    %0 = vector.load %arg1[%c0, %c0_0, %c0_1] : memref<1x4x64xf32, #tpu.memory_space<vmem>>, vector<1x4x64xf32>
    %1 = vector.shape_cast %0 : vector<1x4x64xf32> to vector<4x64xf32>
    %c0_2 = arith.constant 0 : index
    %c0_3 = arith.constant 0 : index
    %2 = vector.load %arg3[%c0_2, %c0_3] : memref<64x256xf32, #tpu.memory_space<vmem>>, vector<64x256xf32>
    %cst = arith.constant dense<0.000000e+00> : vector<4x256xf32>
    %3 = tpu.matmul %1, %2, %cst {dimension_numbers = #tpu.dot_dimension_numbers<[1], [0], [0], [1], [0, 0, 1, 1], [], []>, precision = #tpu.contract_precision<fp32>} : vector<4x64xf32>, vector<64x256xf32>, vector<4x256xf32> -> vector<4x256xf32>
    %cst_4 = arith.constant 0.000000e+00 : f32
    %4 = vector.broadcast %cst_4 : f32 to vector<8x17xf32>
    %c0_5 = arith.constant 0 : index
    %c0_6 = arith.constant 0 : index
    %5 = vector.load %arg10[%c0_5, %c0_6] : memref<8x290xf32, #tpu.memory_space<vmem>>, vector<8x17xf32>
    tpu.vector_store %arg10[%c0_5, %c0_6], %4 {strides = array<i32>} : memref<8x290xf32, #tpu.memory_space<vmem>>, vector<8x17xf32>,
    %cst_7 = arith.constant 0.000000e+00 : f32
    %6 = vector.broadcast %cst_7 : f32 to vector<8x17xf32>
    %c0_8 = arith.constant 0 : index
    %c273 = arith.constant 273 : index
    %7 = vector.load %arg10[%c0_8, %c273] : memref<8x290xf32, #tpu.memory_space<vmem>>, vector<8x17xf32>
    tpu.vector_store %arg10[%c0_8, %c273], %6 {strides = array<i32>} : memref<8x290xf32, #tpu.memory_space<vmem>>, vector<8x17xf32>,
    %c0_9 = arith.constant 0 : index
    %c0_10 = arith.constant 0 : index
    %c0_11 = arith.constant 0 : index
    %8 = vector.load %arg2[%c0_9, %c0_10, %c0_11] : memref<1x4x256xf32, #tpu.memory_space<vmem>>, vector<1x4x256xf32>
    %9 = vector.shape_cast %8 : vector<1x4x256xf32> to vector<4x256xf32>
    %c0_12 = arith.constant 0 : index
    %c17 = arith.constant 17 : index
    %10 = vector.load %arg10[%c0_12, %c17] : memref<8x290xf32, #tpu.memory_space<vmem>>, vector<4x256xf32>
    tpu.vector_store %arg10[%c0_12, %c17], %9 {strides = array<i32>} : memref<8x290xf32, #tpu.memory_space<vmem>>, vector<4x256xf32>,
    %c4 = arith.constant 4 : index
    %c17_13 = arith.constant 17 : index
    %11 = vector.load %arg10[%c4, %c17_13] : memref<8x290xf32, #tpu.memory_space<vmem>>, vector<4x256xf32>
    tpu.vector_store %arg10[%c4, %c17_13], %3 {strides = array<i32>} : memref<8x290xf32, #tpu.memory_space<vmem>>, vector<4x256xf32>,
    %c0_14 = arith.constant 0 : index
    %c0_15 = arith.constant 0 : index
    %12 = vector.load %arg10[%c0_14, %c0_15] : memref<8x290xf32, #tpu.memory_space<vmem>>, vector<8x256xf32>
    %c0_16 = arith.constant 0 : index
    %c0_17 = arith.constant 0 : index
    %c0_18 = arith.constant 0 : index
    %13 = vector.load %arg4[%c0_16, %c0_17, %c0_18] : memref<9x1x256xf32, #tpu.memory_space<vmem>>, vector<1x1x256xf32>
    %14 = vector.shape_cast %13 : vector<1x1x256xf32> to vector<1x256xf32>
    %15 = vector.broadcast %14 : vector<1x256xf32> to vector<8x256xf32>
    %16 = arith.mulf %12, %15 : vector<8x256xf32>
    %c0_19 = arith.constant 0 : index
    %c0_20 = arith.constant 0 : index
    %c0_21 = arith.constant 0 : index
    %17 = vector.load %arg5[%c0_19, %c0_20, %c0_21] : memref<9x4x8xf32, #tpu.memory_space<vmem>>, vector<1x4x8xf32>
    %18 = vector.shape_cast %17 : vector<1x4x8xf32> to vector<4x8xf32>
    %cst_22 = arith.constant dense<0.000000e+00> : vector<4x256xf32>
    %19 = tpu.matmul %18, %16, %cst_22 {dimension_numbers = #tpu.dot_dimension_numbers<[1], [0], [0], [1], [0, 0, 1, 1], [], []>, precision = #tpu.contract_precision<fp32>} : vector<4x8xf32>, vector<8x256xf32>, vector<4x256xf32> -> vector<4x256xf32>
    %c0_23 = arith.constant 0 : index
    %c1 = arith.constant 1 : index
    %20 = vector.load %arg10[%c0_23, %c1] : memref<8x290xf32, #tpu.memory_space<vmem>>, vector<8x256xf32>
    %c1_24 = arith.constant 1 : index
    %c0_25 = arith.constant 0 : index
    %c0_26 = arith.constant 0 : index
    %21 = vector.load %arg4[%c1_24, %c0_25, %c0_26] : memref<9x1x256xf32, #tpu.memory_space<vmem>>, vector<1x1x256xf32>
    %22 = vector.shape_cast %21 : vector<1x1x256xf32> to vector<1x256xf32>
    %23 = vector.broadcast %22 : vector<1x256xf32> to vector<8x256xf32>
    %24 = arith.mulf %20, %23 : vector<8x256xf32>
    %c1_27 = arith.constant 1 : index
    %c0_28 = arith.constant 0 : index
    %c0_29 = arith.constant 0 : index
    %25 = vector.load %arg5[%c1_27, %c0_28, %c0_29] : memref<9x4x8xf32, #tpu.memory_space<vmem>>, vector<1x4x8xf32>
    %26 = vector.shape_cast %25 : vector<1x4x8xf32> to vector<4x8xf32>
    %cst_30 = arith.constant dense<0.000000e+00> : vector<4x256xf32>
    %27 = tpu.matmul %26, %24, %cst_30 {dimension_numbers = #tpu.dot_dimension_numbers<[1], [0], [0], [1], [0, 0, 1, 1], [], []>, precision = #tpu.contract_precision<fp32>} : vector<4x8xf32>, vector<8x256xf32>, vector<4x256xf32> -> vector<4x256xf32>
    %28 = arith.addf %19, %27 : vector<4x256xf32>
    %c0_31 = arith.constant 0 : index
    %c2 = arith.constant 2 : index
    %29 = vector.load %arg10[%c0_31, %c2] : memref<8x290xf32, #tpu.memory_space<vmem>>, vector<8x256xf32>
    %c2_32 = arith.constant 2 : index
    %c0_33 = arith.constant 0 : index
    %c0_34 = arith.constant 0 : index
    %30 = vector.load %arg4[%c2_32, %c0_33, %c0_34] : memref<9x1x256xf32, #tpu.memory_space<vmem>>, vector<1x1x256xf32>
    %31 = vector.shape_cast %30 : vector<1x1x256xf32> to vector<1x256xf32>
    %32 = vector.broadcast %31 : vector<1x256xf32> to vector<8x256xf32>
    %33 = arith.mulf %29, %32 : vector<8x256xf32>
    %c2_35 = arith.constant 2 : index
    %c0_36 = arith.constant 0 : index
    %c0_37 = arith.constant 0 : index
    %34 = vector.load %arg5[%c2_35, %c0_36, %c0_37] : memref<9x4x8xf32, #tpu.memory_space<vmem>>, vector<1x4x8xf32>
    %35 = vector.shape_cast %34 : vector<1x4x8xf32> to vector<4x8xf32>
    %cst_38 = arith.constant dense<0.000000e+00> : vector<4x256xf32>
    %36 = tpu.matmul %35, %33, %cst_38 {dimension_numbers = #tpu.dot_dimension_numbers<[1], [0], [0], [1], [0, 0, 1, 1], [], []>, precision = #tpu.contract_precision<fp32>} : vector<4x8xf32>, vector<8x256xf32>, vector<4x256xf32> -> vector<4x256xf32>
    %37 = arith.addf %28, %36 : vector<4x256xf32>
    %c0_39 = arith.constant 0 : index
    %c16 = arith.constant 16 : index
    %38 = vector.load %arg10[%c0_39, %c16] : memref<8x290xf32, #tpu.memory_space<vmem>>, vector<8x256xf32>
    %c3 = arith.constant 3 : index
    %c0_40 = arith.constant 0 : index
    %c0_41 = arith.constant 0 : index
    %39 = vector.load %arg4[%c3, %c0_40, %c0_41] : memref<9x1x256xf32, #tpu.memory_space<vmem>>, vector<1x1x256xf32>
    %40 = vector.shape_cast %39 : vector<1x1x256xf32> to vector<1x256xf32>
    %41 = vector.broadcast %40 : vector<1x256xf32> to vector<8x256xf32>
    %42 = arith.mulf %38, %41 : vector<8x256xf32>
    %c3_42 = arith.constant 3 : index
    %c0_43 = arith.constant 0 : index
    %c0_44 = arith.constant 0 : index
    %43 = vector.load %arg5[%c3_42, %c0_43, %c0_44] : memref<9x4x8xf32, #tpu.memory_space<vmem>>, vector<1x4x8xf32>
    %44 = vector.shape_cast %43 : vector<1x4x8xf32> to vector<4x8xf32>
    %cst_45 = arith.constant dense<0.000000e+00> : vector<4x256xf32>
    %45 = tpu.matmul %44, %42, %cst_45 {dimension_numbers = #tpu.dot_dimension_numbers<[1], [0], [0], [1], [0, 0, 1, 1], [], []>, precision = #tpu.contract_precision<fp32>} : vector<4x8xf32>, vector<8x256xf32>, vector<4x256xf32> -> vector<4x256xf32>
    %46 = arith.addf %37, %45 : vector<4x256xf32>
    %c0_46 = arith.constant 0 : index
    %c17_47 = arith.constant 17 : index
    %47 = vector.load %arg10[%c0_46, %c17_47] : memref<8x290xf32, #tpu.memory_space<vmem>>, vector<8x256xf32>
    %c4_48 = arith.constant 4 : index
    %c0_49 = arith.constant 0 : index
    %c0_50 = arith.constant 0 : index
    %48 = vector.load %arg5[%c4_48, %c0_49, %c0_50] : memref<9x4x8xf32, #tpu.memory_space<vmem>>, vector<1x4x8xf32>
    %49 = vector.shape_cast %48 : vector<1x4x8xf32> to vector<4x8xf32>
    %cst_51 = arith.constant dense<0.000000e+00> : vector<4x256xf32>
    %50 = tpu.matmul %49, %47, %cst_51 {dimension_numbers = #tpu.dot_dimension_numbers<[1], [0], [0], [1], [0, 0, 1, 1], [], []>, precision = #tpu.contract_precision<fp32>} : vector<4x8xf32>, vector<8x256xf32>, vector<4x256xf32> -> vector<4x256xf32>
    %51 = arith.addf %46, %50 : vector<4x256xf32>
    %c0_52 = arith.constant 0 : index
    %c18 = arith.constant 18 : index
    %52 = vector.load %arg10[%c0_52, %c18] : memref<8x290xf32, #tpu.memory_space<vmem>>, vector<8x256xf32>
    %c5 = arith.constant 5 : index
    %c0_53 = arith.constant 0 : index
    %c0_54 = arith.constant 0 : index
    %53 = vector.load %arg4[%c5, %c0_53, %c0_54] : memref<9x1x256xf32, #tpu.memory_space<vmem>>, vector<1x1x256xf32>
    %54 = vector.shape_cast %53 : vector<1x1x256xf32> to vector<1x256xf32>
    %55 = vector.broadcast %54 : vector<1x256xf32> to vector<8x256xf32>
    %56 = arith.mulf %52, %55 : vector<8x256xf32>
    %c5_55 = arith.constant 5 : index
    %c0_56 = arith.constant 0 : index
    %c0_57 = arith.constant 0 : index
    %57 = vector.load %arg5[%c5_55, %c0_56, %c0_57] : memref<9x4x8xf32, #tpu.memory_space<vmem>>, vector<1x4x8xf32>
    %58 = vector.shape_cast %57 : vector<1x4x8xf32> to vector<4x8xf32>
    %cst_58 = arith.constant dense<0.000000e+00> : vector<4x256xf32>
    %59 = tpu.matmul %58, %56, %cst_58 {dimension_numbers = #tpu.dot_dimension_numbers<[1], [0], [0], [1], [0, 0, 1, 1], [], []>, precision = #tpu.contract_precision<fp32>} : vector<4x8xf32>, vector<8x256xf32>, vector<4x256xf32> -> vector<4x256xf32>
    %60 = arith.addf %51, %59 : vector<4x256xf32>
    %c0_59 = arith.constant 0 : index
    %c32 = arith.constant 32 : index
    %61 = vector.load %arg10[%c0_59, %c32] : memref<8x290xf32, #tpu.memory_space<vmem>>, vector<8x256xf32>
    %c6 = arith.constant 6 : index
    %c0_60 = arith.constant 0 : index
    %c0_61 = arith.constant 0 : index
    %62 = vector.load %arg4[%c6, %c0_60, %c0_61] : memref<9x1x256xf32, #tpu.memory_space<vmem>>, vector<1x1x256xf32>
    %63 = vector.shape_cast %62 : vector<1x1x256xf32> to vector<1x256xf32>
    %64 = vector.broadcast %63 : vector<1x256xf32> to vector<8x256xf32>
    %65 = arith.mulf %61, %64 : vector<8x256xf32>
    %c6_62 = arith.constant 6 : index
    %c0_63 = arith.constant 0 : index
    %c0_64 = arith.constant 0 : index
    %66 = vector.load %arg5[%c6_62, %c0_63, %c0_64] : memref<9x4x8xf32, #tpu.memory_space<vmem>>, vector<1x4x8xf32>
    %67 = vector.shape_cast %66 : vector<1x4x8xf32> to vector<4x8xf32>
    %cst_65 = arith.constant dense<0.000000e+00> : vector<4x256xf32>
    %68 = tpu.matmul %67, %65, %cst_65 {dimension_numbers = #tpu.dot_dimension_numbers<[1], [0], [0], [1], [0, 0, 1, 1], [], []>, precision = #tpu.contract_precision<fp32>} : vector<4x8xf32>, vector<8x256xf32>, vector<4x256xf32> -> vector<4x256xf32>
    %69 = arith.addf %60, %68 : vector<4x256xf32>
    %c0_66 = arith.constant 0 : index
    %c33 = arith.constant 33 : index
    %70 = vector.load %arg10[%c0_66, %c33] : memref<8x290xf32, #tpu.memory_space<vmem>>, vector<8x256xf32>
    %c7 = arith.constant 7 : index
    %c0_67 = arith.constant 0 : index
    %c0_68 = arith.constant 0 : index
    %71 = vector.load %arg4[%c7, %c0_67, %c0_68] : memref<9x1x256xf32, #tpu.memory_space<vmem>>, vector<1x1x256xf32>
    %72 = vector.shape_cast %71 : vector<1x1x256xf32> to vector<1x256xf32>
    %73 = vector.broadcast %72 : vector<1x256xf32> to vector<8x256xf32>
    %74 = arith.mulf %70, %73 : vector<8x256xf32>
    %c7_69 = arith.constant 7 : index
    %c0_70 = arith.constant 0 : index
    %c0_71 = arith.constant 0 : index
    %75 = vector.load %arg5[%c7_69, %c0_70, %c0_71] : memref<9x4x8xf32, #tpu.memory_space<vmem>>, vector<1x4x8xf32>
    %76 = vector.shape_cast %75 : vector<1x4x8xf32> to vector<4x8xf32>
    %cst_72 = arith.constant dense<0.000000e+00> : vector<4x256xf32>
    %77 = tpu.matmul %76, %74, %cst_72 {dimension_numbers = #tpu.dot_dimension_numbers<[1], [0], [0], [1], [0, 0, 1, 1], [], []>, precision = #tpu.contract_precision<fp32>} : vector<4x8xf32>, vector<8x256xf32>, vector<4x256xf32> -> vector<4x256xf32>
    %78 = arith.addf %69, %77 : vector<4x256xf32>
    %c0_73 = arith.constant 0 : index
    %c34 = arith.constant 34 : index
    %79 = vector.load %arg10[%c0_73, %c34] : memref<8x290xf32, #tpu.memory_space<vmem>>, vector<8x256xf32>
    %c8 = arith.constant 8 : index
    %c0_74 = arith.constant 0 : index
    %c0_75 = arith.constant 0 : index
    %80 = vector.load %arg4[%c8, %c0_74, %c0_75] : memref<9x1x256xf32, #tpu.memory_space<vmem>>, vector<1x1x256xf32>
    %81 = vector.shape_cast %80 : vector<1x1x256xf32> to vector<1x256xf32>
    %82 = vector.broadcast %81 : vector<1x256xf32> to vector<8x256xf32>
    %83 = arith.mulf %79, %82 : vector<8x256xf32>
    %c8_76 = arith.constant 8 : index
    %c0_77 = arith.constant 0 : index
    %c0_78 = arith.constant 0 : index
    %84 = vector.load %arg5[%c8_76, %c0_77, %c0_78] : memref<9x4x8xf32, #tpu.memory_space<vmem>>, vector<1x4x8xf32>
    %85 = vector.shape_cast %84 : vector<1x4x8xf32> to vector<4x8xf32>
    %cst_79 = arith.constant dense<0.000000e+00> : vector<4x256xf32>
    %86 = tpu.matmul %85, %83, %cst_79 {dimension_numbers = #tpu.dot_dimension_numbers<[1], [0], [0], [1], [0, 0, 1, 1], [], []>, precision = #tpu.contract_precision<fp32>} : vector<4x8xf32>, vector<8x256xf32>, vector<4x256xf32> -> vector<4x256xf32>
    %87 = arith.addf %78, %86 : vector<4x256xf32>
    %c0_80 = arith.constant 0 : index
    %c0_81 = arith.constant 0 : index
    %88 = vector.load %arg6[%c0_80, %c0_81] : memref<4x1xf32, #tpu.memory_space<vmem>>, vector<4x1xf32>
    %89 = vector.broadcast %88 : vector<4x1xf32> to vector<4x256xf32>
    %90 = arith.addf %87, %89 : vector<4x256xf32>
    %cst_82 = arith.constant 0.000000e+00 : f32
    %91 = vector.broadcast %cst_82 : f32 to vector<4x256xf32>
    %92 = arith.maximumf %90, %91 : vector<4x256xf32>
    %cst_83 = arith.constant 0.000000e+00 : f32
    %93 = vector.broadcast %cst_83 : f32 to vector<4x17xf32>
    %c0_84 = arith.constant 0 : index
    %c0_85 = arith.constant 0 : index
    %94 = vector.load %arg11[%c0_84, %c0_85] : memref<4x290xf32, #tpu.memory_space<vmem>>, vector<4x17xf32>
    tpu.vector_store %arg11[%c0_84, %c0_85], %93 {strides = array<i32>} : memref<4x290xf32, #tpu.memory_space<vmem>>, vector<4x17xf32>,
    %cst_86 = arith.constant 0.000000e+00 : f32
    %95 = vector.broadcast %cst_86 : f32 to vector<4x17xf32>
    %c0_87 = arith.constant 0 : index
    %c273_88 = arith.constant 273 : index
    %96 = vector.load %arg11[%c0_87, %c273_88] : memref<4x290xf32, #tpu.memory_space<vmem>>, vector<4x17xf32>
    tpu.vector_store %arg11[%c0_87, %c273_88], %95 {strides = array<i32>} : memref<4x290xf32, #tpu.memory_space<vmem>>, vector<4x17xf32>,
    %c0_89 = arith.constant 0 : index
    %c17_90 = arith.constant 17 : index
    %97 = vector.load %arg11[%c0_89, %c17_90] : memref<4x290xf32, #tpu.memory_space<vmem>>, vector<4x256xf32>
    tpu.vector_store %arg11[%c0_89, %c17_90], %92 {strides = array<i32>} : memref<4x290xf32, #tpu.memory_space<vmem>>, vector<4x256xf32>,
    %c0_91 = arith.constant 0 : index
    %c0_92 = arith.constant 0 : index
    %98 = vector.load %arg11[%c0_91, %c0_92] : memref<4x290xf32, #tpu.memory_space<vmem>>, vector<4x256xf32>
    %c0_93 = arith.constant 0 : index
    %c0_94 = arith.constant 0 : index
    %c0_95 = arith.constant 0 : index
    %99 = vector.load %arg4[%c0_93, %c0_94, %c0_95] : memref<9x1x256xf32, #tpu.memory_space<vmem>>, vector<1x1x256xf32>
    %100 = vector.shape_cast %99 : vector<1x1x256xf32> to vector<1x256xf32>
    %101 = vector.broadcast %100 : vector<1x256xf32> to vector<4x256xf32>
    %102 = arith.mulf %98, %101 : vector<4x256xf32>
    %c0_96 = arith.constant 0 : index
    %c0_97 = arith.constant 0 : index
    %c0_98 = arith.constant 0 : index
    %103 = vector.load %arg7[%c0_96, %c0_97, %c0_98] : memref<9x4x4xf32, #tpu.memory_space<vmem>>, vector<1x4x4xf32>
    %104 = vector.shape_cast %103 : vector<1x4x4xf32> to vector<4x4xf32>
    %cst_99 = arith.constant dense<0.000000e+00> : vector<4x256xf32>
    %105 = tpu.matmul %104, %102, %cst_99 {dimension_numbers = #tpu.dot_dimension_numbers<[1], [0], [0], [1], [0, 0, 1, 1], [], []>, precision = #tpu.contract_precision<fp32>} : vector<4x4xf32>, vector<4x256xf32>, vector<4x256xf32> -> vector<4x256xf32>
    %c0_100 = arith.constant 0 : index
    %c1_101 = arith.constant 1 : index
    %106 = vector.load %arg11[%c0_100, %c1_101] : memref<4x290xf32, #tpu.memory_space<vmem>>, vector<4x256xf32>
    %c1_102 = arith.constant 1 : index
    %c0_103 = arith.constant 0 : index
    %c0_104 = arith.constant 0 : index
    %107 = vector.load %arg4[%c1_102, %c0_103, %c0_104] : memref<9x1x256xf32, #tpu.memory_space<vmem>>, vector<1x1x256xf32>
    %108 = vector.shape_cast %107 : vector<1x1x256xf32> to vector<1x256xf32>
    %109 = vector.broadcast %108 : vector<1x256xf32> to vector<4x256xf32>
    %110 = arith.mulf %106, %109 : vector<4x256xf32>
    %c1_105 = arith.constant 1 : index
    %c0_106 = arith.constant 0 : index
    %c0_107 = arith.constant 0 : index
    %111 = vector.load %arg7[%c1_105, %c0_106, %c0_107] : memref<9x4x4xf32, #tpu.memory_space<vmem>>, vector<1x4x4xf32>
    %112 = vector.shape_cast %111 : vector<1x4x4xf32> to vector<4x4xf32>
    %cst_108 = arith.constant dense<0.000000e+00> : vector<4x256xf32>
    %113 = tpu.matmul %112, %110, %cst_108 {dimension_numbers = #tpu.dot_dimension_numbers<[1], [0], [0], [1], [0, 0, 1, 1], [], []>, precision = #tpu.contract_precision<fp32>} : vector<4x4xf32>, vector<4x256xf32>, vector<4x256xf32> -> vector<4x256xf32>
    %114 = arith.addf %105, %113 : vector<4x256xf32>
    %c0_109 = arith.constant 0 : index
    %c2_110 = arith.constant 2 : index
    %115 = vector.load %arg11[%c0_109, %c2_110] : memref<4x290xf32, #tpu.memory_space<vmem>>, vector<4x256xf32>
    %c2_111 = arith.constant 2 : index
    %c0_112 = arith.constant 0 : index
    %c0_113 = arith.constant 0 : index
    %116 = vector.load %arg4[%c2_111, %c0_112, %c0_113] : memref<9x1x256xf32, #tpu.memory_space<vmem>>, vector<1x1x256xf32>
    %117 = vector.shape_cast %116 : vector<1x1x256xf32> to vector<1x256xf32>
    %118 = vector.broadcast %117 : vector<1x256xf32> to vector<4x256xf32>
    %119 = arith.mulf %115, %118 : vector<4x256xf32>
    %c2_114 = arith.constant 2 : index
    %c0_115 = arith.constant 0 : index
    %c0_116 = arith.constant 0 : index
    %120 = vector.load %arg7[%c2_114, %c0_115, %c0_116] : memref<9x4x4xf32, #tpu.memory_space<vmem>>, vector<1x4x4xf32>
    %121 = vector.shape_cast %120 : vector<1x4x4xf32> to vector<4x4xf32>
    %cst_117 = arith.constant dense<0.000000e+00> : vector<4x256xf32>
    %122 = tpu.matmul %121, %119, %cst_117 {dimension_numbers = #tpu.dot_dimension_numbers<[1], [0], [0], [1], [0, 0, 1, 1], [], []>, precision = #tpu.contract_precision<fp32>} : vector<4x4xf32>, vector<4x256xf32>, vector<4x256xf32> -> vector<4x256xf32>
    %123 = arith.addf %114, %122 : vector<4x256xf32>
    %c0_118 = arith.constant 0 : index
    %c16_119 = arith.constant 16 : index
    %124 = vector.load %arg11[%c0_118, %c16_119] : memref<4x290xf32, #tpu.memory_space<vmem>>, vector<4x256xf32>
    %c3_120 = arith.constant 3 : index
    %c0_121 = arith.constant 0 : index
    %c0_122 = arith.constant 0 : index
    %125 = vector.load %arg4[%c3_120, %c0_121, %c0_122] : memref<9x1x256xf32, #tpu.memory_space<vmem>>, vector<1x1x256xf32>
    %126 = vector.shape_cast %125 : vector<1x1x256xf32> to vector<1x256xf32>
    %127 = vector.broadcast %126 : vector<1x256xf32> to vector<4x256xf32>
    %128 = arith.mulf %124, %127 : vector<4x256xf32>
    %c3_123 = arith.constant 3 : index
    %c0_124 = arith.constant 0 : index
    %c0_125 = arith.constant 0 : index
    %129 = vector.load %arg7[%c3_123, %c0_124, %c0_125] : memref<9x4x4xf32, #tpu.memory_space<vmem>>, vector<1x4x4xf32>
    %130 = vector.shape_cast %129 : vector<1x4x4xf32> to vector<4x4xf32>
    %cst_126 = arith.constant dense<0.000000e+00> : vector<4x256xf32>
    %131 = tpu.matmul %130, %128, %cst_126 {dimension_numbers = #tpu.dot_dimension_numbers<[1], [0], [0], [1], [0, 0, 1, 1], [], []>, precision = #tpu.contract_precision<fp32>} : vector<4x4xf32>, vector<4x256xf32>, vector<4x256xf32> -> vector<4x256xf32>
    %132 = arith.addf %123, %131 : vector<4x256xf32>
    %c0_127 = arith.constant 0 : index
    %c17_128 = arith.constant 17 : index
    %133 = vector.load %arg11[%c0_127, %c17_128] : memref<4x290xf32, #tpu.memory_space<vmem>>, vector<4x256xf32>
    %c4_129 = arith.constant 4 : index
    %c0_130 = arith.constant 0 : index
    %c0_131 = arith.constant 0 : index
    %134 = vector.load %arg7[%c4_129, %c0_130, %c0_131] : memref<9x4x4xf32, #tpu.memory_space<vmem>>, vector<1x4x4xf32>
    %135 = vector.shape_cast %134 : vector<1x4x4xf32> to vector<4x4xf32>
    %cst_132 = arith.constant dense<0.000000e+00> : vector<4x256xf32>
    %136 = tpu.matmul %135, %133, %cst_132 {dimension_numbers = #tpu.dot_dimension_numbers<[1], [0], [0], [1], [0, 0, 1, 1], [], []>, precision = #tpu.contract_precision<fp32>} : vector<4x4xf32>, vector<4x256xf32>, vector<4x256xf32> -> vector<4x256xf32>
    %137 = arith.addf %132, %136 : vector<4x256xf32>
    %c0_133 = arith.constant 0 : index
    %c18_134 = arith.constant 18 : index
    %138 = vector.load %arg11[%c0_133, %c18_134] : memref<4x290xf32, #tpu.memory_space<vmem>>, vector<4x256xf32>
    %c5_135 = arith.constant 5 : index
    %c0_136 = arith.constant 0 : index
    %c0_137 = arith.constant 0 : index
    %139 = vector.load %arg4[%c5_135, %c0_136, %c0_137] : memref<9x1x256xf32, #tpu.memory_space<vmem>>, vector<1x1x256xf32>
    %140 = vector.shape_cast %139 : vector<1x1x256xf32> to vector<1x256xf32>
    %141 = vector.broadcast %140 : vector<1x256xf32> to vector<4x256xf32>
    %142 = arith.mulf %138, %141 : vector<4x256xf32>
    %c5_138 = arith.constant 5 : index
    %c0_139 = arith.constant 0 : index
    %c0_140 = arith.constant 0 : index
    %143 = vector.load %arg7[%c5_138, %c0_139, %c0_140] : memref<9x4x4xf32, #tpu.memory_space<vmem>>, vector<1x4x4xf32>
    %144 = vector.shape_cast %143 : vector<1x4x4xf32> to vector<4x4xf32>
    %cst_141 = arith.constant dense<0.000000e+00> : vector<4x256xf32>
    %145 = tpu.matmul %144, %142, %cst_141 {dimension_numbers = #tpu.dot_dimension_numbers<[1], [0], [0], [1], [0, 0, 1, 1], [], []>, precision = #tpu.contract_precision<fp32>} : vector<4x4xf32>, vector<4x256xf32>, vector<4x256xf32> -> vector<4x256xf32>
    %146 = arith.addf %137, %145 : vector<4x256xf32>
    %c0_142 = arith.constant 0 : index
    %c32_143 = arith.constant 32 : index
    %147 = vector.load %arg11[%c0_142, %c32_143] : memref<4x290xf32, #tpu.memory_space<vmem>>, vector<4x256xf32>
    %c6_144 = arith.constant 6 : index
    %c0_145 = arith.constant 0 : index
    %c0_146 = arith.constant 0 : index
    %148 = vector.load %arg4[%c6_144, %c0_145, %c0_146] : memref<9x1x256xf32, #tpu.memory_space<vmem>>, vector<1x1x256xf32>
    %149 = vector.shape_cast %148 : vector<1x1x256xf32> to vector<1x256xf32>
    %150 = vector.broadcast %149 : vector<1x256xf32> to vector<4x256xf32>
    %151 = arith.mulf %147, %150 : vector<4x256xf32>
    %c6_147 = arith.constant 6 : index
    %c0_148 = arith.constant 0 : index
    %c0_149 = arith.constant 0 : index
    %152 = vector.load %arg7[%c6_147, %c0_148, %c0_149] : memref<9x4x4xf32, #tpu.memory_space<vmem>>, vector<1x4x4xf32>
    %153 = vector.shape_cast %152 : vector<1x4x4xf32> to vector<4x4xf32>
    %cst_150 = arith.constant dense<0.000000e+00> : vector<4x256xf32>
    %154 = tpu.matmul %153, %151, %cst_150 {dimension_numbers = #tpu.dot_dimension_numbers<[1], [0], [0], [1], [0, 0, 1, 1], [], []>, precision = #tpu.contract_precision<fp32>} : vector<4x4xf32>, vector<4x256xf32>, vector<4x256xf32> -> vector<4x256xf32>
    %155 = arith.addf %146, %154 : vector<4x256xf32>
    %c0_151 = arith.constant 0 : index
    %c33_152 = arith.constant 33 : index
    %156 = vector.load %arg11[%c0_151, %c33_152] : memref<4x290xf32, #tpu.memory_space<vmem>>, vector<4x256xf32>
    %c7_153 = arith.constant 7 : index
    %c0_154 = arith.constant 0 : index
    %c0_155 = arith.constant 0 : index
    %157 = vector.load %arg4[%c7_153, %c0_154, %c0_155] : memref<9x1x256xf32, #tpu.memory_space<vmem>>, vector<1x1x256xf32>
    %158 = vector.shape_cast %157 : vector<1x1x256xf32> to vector<1x256xf32>
    %159 = vector.broadcast %158 : vector<1x256xf32> to vector<4x256xf32>
    %160 = arith.mulf %156, %159 : vector<4x256xf32>
    %c7_156 = arith.constant 7 : index
    %c0_157 = arith.constant 0 : index
    %c0_158 = arith.constant 0 : index
    %161 = vector.load %arg7[%c7_156, %c0_157, %c0_158] : memref<9x4x4xf32, #tpu.memory_space<vmem>>, vector<1x4x4xf32>
    %162 = vector.shape_cast %161 : vector<1x4x4xf32> to vector<4x4xf32>
    %cst_159 = arith.constant dense<0.000000e+00> : vector<4x256xf32>
    %163 = tpu.matmul %162, %160, %cst_159 {dimension_numbers = #tpu.dot_dimension_numbers<[1], [0], [0], [1], [0, 0, 1, 1], [], []>, precision = #tpu.contract_precision<fp32>} : vector<4x4xf32>, vector<4x256xf32>, vector<4x256xf32> -> vector<4x256xf32>
    %164 = arith.addf %155, %163 : vector<4x256xf32>
    %c0_160 = arith.constant 0 : index
    %c34_161 = arith.constant 34 : index
    %165 = vector.load %arg11[%c0_160, %c34_161] : memref<4x290xf32, #tpu.memory_space<vmem>>, vector<4x256xf32>
    %c8_162 = arith.constant 8 : index
    %c0_163 = arith.constant 0 : index
    %c0_164 = arith.constant 0 : index
    %166 = vector.load %arg4[%c8_162, %c0_163, %c0_164] : memref<9x1x256xf32, #tpu.memory_space<vmem>>, vector<1x1x256xf32>
    %167 = vector.shape_cast %166 : vector<1x1x256xf32> to vector<1x256xf32>
    %168 = vector.broadcast %167 : vector<1x256xf32> to vector<4x256xf32>
    %169 = arith.mulf %165, %168 : vector<4x256xf32>
    %c8_165 = arith.constant 8 : index
    %c0_166 = arith.constant 0 : index
    %c0_167 = arith.constant 0 : index
    %170 = vector.load %arg7[%c8_165, %c0_166, %c0_167] : memref<9x4x4xf32, #tpu.memory_space<vmem>>, vector<1x4x4xf32>
    %171 = vector.shape_cast %170 : vector<1x4x4xf32> to vector<4x4xf32>
    %cst_168 = arith.constant dense<0.000000e+00> : vector<4x256xf32>
    %172 = tpu.matmul %171, %169, %cst_168 {dimension_numbers = #tpu.dot_dimension_numbers<[1], [0], [0], [1], [0, 0, 1, 1], [], []>, precision = #tpu.contract_precision<fp32>} : vector<4x4xf32>, vector<4x256xf32>, vector<4x256xf32> -> vector<4x256xf32>
    %173 = arith.addf %164, %172 : vector<4x256xf32>
    %c0_169 = arith.constant 0 : index
    %c0_170 = arith.constant 0 : index
    %174 = vector.load %arg8[%c0_169, %c0_170] : memref<4x1xf32, #tpu.memory_space<vmem>>, vector<4x1xf32>
    %175 = vector.broadcast %174 : vector<4x1xf32> to vector<4x256xf32>
    %176 = arith.addf %173, %175 : vector<4x256xf32>
    %cst_171 = arith.constant 0.000000e+00 : f32
    %177 = vector.broadcast %cst_171 : f32 to vector<4x256xf32>
    %178 = arith.maximumf %176, %177 : vector<4x256xf32>
    %c0_172 = arith.constant 0 : index
    %c0_173 = arith.constant 0 : index
    %c0_174 = arith.constant 0 : index
    %179 = vector.load %arg9[%c0_172, %c0_173, %c0_174] : memref<1x4x256xf32, #tpu.memory_space<vmem>>, vector<1x4x256xf32>
    %180 = vector.shape_cast %179 : vector<1x4x256xf32> to vector<4x256xf32>
    %181 = vector.shape_cast %178 : vector<4x256xf32> to vector<1x4x256xf32>
    tpu.vector_store %arg9[%c0_172, %c0_173, %c0_174], %181 {strides = array<i32>} : memref<1x4x256xf32, #tpu.memory_space<vmem>>, vector<1x4x256xf32>,
    return
  }
  func.func @transform_0(%arg0: i32) -> (i32, i32, i32) {
    %c0_i32 = arith.constant 0 : i32
    %c0_i32_0 = arith.constant 0 : i32
    %c0_i32_1 = arith.constant 0 : i32
    return %arg0, %c0_i32, %c0_i32_0 : i32, i32, i32
  }
  func.func @transform_1(%arg0: i32) -> (i32, i32, i32) {
    %c0_i32 = arith.constant 0 : i32
    %c0_i32_0 = arith.constant 0 : i32
    %c0_i32_1 = arith.constant 0 : i32
    return %arg0, %c0_i32, %c0_i32_0 : i32, i32, i32
  }
  func.func @transform_2(%arg0: i32) -> (i32, i32) {
    %c0_i32 = arith.constant 0 : i32
    %c0_i32_0 = arith.constant 0 : i32
    %c0_i32_1 = arith.constant 0 : i32
    return %c0_i32, %c0_i32_0 : i32, i32
  }
  func.func @transform_3(%arg0: i32) -> (i32, i32, i32) {
    %c0_i32 = arith.constant 0 : i32
    %c0_i32_0 = arith.constant 0 : i32
    %c0_i32_1 = arith.constant 0 : i32
    %c0_i32_2 = arith.constant 0 : i32
    return %c0_i32, %c0_i32_0, %c0_i32_1 : i32, i32, i32
  }
  func.func @transform_4(%arg0: i32) -> (i32, i32, i32) {
    %c0_i32 = arith.constant 0 : i32
    %c0_i32_0 = arith.constant 0 : i32
    %c0_i32_1 = arith.constant 0 : i32
    %c0_i32_2 = arith.constant 0 : i32
    return %c0_i32, %c0_i32_0, %c0_i32_1 : i32, i32, i32
  }
  func.func @transform_5(%arg0: i32) -> (i32, i32) {
    %c0_i32 = arith.constant 0 : i32
    %c0_i32_0 = arith.constant 0 : i32
    %c0_i32_1 = arith.constant 0 : i32
    return %c0_i32, %c0_i32_0 : i32, i32
  }
  func.func @transform_6(%arg0: i32) -> (i32, i32, i32) {
    %c0_i32 = arith.constant 0 : i32
    %c0_i32_0 = arith.constant 0 : i32
    %c0_i32_1 = arith.constant 0 : i32
    %c0_i32_2 = arith.constant 0 : i32
    return %c0_i32, %c0_i32_0, %c0_i32_1 : i32, i32, i32
  }
  func.func @transform_7(%arg0: i32) -> (i32, i32) {
    %c0_i32 = arith.constant 0 : i32
    %c0_i32_0 = arith.constant 0 : i32
    %c0_i32_1 = arith.constant 0 : i32
    return %c0_i32, %c0_i32_0 : i32, i32
  }
  func.func @transform_8(%arg0: i32) -> (i32, i32, i32) {
    %c0_i32 = arith.constant 0 : i32
    %c0_i32_0 = arith.constant 0 : i32
    %c0_i32_1 = arith.constant 0 : i32
    return %arg0, %c0_i32, %c0_i32_0 : i32, i32, i32
  }
}

</mosaic_0001>

<bundles_post_ra>
// kernel: tpu_custom_call.1
= control target key start
LH: loop header
LB: loop body
LE: loop exit
PB: predicated region body
PF: predicated region fallthrough
CT: control target
= control target key end

     0   :  { %s12004_s0 = inlined_call_operand.hbm [shape: f32[2,4,64], index: 0, kind: input, shape index: {}]   ;;  %s12005_s1 = inlined_call_operand.hbm [shape: f32[2,4,256], index: 1, kind: input, shape index: {}]   ;;  %s12006_s2 = inlined_call_operand.vmem [shape: f32[64,256], index: 2, kind: input, shape index: {}]   ;;  %s12007_s3 = inlined_call_operand.hbm [shape: f32[9,1,256], index: 3, kind: input, shape index: {}]   ;;  %s12008_s4 = inlined_call_operand.vmem [shape: f32[9,4,8], index: 4, kind: input, shape index: {}]   ;;  %s12009_s5 = inlined_call_operand.vmem [shape: f32[4,1], index: 5, kind: input, shape index: {}]   ;;  %s12010_s6 = inlined_call_operand.vmem [shape: f32[9,4,4], index: 6, kind: input, shape index: {}]   ;;  %s12011_s7 = inlined_call_operand.vmem [shape: f32[4,1], index: 7, kind: input, shape index: {}]   ;;  %s12012_s8 = inlined_call_operand.hbm [shape: f32[2,4,256], index: 8, kind: output, shape index: {}]  }
   0x1   :  { %12030 = sst [smem:[#allocation17_spill]] %s12004_s0 }
   0x2   :  { %12031 = sst [smem:[#allocation18_spill]] %s12007_s3 }
   0x3   :  { %13 = vsyncpa [#allocation5], 0 }
   0x4   :  { %15 = vsyncpa [#allocation5 + $0x1], 0 }
   0x5   :  { %16 = vsyncpa [#allocation8], 0 }
   0x6   :  { %18 = vsyncpa [#allocation8 + $0x1], 0 }
   0x7   :  { %19 = vsyncpa [#allocation6], 0 }
   0x8   :  { %21 = vsyncpa [#allocation6 + $0x1], 0  ;;  %s10976_s27 = smov 0   ;;  %s10978_s28 = smov 0  }
   0x9   :  { %s10980_s29 = smov 0   ;;  %s10982_s30 = smov 0  }
   0xa LB: > { %12032 = sst [smem:[#allocation15_spill]] %s10901_s29  ;;  %s10997_s9 = sadd.s32 4294967295, %s10905_s30   ;;  %s10905_s30 = sphi %s10982_s30, %s12067_s30   ;;  %s10901_s29 = sphi %s10980_s29, %s12064_s29   ;;  %s10897_s28 = sphi %s10978_s28, %s12066_s28   ;;  %s10893_s27 = sphi %s10976_s27, %s12065_s27  }
   0xb   : > { %s10303_s10 = sadd.s32 4294967294, %s10905_s30   ;;  %p47_p0 = scmp.ne.s32.totalorder %s10897_s28, %s10893_s27 }
   0xc   : > { %p12013_p1 = scmp.eq.s32.totalorder %s10997_s9, 0  ;;  %p229_p3 = scmp.eq.s32.totalorder %s10303_s10, 1 }
   0xd   : > { %p10304_p5 = scmp.ge.s32.totalorder %s10905_s30, 1  ;;  %p236_p7 = scmp.lt.s32.totalorder %s10905_s30, 3 }
   0xe   : > { %p11006_p4 = por %p12013_p1, %p47_p0  ;;  %p11011_p6 = por %p229_p3, %p47_p0 }
   0xf   : > { %p11016_p8 = pnand %p10304_p5, %p236_p7  ;;  %s10907_s14 = smov [#allocation9]  }
  0x10   : > { %s12033_s11 = scalar_select %p11006_p4, 1, 0 }
  0x11   : > { %s12034_s12 = scalar_select %p11011_p6, 1, 0 }
  0x12   : > { %s12035_s13 = scalar_select %p11016_p8, 1, 0 }
  0x13   : > { %s251_s15 = sshll.u32 %s10907_s14, 4  ;;  %p10668_p9 = pneg %p11016_p8  ;;  %s11020_s15 = int_to_ptr.vmem [resolvable:$true] %s251_s15 }
  0x14   : > { %s11032_s17 = sadd.s32 1, %s10905_s30   ;;  %s34_s18 = sadd.s32 1, %s10901_s29 }
  0x15   : > { %p11027_p11 = pnand %p10668_p9, %p12013_p1  ;;  %s31_s19 = ssub.s32 %s10905_s30, %s11032_s17 }
  0x16   : > { %s12037_s3 = sld [smem:[#allocation18_spill]] }
  0x17   : > { %p10745_p13 = pneg %p11027_p11 }
  0x1c   : > { %s10743_s22 = scalar_lea.hbm %s12037_s3, 288 }
  0x1d   : > { %p10744_p12 = scmp.ne.s32.totalorder %s12037_s3, %s10743_s22  ;;  %p10750_p5 = scmp.lt.u32.totalorder %s10743_s22, %s12037_s3 }
  0x1f   : > { %p10746_p0 = pnand %p10745_p13, %p10744_p12 }
  0x21   : > { %p10747_p3 = pneg %p10746_p0 }
  0x23   : > { %p10752_p7 = pnand %p10750_p5, %p10747_p3 }
  0x25   : > { %10755 = shalt.err (!%p10752_p7)
}
  0x26   : > { %s10756_s10 = scalar_lea.vmem %s11020_s15, 288  ;;  %p10764_p2 = scmp.lt.s32.totalorder %s11020_s15, %s11020_s15 }
  0x27   : > { %p10757_p9 = scmp.ne.s32.totalorder %s11020_s15, %s10756_s10  ;;  %p10765_p6 = scmp.lt.s32.totalorder %s10756_s10, %s10756_s10 }
  0x29   : > { %p10759_p10 = pnand %p10757_p9, %p10745_p13  ;;  %p10766_p4 = por %p10765_p6, %p10764_p2 }
  0x2b   : > { %p10760_p1 = pneg %p10759_p10 }
  0x2d   : > { %p10767_p8 = pnand %p10766_p4, %p10760_p1 }
  0x2f   : > { %10770 = shalt.err (!%p10767_p8)
}
  0x30   : > { %s10908_s14 = smov 32   ;;  %s10909_s20 = smov 2  }
  0x31   : > { %10671 = dma.hbm_to_vmem [thread:$0]  (!%p11027_p11), %s12037_s3, 288, %s11020_s15, [#allocation8], %s10908_s14, %s10908_s14, %s10909_s20  }
  0x32   : > { %p32_p1 = scmp.eq.s32.totalorder %s31_s19, 0  ;;  %p41_p2 = scmp.ne.s32.totalorder %s10901_s29, %s10897_s28 }
  0x33   : > { %p42_p4 = scmp.eq.s32.totalorder %s10905_s30, 0  ;;  %p10684_p6 = scmp.lt.s32.totalorder %s10905_s30, 2 }
  0x34   : > { %s11063_s23 = scalar_select %p32_p1, %s10901_s29, %s34_s18  }
  0x35   : > { %p43_p8 = por %p42_p4, %p41_p2  ;;  %p12039_p10 = scmp.eq.s32.totalorder %s10997_s9, 1 }
  0x36   : > { %12038 = sst [smem:[#allocation16_spill]] %s11063_s23  ;;  %s11072_s25 = sand.u32 1, %s10901_s29  }
  0x37   : > { %p11067_p12 = por %p12039_p10, %p41_p2  ;;  %s10308_s16 = sshll.u32 %s10905_s30, 6 }
  0x38   : > { %s10307_s26 = sshll.u32 %s11072_s25, 2  ;;  %s12041_s0 = sld [smem:[#allocation17_spill]] }
  0x39   : > { %s12040_s24 = scalar_select %p11067_p12, 1, 0 }
  0x3a   : > { %s281_s18 = scalar_lea.vmem [#allocation4], %s10307_s26  ;;  %p11081_p11 = pnand %p10684_p6, %p43_p8 }
  0x3b   : > { %s288_s14 = sshll.u32 %s281_s18, 4  ;;  %s278_s22 = scalar_lea.sflag [#allocation5], %s11072_s25  ;;  %s11085_s14 = int_to_ptr.vmem [resolvable:$true] %s288_s14 }
  0x3c   : > { %p10773_p0 = pneg %p11081_p11 }
  0x3e   : > { %s11079_s19 = scalar_lea.hbm %s12041_s0, %s10308_s16  ;;  %s10776_s15 = scalar_lea.hbm %s12041_s0, 128 }
  0x3f   : > { %s10771_s3 = scalar_lea.hbm %s11079_s19, 64  ;;  %p10777_p7 = scmp.lt.u32.totalorder %s11079_s19, %s12041_s0 }
  0x40   : > { %p10772_p13 = scmp.ne.s32.totalorder %s11079_s19, %s10771_s3  ;;  %p10778_p9 = scmp.lt.u32.totalorder %s10776_s15, %s10771_s3 }
  0x41   : > { %p10780_p2 = scmp.lt.u32.totalorder %s10771_s3, %s11079_s19 }
  0x42   : > { %p10774_p3 = pnand %p10773_p0, %p10772_p13  ;;  %p10779_p1 = por %p10778_p9, %p10777_p7 }
  0x44   : > { %p10775_p5 = pneg %p10774_p3  ;;  %p10781_p4 = por %p10780_p2, %p10779_p1 }
  0x46   : > { %p10782_p6 = pnand %p10781_p4, %p10775_p5 }
  0x48   : > { %10785 = shalt.err (!%p10782_p6)
}
  0x49   : > { %s10786_s21 = scalar_lea.vmem %s11085_s14, 64  ;;  %s10910_s16 = smov [#allocation4]  }
  0x4a   : > { %p10787_p8 = scmp.ne.s32.totalorder %s11085_s14, %s10786_s21  ;;  %s10791_s26 = sshll.u32 %s10910_s16, 4  ;;  %s10792_s26 = int_to_ptr.vmem [resolvable:$false] %s10791_s26 }
  0x4b   : > { %s10793_s10 = scalar_lea.vmem %s10792_s26, 128  ;;  %p10794_p3 = scmp.lt.s32.totalorder %s11085_s14, %s10792_s26 }
  0x4c   : > { %p10789_p10 = pnand %p10787_p8, %p10773_p0  ;;  %p10795_p7 = scmp.lt.s32.totalorder %s10793_s10, %s10786_s21 }
  0x4e   : > { %p10790_p13 = pneg %p10789_p10  ;;  %p10796_p9 = por %p10795_p7, %p10794_p3 }
  0x50   : > { %p10797_p1 = pnand %p10796_p9, %p10790_p13 }
  0x52   : > { %10800 = shalt.err (!%p10797_p1)
}
  0x53   : > { %10675 = dma.hbm_to_vmem [thread:$0]  (!%p11081_p11), %s11079_s19, 64, %s11085_s14, %s278_s22  }
  0x54   : > { %s10309_s3 = sshll.u32 %s11072_s25, 3  ;;  %s10338_s15 = sshll.u32 %s10905_s30, 7 }
  0x55   : > { %s11119_s0 = scalar_lea.hbm %s12005_s1, %s10338_s15  ;;  %s299_s21 = scalar_lea.vmem [#allocation7], %s10309_s3 }
  0x56   : > { %s307_s26 = sshll.u32 %s299_s21, 4  ;;  %s12043_s10 = sand.u32 1, %s10905_s30   ;;  %s308_s26 = int_to_ptr.vmem [resolvable:$true] %s307_s26 }
  0x57   : > { %s296_s23 = scalar_lea.sflag [#allocation8], %s12043_s10  ;;  %s10801_s29 = scalar_lea.hbm %s11119_s0, 128 }
  0x58   : > { %p10802_p5 = scmp.ne.s32.totalorder %s11119_s0, %s10801_s29  ;;  %s10806_s14 = scalar_lea.hbm %s12005_s1, 256 }
  0x59   : > { %p10807_p6 = scmp.lt.u32.totalorder %s11119_s0, %s12005_s1  ;;  %p10808_p8 = scmp.lt.u32.totalorder %s10806_s14, %s10801_s29 }
  0x5a   : > { %p10804_p2 = pnand %p10802_p5, %p10773_p0  ;;  %p10810_p13 = scmp.lt.u32.totalorder %s10801_s29, %s11119_s0 }
  0x5b   : > { %p10809_p10 = por %p10808_p8, %p10807_p6 }
  0x5c   : > { %p10805_p4 = pneg %p10804_p2 }
  0x5d   : > { %p10811_p3 = por %p10810_p13, %p10809_p10 }
  0x5f   : > { %p10812_p7 = pnand %p10811_p3, %p10805_p4 }
  0x61   : > { %10815 = shalt.err (!%p10812_p7)
}
  0x62   : > { %s10816_s3 = scalar_lea.vmem %s308_s26, 128  ;;  %s10911_s18 = smov [#allocation7]  }
  0x63   : > { %p10817_p9 = scmp.ne.s32.totalorder %s308_s26, %s10816_s3  ;;  %s10821_s16 = sshll.u32 %s10911_s18, 4  ;;  %s10822_s16 = int_to_ptr.vmem [resolvable:$false] %s10821_s16 }
  0x64   : > { %s10823_s21 = scalar_lea.vmem %s10822_s16, 256  ;;  %p10824_p2 = scmp.lt.s32.totalorder %s308_s26, %s10822_s16 }
  0x65   : > { %p10819_p1 = pnand %p10817_p9, %p10773_p0  ;;  %p10825_p12 = scmp.lt.s32.totalorder %s10823_s21, %s10816_s3 }
  0x67   : > { %p10820_p5 = pneg %p10819_p1  ;;  %p10826_p6 = por %p10825_p12, %p10824_p2 }
  0x69   : > { %p10827_p8 = pnand %p10826_p6, %p10820_p5 }
  0x6b   : > { %10830 = shalt.err (!%p10827_p8)
}
  0x6c   : > { %10678 = dma.hbm_to_vmem [thread:$0]  (!%p11081_p11), %s11119_s0, 128, %s308_s26, %s296_s23  }
  0x6d   : > { %p12044_p4 = scmp.ne.s32.totalorder %s12035_s13, 0 }
  0x6e   : > { %s11145_s29 = sand.u32 (!%p12044_p4), 1, %s10897_s28   ;;  %p12045_p12 = scmp.ne.s32.totalorder (!%p12044_p4), %s12033_s11, 0 }
  0x6f   : > { %316 = sbr.rel (%p12044_p4) target bundleno = 2294 (0x8f6), region = 52  ;;  %s10313_s10 = sshll.u32 (!%p12044_p4), %s11145_s29, 2 }
  0x70   : > { %s319_s25 = scalar_lea.sflag (!%p12044_p4), [#allocation5], %s11145_s29  ;;  %s11149_s19 = scalar_lea.vmem (!%p12044_p4), [#allocation4], %s10313_s10 }
  0x76   : > { %10876 = dma.done.wait (%p12045_p12), %s319_s25, 64  }
  0x77   : > { %10878 = vsyncadd (%p12045_p12), %s319_s25, 4294967232  ;;  %s327_s0 = sand.u32 1, %s10997_s9   ;;  %s12018_s13 = sshll.u32 %s11145_s29, 3 }
  0x78   : > { %s328_s23 = scalar_lea.sflag [#allocation8], %s327_s0  ;;  %s11159_s20 = scalar_lea.vmem [#allocation7], %s12018_s13 }
  0x79   : > { %10880 = dma.done.wait (%p12045_p12), %s328_s23, 128  }
  0x7a   : > { %10882 = vsyncadd (%p12045_p12), %s328_s23, 4294967168  ;;  %p12046_p11 = scmp.eq.s32.totalorder %s10997_s9, 0 }
  0x7c   : > { %10884 = dma.done.wait (%p12046_p11), [#allocation8], 288   ;;  %p12047_p0 = pmov %p12046_p11 }
  0x7d   : > { %v10912_v0 = vmov 0.0   ;;  %v375_v1 = vld [vmem:[%s12006_s2 + $0x8] sm:$0xff]  ;;  %v377_v2 = vld [vmem:[%s12006_s2 + $0x18] sm:$0xff]  ;;  %v374_v3 = vld [vmem:[%s12006_s2] sm:$0xff]  ;;  %vm390_vm0 = vcmask 523264   ;;  %s10914_s18 = smov 1  }
  0x7e   : > { %10886 = vsyncadd (%p12047_p0), [#allocation8], 4294967008  ;;  %474 = vmatprep.mubr.f32.mxu1 %v10912_v0  ;;  %823 = vmatprep.mubr.f32.mxu0 %v10912_v0  ;;  %v394_v4 = vand.u32 4294901760, %v375_v1  ;;  %v398_v5 = vand.u32 4294901760, %v377_v2  ;;  %v376_v6 = vld [vmem:[%s12006_s2 + $0x10] sm:$0xff]  ;;  %v396_v7 = vand.u32 4294901760, %v374_v3 }
  0x7f   : > { %v379_v8 = vld [vmem:[%s12006_s2 + $0x28] sm:$0xff]  ;;  %v381_v9 = vld [vmem:[%s12006_s2 + $0x38] sm:$0xff]  ;;  %v400_v10 = vand.u32 4294901760, %v376_v6  ;;  %v378_v13 = vld [vmem:[%s12006_s2 + $0x20] sm:$0xff]  ;;  %vm1041_vm1 = vcmask 138240   ;;  %vm1043_vm2 = vcmask 277640  }
  0x80   : > { %v402_v11 = vand.u32 4294901760, %v379_v8  ;;  %v406_v12 = vand.u32 4294901760, %v381_v9  ;;  %v380_v14 = vld [vmem:[%s12006_s2 + $0x30] sm:$0xff]  ;;  %v383_v15 = vld [vmem:[%s12006_s2 + $0x48] sm:$0xff]  ;;  %v11198_v16 = vpack.c.bf16 %v398_v5, %v394_v4  ;;  %v11200_v17 = vsub.f32 %v375_v1, %v394_v4  ;;  %v385_v19 = vld [vmem:[%s12006_s2 + $0x58] sm:$0xff]  ;;  %1042 = vst.msk [vmem:[#allocation2] sm:$0xff] %vm1041_vm1, %v10912_v0 }
  0x81   : > { %v11202_v18 = vsub.f32 %v377_v2, %v398_v5  ;;  %v382_v20 = vld [vmem:[%s12006_s2 + $0x40] sm:$0xff]  ;;  %v384_v21 = vld [vmem:[%s12006_s2 + $0x50] sm:$0xff]  ;;  %v11213_v22 = vpack.c.bf16 %v400_v10, %v396_v7  ;;  %v11215_v23 = vsub.f32 %v374_v3, %v396_v7  ;;  %v11217_v24 = vsub.f32 %v376_v6, %v400_v10  ;;  %v387_v26 = vld [vmem:[%s12006_s2 + $0x68] sm:$0xff]  ;;  %1044 = vst.msk [vmem:[#allocation2 + $0x10] sm:$0xff] %vm1043_vm2, %v10912_v0  ;;  %s10916_s16 = smov 2   ;;  %s10917_s21 = smov 16  }
  0x82   : > { %v11219_v25 = vpack.c.bf16 %v406_v12, %v402_v11  ;;  %v389_v27 = vld [vmem:[%s12006_s2 + $0x78] sm:$0xff]  ;;  %10341 = vmatprep.subr.bf16.mxu1 %v11198_v16  ;;  %10389 = vmatprep.subr.bf16.mxu0 %v11198_v16  ;;  %v11229_v28 = vsub.f32 %v379_v8, %v402_v11  ;;  %v404_v29 = vand.u32 4294901760, %v378_v13  ;;  %v408_v30 = vand.u32 4294901760, %v380_v14  ;;  %v386_v40 = vld [vmem:[%s12006_s2 + $0x60] sm:$0xff]  ;;  %v388_v41 = vld [vmem:[%s12006_s2 + $0x70] sm:$0xff]  ;;  %s10918_s0 = smov 126  }
  0x83   : > { %v410_v31 = vand.u32 4294901760, %v383_v15  ;;  %10343 = vmatpush1.bf16.msra.mxu1 %v11213_v22  ;;  %10391 = vmatpush1.bf16.msra.mxu0 %v11213_v22  ;;  %v414_v32 = vand.u32 4294901760, %v385_v19  ;;  %v412_v33 = vand.u32 4294901760, %v382_v20  ;;  %v416_v34 = vand.u32 4294901760, %v384_v21  ;;  %v373_v46 = vld [vmem:[%s11149_s19] sm:$0xf] }
  0x84   : > { %v418_v35 = vand.u32 4294901760, %v387_v26  ;;  %10345 = vmatprep.subr.bf16.mxu1 %v11219_v25  ;;  %v11234_v36 = vsub.f32 %v381_v9, %v406_v12  ;;  %10393 = vmatprep.subr.bf16.mxu0 %v11219_v25  ;;  %v11237_v37 = vpack.c.bf16 %v408_v30, %v404_v29  ;;  %v11239_v38 = vsub.f32 %v378_v13, %v404_v29  ;;  %s10913_s19 = smov 17   ;;  %s10919_s23 = smov 112  }
  0x85   : > { %v422_v39 = vand.u32 4294901760, %v389_v27  ;;  %v11247_v42 = vsub.f32 %v380_v14, %v408_v30  ;;  %v11249_v43 = vpack.c.bf16 %v414_v32, %v410_v31  ;;  %v11251_v44 = vsub.f32 %v383_v15, %v410_v31  ;;  %s10920_s26 = smov 18   ;;  %s10921_s14 = smov 111  }
  0x86   : > { %v11253_v45 = vsub.f32 %v385_v19, %v414_v32  ;;  %v11256_v47 = vpack.c.bf16 %v416_v34, %v412_v33  ;;  %v11258_v48 = vsub.f32 %v382_v20, %v412_v33  ;;  %v11260_v49 = vsub.f32 %v384_v21, %v416_v34  ;;  %s10922_s11 = smov 32   ;;  %s10923_s25 = smov 110  }
  0x87   : > { %v11262_v50 = vpack.c.bf16 %v422_v39, %v418_v35  ;;  %10347 = vmatpush1.bf16.msra.mxu1 %v11237_v37  ;;  %10395 = vmatpush1.bf16.msra.mxu0 %v11237_v37  ;;  %v11266_v51 = vsub.f32 %v387_v26, %v418_v35  ;;  %v420_v52 = vand.u32 4294901760, %v386_v40  ;;  %v424_v53 = vand.u32 4294901760, %v388_v41  ;;  %s10924_s22 = smov 33   ;;  %s12025_s15 = smov 96  }
  0x88   : > { %v488_v54 = vand.u32 4294901760, %v11200_v17  ;;  %10349 = vmatprep.subr.bf16.mxu1 %v11249_v43  ;;  %10397 = vmatprep.subr.bf16.mxu0 %v11249_v43  ;;  %v500_v55 = vand.u32 4294901760, %v11202_v18  ;;  %v392_v56 = vsel %vm390_vm0, %v373_v46, 0  ;;  %v494_v57 = vand.u32 4294901760, %v11215_v23  ;;  %s12022_s13 = smov 34   ;;  %s12020_s3 = smov 95  }
  0x89   : > { %v506_v58 = vand.u32 4294901760, %v11217_v24  ;;  %v11275_v59 = vsub.f32 %v389_v27, %v422_v39  ;;  %v11277_v60 = vpack.c.bf16 %v424_v53, %v420_v52  ;;  %v11279_v61 = vsub.f32 %v386_v40, %v420_v52  ;;  %s12023_s10 = smov 94   ;;  %p12060_p13 = scmp.ne.s32.totalorder %s12040_s24, 0 }
  0x8a   : > { %v489_v62 = vsub.f32 %v11200_v17, %v488_v54  ;;  %v11282_v63 = vsub.f32 %v388_v41, %v424_v53  ;;  %v501_v1 = vsub.f32 %v11202_v18, %v500_v55  ;;  %v11285_v2 = vand.u32 4294901760, %v392_v56 }
  0x8b   : > { %v495_v3 = vsub.f32 %v11215_v23, %v494_v57  ;;  %10351 = vmatpush1.bf16.msra.mxu1 %v11256_v47  ;;  %10399 = vmatpush1.bf16.msra.mxu0 %v11256_v47  ;;  %v10404_v5 = vpack.c.bf16 %v500_v55, %v488_v54  ;;  %v507_v6 = vsub.f32 %v11217_v24, %v506_v58  ;;  %v512_v7 = vand.u32 4294901760, %v11229_v28 }
  0x8c   : > { %v490_v4 = vand.u32 4294901760, %v489_v62  ;;  %10353 = vmatprep.subr.bf16.mxu1 %v11262_v50  ;;  %10401 = vmatprep.subr.bf16.mxu0 %v11262_v50  ;;  %v502_v8 = vand.u32 4294901760, %v501_v1  ;;  %v11295_v9 = vsub.f32 %v392_v56, %v11285_v2  ;;  %v524_v11 = vand.u32 4294901760, %v11234_v36 }
  0x8d   : > { %v496_v10 = vand.u32 4294901760, %v495_v3  ;;  %v508_v12 = vand.u32 4294901760, %v507_v6  ;;  %v513_v13 = vsub.f32 %v11229_v28, %v512_v7  ;;  %v518_v14 = vand.u32 4294901760, %v11239_v38 }
  0x8e   : > { %v530_v15 = vand.u32 4294901760, %v11247_v42  ;;  %v10356_v19 = vpack.c.bf16 %v502_v8, %v490_v4  ;;  %v477_v20 = vand.u32 4294901760, %v11295_v9  ;;  %v10406_v21 = vpack.c.bf16 %v506_v58, %v494_v57 }
  0x8f   : > { %v525_v26 = vsub.f32 %v11234_v36, %v524_v11  ;;  %10355 = vmatpush1.bf16.msra.mxu1 %v11277_v60  ;;  %10403 = vmatpush1.bf16.msra.mxu0 %v11277_v60  ;;  %v514_v27 = vand.u32 4294901760, %v513_v13  ;;  %v10408_v29 = vpack.c.bf16 %v524_v11, %v512_v7  ;;  %v519_v30 = vsub.f32 %v11239_v38, %v518_v14 }
  0x90   : > { %v531_v31 = vsub.f32 %v11247_v42, %v530_v15  ;;  %10357 = vmatprep.subr.bf16.mxu1 %v10356_v19  ;;  %10405 = vmatprep.subr.bf16.mxu0 %v10404_v5  ;;  %v478_v32 = vsub.f32 %v11295_v9, %v477_v20  ;;  %v10358_v33 = vpack.c.bf16 %v508_v12, %v496_v10  ;;  %v536_v35 = vand.u32 4294901760, %v11251_v44 }
  0x91   : > { %v526_v34 = vand.u32 4294901760, %v525_v26  ;;  %v520_v39 = vand.u32 4294901760, %v519_v30  ;;  %v548_v41 = vand.u32 4294901760, %v11253_v45  ;;  %v542_v46 = vand.u32 4294901760, %v11258_v48 }
  0x92   : > { %v532_v40 = vand.u32 4294901760, %v531_v31  ;;  %v479_v52 = vand.u32 4294901760, %v478_v32  ;;  %827 = vmatmul.mubr.f32.vlgmr.msra.gmra.mrb[0].mxu0 %v477_v20  ;;  %v537_v54 = vsub.f32 %v11251_v44, %v536_v35  ;;  %v554_v55 = vand.u32 4294901760, %v11260_v49 }
  0x93   : > { %v10360_v53 = vpack.c.bf16 %v526_v34, %v514_v27  ;;  %10407 = vmatpush1.bf16.msra.mxu0 %v10406_v21  ;;  %v10410_v57 = vpack.c.bf16 %v530_v15, %v518_v14  ;;  %v549_v58 = vsub.f32 %v11253_v45, %v548_v41  ;;  %v543_v62 = vsub.f32 %v11258_v48, %v542_v46 }
  0x94   : > { %v10362_v56 = vpack.c.bf16 %v532_v40, %v520_v39  ;;  %480 = vmatmul.mubr.f32.vlgmr.msra.gmra.mrb[0].mxu1 %v479_v52  ;;  %10409 = vmatprep.subr.bf16.mxu0 %v10408_v29  ;;  %v538_v1 = vand.u32 4294901760, %v537_v54  ;;  %v10412_v3 = vpack.c.bf16 %v548_v41, %v536_v35  ;;  %v555_v4 = vsub.f32 %v11260_v49, %v554_v55 }
  0x95   : > { %v560_v5 = vand.u32 4294901760, %v11266_v51  ;;  %10359 = vmatpush1.bf16.msra.mxu1 %v10358_v33  ;;  %v550_v6 = vand.u32 4294901760, %v549_v58  ;;  %v544_v7 = vand.u32 4294901760, %v543_v62  ;;  %v572_v8 = vand.u32 4294901760, %v11275_v59  ;;  %630 = vmatprep.mubr.f32.mxu1 %v10912_v0 }
  0x96   : > { %v566_v10 = vand.u32 4294901760, %v11279_v61  ;;  %10361 = vmatprep.subr.bf16.mxu1 %v10360_v53  ;;  %v556_v11 = vand.u32 4294901760, %v555_v4  ;;  %v578_v13 = vand.u32 4294901760, %v11282_v63  ;;  %945 = vmatprep.mubr.f32.mxu0 %v10912_v0  ;;  %v10414_v15 = vpack.c.bf16 %v554_v55, %v542_v46 }
  0x97   : > { %v561_v12 = vsub.f32 %v11266_v51, %v560_v5  ;;  %10411 = vmatpush1.bf16.msra.mxu0 %v10410_v57  ;;  %v10364_v14 = vpack.c.bf16 %v550_v6, %v538_v1  ;;  %v573_v19 = vsub.f32 %v11275_v59, %v572_v8  ;;  %v10416_v26 = vpack.c.bf16 %v572_v8, %v560_v5  ;;  %v2073_v57 = vld [vmem:[#allocation9 + $0x4] sm:$0x3]  ;;  %v2582_v5 = vld [vmem:[#allocation9 + $0x6] sm:$0x3] }
  0x98   : > { %v567_v20 = vsub.f32 %v11279_v61, %v566_v10  ;;  %10413 = vmatprep.subr.bf16.mxu0 %v10412_v3  ;;  %v579_v27 = vsub.f32 %v11282_v63, %v578_v13  ;;  %v10366_v29 = vpack.c.bf16 %v556_v11, %v544_v7  ;;  %v10418_v34 = vpack.c.bf16 %v578_v13, %v566_v10  ;;  %v10317_v11 = vld [vmem:[%s12008_s4 + $0x4] sm:$0xf] }
  0x99   : > { %v562_v21 = vand.u32 4294901760, %v561_v12  ;;  %10363 = vmatpush1.bf16.msra.mxu1 %v10362_v56  ;;  %v574_v30 = vand.u32 4294901760, %v573_v19  ;;  %v10372_v39 = vpack.c.bf16 %v11202_v18, %v11200_v17  ;;  %v10374_v40 = vpack.c.bf16 %v11217_v24, %v11215_v23  ;;  %v1045_v24 = vld [vmem:[%s11159_s20] sm:$0xff]  ;;  %s10915_s20 = smov 127  }
  0x9a   : > { %v568_v31 = vand.u32 4294901760, %v567_v20  ;;  %10365 = vmatprep.subr.bf16.mxu1 %v10364_v14  ;;  %v580_v32 = vand.u32 4294901760, %v579_v27  ;;  %v10376_v41 = vpack.c.bf16 %v11234_v36, %v11229_v28  ;;  %v10380_v17 = vpack.c.bf16 %v11253_v45, %v11251_v44  ;;  %1048 = vrot.lane.b32.xlu0 %v1045_v24, %s10913_s19 }
  0x9b   : > { %10415 = vmatpush1.bf16.msra.mxu0 %v10414_v15  ;;  %v10368_v33 = vpack.c.bf16 %v574_v30, %v562_v21  ;;  %v10382_v18 = vpack.c.bf16 %v11260_v49, %v11258_v48  ;;  %v10386_v23 = vpack.c.bf16 %v11282_v63, %v11279_v61  ;;  %v1082_v28 = vlaneseq }
  0x9c   : > { %10417 = vmatprep.subr.bf16.mxu0 %v10416_v26  ;;  %v10370_v35 = vpack.c.bf16 %v580_v32, %v568_v31  ;;  %vm1059_vm3 = vcmask 134144   ;;  %vm1056_vm4 = vcmask 1043592   ;;  %vm1073_vm5 = vcmask 1047692  }
  0x9d   : > { %10367 = vmatpush1.bf16.msra.mxu1 %v10366_v29  ;;  %v1083_v36 = vshrl.u32 %v1082_v28, 7  ;;  %5622 = vst.msk [vmem:[#allocation3] sm:$0xf] %vm1059_vm3, %v10912_v0  ;;  %vm1076_vm6 = vcmask 138244   ;;  %vm1111_vm7 = vcmask 7168   ;;  %vm1135_vm8 = vcmask 64512  }
  0x9e   : > { %10369 = vmatprep.subr.bf16.mxu1 %v10368_v33  ;;  %v1137_v12 = vsel %vm1135_vm8, %v10317_v11, 0  ;;  %vm1130_vm9 = vcmask 1039360   ;;  %vm2087_vm10 = vcmask 15360   ;;  %vm2596_vm11 = vcmask 130048  }
  0x9f   : > { %10419 = vmatpush1.bf16.msra.mxu0 %v10418_v34  ;;  %v11374_v61 = vsub.s32 1, %v1083_v36  ;;  %v11405_v13 = vand.u32 4294901760, %v1137_v12  ;;  %vm2106_vm12 = vcmask 1031168   ;;  %vm3591_vm13 = vcmask 146432  }
  0xa0   : > { %10421 = vmatprep.subr.bf16.mxu0 %v11198_v16  ;;  %v10378_v16 = vpack.c.bf16 %v11247_v42, %v11239_v38  ;;  %v1097_v38 = vld [vmem:[#allocation9 + $0x2] sm:$0x3]  ;;  %vm3101_vm14 = vcmask 908288   ;;  %vm4100_vm15 = vcmask 261120   ;;  %vm2615_vm0 = vcmask 916480  }
  0xa1   : > { %10371 = vmatpush1.bf16.msra.mxu1 %v10370_v35  ;;  %v2082_v8 = vrot.slane %v2073_v57, %v11374_v61  ;;  %v2591_v10 = vrot.slane %v2582_v5, %v11374_v61  ;;  %v11408_v14 = vsub.f32 %v1137_v12, %v11405_v13  ;;  %vm3610_vm2 = vcmask 900096  }
  0xa2   : > { %10373 = vmatprep.subr.bf16.mxu1 %v10372_v39  ;;  %947 = vmatmul.mubr.f32.vlgmr.msra.gmra.mrb[0].mxu0 %v11285_v2 }
  0xa3   : > { %10423 = vmatpush1.bf16.msra.mxu0 %v11213_v22  ;;  %1033 = vmatprep.mubr.f32.mxu0 %v10912_v0  ;;  %v10384_v22 = vpack.c.bf16 %v11275_v59, %v11266_v51  ;;  %v1208_v15 = vand.u32 4294901760, %v11408_v14 }
  0xa4   : > { %632 = vmatmul.mubr.f32.vlgmr.msra.gmra.mrb[0].mxu1 %v11285_v2  ;;  %10425 = vmatprep.subr.bf16.mxu0 %v11219_v25  ;;  %v1047_v25 = vcombine.high %v1045_v24, %v1045_v24 }
  0xa5   : > { %10375 = vmatpush1.bf16.msra.mxu1 %v10374_v40  ;;  %734 = vmatprep.mubr.f32.mxu1 %v10912_v0  ;;  %v1209_v26 = vsub.f32 %v11408_v14, %v1208_v15 }
  0xa6   : > { %10377 = vmatprep.subr.bf16.mxu1 %v10376_v41  ;;  %1050 = vrot.lane.b32.xlu0 %v1047_v25, %s10913_s19 }
  0xa7   : > { %10427 = vmatpush1.bf16.msra.mxu0 %v11237_v37  ;;  %v11361_v37 = vsub.s32 0, %v1083_v36  ;;  %v1210_v32 = vand.u32 4294901760, %v1209_v26 }
  0xa8   : > { %10429 = vmatprep.subr.bf16.mxu0 %v11249_v43 }
  0xa9   : > { %10379 = vmatpush1.bf16.msra.mxu1 %v10378_v16  ;;  %v1102_v42 = vrot.slane %v1097_v38, %v11361_v37  ;;  %v2078_v4 = vrot.slane %v2073_v57, %v11361_v37  ;;  %v2587_v7 = vrot.slane %v2582_v5, %v11361_v37 }
  0xaa   : > { %10381 = vmatprep.subr.bf16.mxu1 %v10380_v17 }
  0xab   : > { %10431 = vmatpush1.bf16.msra.mxu0 %v11256_v47  ;;  %1107 = vrot.lane.b32.xlu0 %v1102_v42, %s10914_s18 }
  0xac   : > { %10433 = vmatprep.subr.bf16.mxu0 %v11262_v50 }
  0xad   : > { %10383 = vmatpush1.bf16.msra.mxu1 %v10382_v18 }
  0xae   : > { %10385 = vmatprep.subr.bf16.mxu1 %v10384_v22 }
  0xaf   : > { %10435 = vmatpush1.bf16.msra.mxu0 %v11277_v60 }
  0xb1   : > { %10387 = vmatpush1.bf16.msra.mxu1 %v10386_v23 }
  0xb2   : > { %1035 = vmatmul.mubr.f32.vlgmr.msra.gmra.mrb[0].mxu0 %v11285_v2  ;;  %v1106_v2 = vrot.slane %v1097_v38, %v11374_v61 }
  0xb3   : > { %5761 = vmatprep.mubr.f32.mxu0 %v10912_v0 }
  0xb4   : > { %737 = vmatmul.mubr.f32.vlgmr.msra.gmra.mrb[0].mxu1 %v11295_v9 }
  0xb5   : > { %1205 = vmatprep.mubr.f32.mxu1 %v10912_v0 }
 0x10c   : > { %v1049_v43 = vpop.permute.xlu0 %1048 }
 0x10d   : > { %1057 = vst.msk [vmem:[#allocation2] sm:$0xf] %vm1056_vm4, %v1049_v43 }
 0x118   : > { %v1051_v44 = vpop.permute.xlu0 %1050 }
 0x119   : > { %v1052_v45 = vsel %vm1041_vm1, %v1049_v43, %v1051_v44  ;;  %1060 = vst.msk [vmem:[#allocation2 + $0x10] sm:$0xf] %vm1059_vm3, %v1051_v44  ;;  %v3577_v44 = vld [vmem:[#allocation9 + $0xa] sm:$0x3] }
 0x11a   : > { %1058 = vst [vmem:[#allocation2 + $0x8] sm:$0xf] %v1052_v45 }
 0x11d   : > { %v1108_v54 = vpop.permute.xlu0 %1107 }
 0x185   : > { %v1036_v47 = vpop.f32.mrb[0].mxu0 }
 0x186   : > { %v1038_v48 = vpop.f32.mrb[1].mxu0 }
 0x187   : > { %v738_v49 = vpop.f32.mrb[0].mxu1 }
 0x188   : > { %v10436_v50 = vadd.f32 %v1036_v47, %v738_v49  ;;  %v740_v51 = vpop.f32.mrb[1].mxu1  ;;  %v3586_v49 = vrot.slane %v3577_v44, %v11374_v61 }
 0x189   : > { %v10437_v59 = vadd.f32 %v1038_v48, %v740_v51  ;;  %v3582_v48 = vrot.slane %v3577_v44, %v11361_v37 }
 0x18a   : > { %v1063_v60 = vrot.slane %v10436_v50, 4  ;;  %v1080_v50 = vld [vmem:[#allocation9] sm:$0x3] }
 0x18b   : > { %v1064_v63 = vrot.slane %v10437_v59, 4  ;;  %v1089_v51 = vrot.slane %v1080_v50, %v11374_v61  ;;  %v4086_v59 = vld [vmem:[#allocation9 + $0xc] sm:$0x3] }
 0x18c   : > { %1065 = vrot.lane.b32.xlu1 %v1063_v60, %s10913_s19  ;;  %v4091_v60 = vrot.slane %v4086_v59, %v11361_v37 }
 0x190   : > { %1067 = vrot.lane.b32.xlu1 %v1064_v63, %s10913_s19 }
 0x194   : > { %1109 = vrot.lane.b32.xlu1 %v1106_v2, %s10914_s18  ;;  %v1094_v2 = vld [vmem:[%s12008_s4] sm:$0xf] }
 0x1fe   : > { %v1066_v9 = vpop.permute.xlu1 %1065 }
 0x1ff   : > { %1074 = vst.msk [vmem:[#allocation2] sm:$0xf0] %vm1073_vm5, %v1066_v9  ;;  %vm4609_vm5 = vcmask 269312  }
 0x202   : > { %v1068_v46 = vpop.permute.xlu1 %1067 }
 0x203   : > { %v1069_v52 = vsel %vm1041_vm1, %v1066_v9, %v1068_v46  ;;  %1077 = vst.msk [vmem:[#allocation2 + $0x10] sm:$0xf0] %vm1076_vm6, %v1068_v46  ;;  %v4095_v9 = vrot.slane %v4086_v59, %v11374_v61  ;;  %v1085_v46 = vrot.slane %v1080_v50, %v11361_v37  ;;  %vm12019_vm6 = vcmask 277504  }
 0x204   : > { %1075 = vst [vmem:[#allocation2 + $0x8] sm:$0xf0] %v1069_v52 }
 0x206   : > { %v1110_v53 = vpop.permute.xlu1 %1109  ;;  %v11387_v3 = vld [vmem:[#allocation2] sm:$0xff] }
 0x207   : > { %v1112_v55 = vsel %vm1111_vm7, %v1108_v54, %v1110_v53  ;;  %v1116_v6 = vmul.f32 %v1108_v54, %v11387_v3  ;;  %v1092_v54 = vmul.f32 %v1085_v46, %v11387_v3 }
 0x20a   : > { %v11381_v56 = vld [vmem:[#allocation2 + $0x10] sm:$0xff] }
 0x20b   : > { %v11383_v58 = vld [vmem:[#allocation2 + $0x8] sm:$0xff]  ;;  %v1118_v62 = vmul.f32 %v1110_v53, %v11381_v56  ;;  %v1605_v53 = vsel %vm1135_vm8, %v1094_v2, 0 }
 0x20c   : > { %v1117_v1 = vmul.f32 %v1112_v55, %v11383_v58  ;;  %v1093_v63 = vmul.f32 %v1089_v51, %v11383_v58  ;;  %v1674_v57 = vand.u32 4294901760, %v1605_v53 }
 0x20d   : > { %1128 = vrot.lane.b32.xlu1 %v1118_v62, %s10915_s20  ;;  %v1609_v62 = vand.u32 4294901760, %v1092_v54 }
 0x20e   : > { %1126 = vrot.lane.b32.xlu0 %v1117_v1, %s10915_s20  ;;  %v1607_v52 = vand.u32 4294901760, %v1093_v63 }
 0x20f   : > { %v1692_v5 = vsub.f32 %v1092_v54, %v1609_v62 }
 0x210   : > { %v1686_v55 = vsub.f32 %v1093_v63, %v1607_v52 }
 0x211   : > { %2083 = vrot.lane.b32.xlu1 %v2078_v4, %s10916_s16  ;;  %v1675_v4 = vsub.f32 %v1605_v53, %v1674_v57 }
 0x212   : > { %1124 = vrot.lane.b32.xlu0 %v1116_v6, %s10915_s20  ;;  %v1687_v1 = vand.u32 4294901760, %v1686_v55 }
 0x214   : > { %v1688_v6 = vsub.f32 %v1686_v55, %v1687_v1 }
 0x215   : > { %2592 = vrot.lane.b32.xlu1 %v2587_v7, %s10917_s21  ;;  %v1676_v7 = vand.u32 4294901760, %v1675_v4 }
 0x216   : > { %2085 = vrot.lane.b32.xlu0 %v2082_v8, %s10916_s16  ;;  %v1693_v8 = vand.u32 4294901760, %v1692_v5 }
 0x217   : > { %v1677_v11 = vsub.f32 %v1675_v4, %v1676_v7 }
 0x218   : > { %v1694_v12 = vsub.f32 %v1692_v5, %v1693_v8 }
 0x21a   : > { %2594 = vrot.lane.b32.xlu0 %v2591_v10, %s10917_s21  ;;  %v1689_v10 = vand.u32 4294901760, %v1688_v6 }
 0x27f   : > { %v1129_v19 = vpop.permute.xlu1 %1128 }
 0x280   : > { %v1127_v20 = vpop.permute.xlu0 %1126 }
 0x281   : > { %v1132_v21 = vsel %vm1130_vm9, %v1127_v20, %v1129_v19 }
 0x282   : > { %v11415_v27 = vand.u32 4294901760, %v1132_v21 }
 0x283   : > { %v2084_v33 = vpop.permute.xlu1 %2083 }
 0x284   : > { %v1218_v29 = vsub.f32 %v1132_v21, %v11415_v27  ;;  %1140 = vmatprep.subr.mxu1 %v11415_v27  ;;  %v1125_v30 = vpop.permute.xlu0 %1124  ;;  %v2092_v38 = vmul.f32 %v2084_v33, %v11387_v3 }
 0x285   : > { %v1131_v31 = vsel %vm1130_vm9, %v1125_v30, %v1127_v20 }
 0x286   : > { %v11420_v34 = vand.u32 4294901760, %v1131_v31  ;;  %v1219_v35 = vand.u32 4294901760, %v1218_v29 }
 0x287   : > { %v2593_v25 = vpop.permute.xlu1 %2592 }
 0x288   : > { %v1224_v39 = vsub.f32 %v1131_v31, %v11420_v34  ;;  %1142 = vmatpush1.msra.mxu1 %v11420_v34  ;;  %v2086_v40 = vpop.permute.xlu0 %2085  ;;  %v1220_v41 = vsub.f32 %v1218_v29, %v1219_v35  ;;  %v2601_v47 = vmul.f32 %v2593_v25, %v11387_v3 }
 0x289   : > { %v2088_v16 = vsel %vm2087_vm10, %v2084_v33, %v2086_v40  ;;  %v2094_v17 = vmul.f32 %v2086_v40, %v11381_v56  ;;  %1211 = vmatmul.mubr.f32.vlgmr.msra.gmra.mrb[2].mxu1 %v1210_v32 }
 0x28a   : > { %v1225_v18 = vand.u32 4294901760, %v1224_v39  ;;  %v2093_v22 = vmul.f32 %v2088_v16, %v11383_v58  ;;  %v1221_v23 = vand.u32 4294901760, %v1220_v41  ;;  %1291 = vmatprep.mubr.f32.mxu1 %v10912_v0 }
 0x28b   : > { %2104 = vrot.lane.b32.xlu0 %v2094_v17, %s10918_s0 }
 0x28c   : > { %v1226_v24 = vsub.f32 %v1224_v39, %v1225_v18  ;;  %1222 = vmatprep.subr.mxu1 %v1221_v23  ;;  %2102 = vrot.lane.b32.xlu1 %v2093_v22, %s10918_s0  ;;  %v2595_v28 = vpop.permute.xlu0 %2594 }
 0x28d   : > { %v2597_v36 = vsel %vm2596_vm11, %v2593_v25, %v2595_v28  ;;  %v2603_v45 = vmul.f32 %v2595_v28, %v11381_v56 }
 0x28e   : > { %v2602_v42 = vmul.f32 %v2597_v36, %v11383_v58  ;;  %v1227_v43 = vand.u32 4294901760, %v1226_v24 }
 0x290   : > { %1228 = vmatpush1.msra.mxu1 %v1227_v43  ;;  %2100 = vrot.lane.b32.xlu1 %v2092_v38, %s10918_s0 }
 0x291   : > { %2611 = vrot.lane.b32.xlu0 %v2602_v42, %s10919_s23  ;;  %1293 = vmatmul.mubr.f32.vlgmr.msra.gmra.mrb[2].mxu1 %v11405_v13  ;;  %v4595_v42 = vld [vmem:[#allocation9 + $0xe] sm:$0x3] }
 0x292   : > { %1301 = vmatprep.subr.mxu1 %v1218_v29  ;;  %1367 = vmatprep.mubr.f32.mxu1 %v10912_v0  ;;  %v4604_v2 = vrot.slane %v4595_v42, %v11374_v61 }
 0x293   : > { %1304 = vmatpush1.msra.mxu1 %v1224_v39 }
 0x294   : > { %1377 = vmatprep.subr.mxu1 %v11415_v27  ;;  %2613 = vrot.lane.b32.xlu1 %v2603_v45, %s10919_s23 }
 0x295   : > { %2609 = vrot.lane.b32.xlu0 %v2601_v47, %s10919_s23 }
 0x298   : > { %3587 = vrot.lane.b32.xlu1 %v3582_v48, %s10920_s26 }
 0x299   : > { %3589 = vrot.lane.b32.xlu0 %v3586_v49, %s10920_s26  ;;  %1370 = vmatmul.mubr.f32.vlgmr.msra.gmra.mrb[2].mxu1 %v11408_v14  ;;  %v1678_v14 = vand.u32 4294901760, %v1677_v11  ;;  %v4600_v49 = vrot.slane %v4595_v42, %v11361_v37  ;;  %v10321_v42 = vld [vmem:[%s12008_s4 + $0x14] sm:$0xf] }
 0x29a   : > { %1379 = vmatpush1.msra.mxu1 %v11420_v34  ;;  %1442 = vmatprep.mubr.f32.mxu1 %v10912_v0 }
 0x29b   : > { %1455 = vmatprep.subr.mxu1 %v1219_v35 }
 0x29c   : > { %3097 = vrot.lane.b32.xlu1 %v11383_v58, %s10921_s14 }
 0x29d   : > { %3099 = vrot.lane.b32.xlu0 %v11381_v56, %s10921_s14 }
 0x2a0   : > { %3095 = vrot.lane.b32.xlu1 %v11387_v3, %s10921_s14 }
 0x2a1   : > { %4096 = vrot.lane.b32.xlu0 %v4091_v60, %s10922_s11  ;;  %1446 = vmatmul.mubr.f32.vlgmr.msra.gmra.mrb[2].mxu1 %v1208_v15  ;;  %v1695_v15 = vand.u32 4294901760, %v1694_v12 }
 0x2a2   : > { %1459 = vmatpush1.msra.mxu1 %v1225_v18  ;;  %1522 = vmatprep.mubr.f32.mxu1 %v10912_v0 }
 0x2a3   : > { %1531 = vmatprep.subr.mxu1 %v11415_v27 }
 0x2a4   : > { %4098 = vrot.lane.b32.xlu1 %v4095_v9, %s10922_s11 }
 0x2a9   : > { %1524 = vmatmul.mubr.f32.vlgmr.msra.gmra.mrb[2].mxu1 %v11405_v13 }
 0x2aa   : > { %1533 = vmatpush1.msra.mxu1 %v11420_v34  ;;  %1596 = vmatprep.mubr.f32.mxu1 %v10912_v0 }
 0x2ab   : > { %1608 = vmatprep.subr.mxu1 %v1607_v52 }
 0x2b1   : > { %1598 = vmatmul.mubr.f32.vlgmr.msra.gmra.mrb[2].mxu1 %v11405_v13  ;;  %v10318_v13 = vld [vmem:[%s12008_s4 + $0x8] sm:$0xf] }
 0x2b2   : > { %1610 = vmatpush1.msra.mxu1 %v1609_v62  ;;  %1673 = vmatprep.mubr.f32.mxu1 %v10912_v0  ;;  %v2112_v19 = vsel %vm1135_vm8, %v10318_v13, 0 }
 0x2b3   : > { %1690 = vmatprep.subr.mxu1 %v1689_v10  ;;  %v11486_v20 = vand.u32 4294901760, %v2112_v19 }
 0x2b5   : > { %v11489_v21 = vsub.f32 %v2112_v19, %v11486_v20 }
 0x2b7   : > { %v2183_v26 = vand.u32 4294901760, %v11489_v21 }
 0x2b9   : > { %1679 = vmatmul.mubr.f32.vlgmr.msra.gmra.mrb[2].mxu1 %v1678_v14  ;;  %v2184_v31 = vsub.f32 %v11489_v21, %v2183_v26 }
 0x2ba   : > { %1696 = vmatpush1.msra.mxu1 %v1695_v15  ;;  %1759 = vmatprep.mubr.f32.mxu1 %v10912_v0 }
 0x2bb   : > { %1769 = vmatprep.subr.mxu1 %v1686_v55  ;;  %v2185_v40 = vand.u32 4294901760, %v2184_v31  ;;  %v5104_v55 = vld [vmem:[#allocation9 + $0x10] sm:$0x3] }
 0x2c1   : > { %1761 = vmatmul.mubr.f32.vlgmr.msra.gmra.mrb[2].mxu1 %v1674_v57 }
 0x2c2   : > { %1772 = vmatpush1.msra.mxu1 %v1692_v5  ;;  %1835 = vmatprep.mubr.f32.mxu1 %v10912_v0  ;;  %v5113_v5 = vrot.slane %v5104_v55, %v11374_v61 }
 0x2c3   : > { %1845 = vmatprep.subr.mxu1 %v1607_v52 }
 0x2c9   : > { %1838 = vmatmul.mubr.f32.vlgmr.msra.gmra.mrb[2].mxu1 %v1675_v4  ;;  %v10319_v4 = vld [vmem:[%s12008_s4 + $0xc] sm:$0xf] }
 0x2ca   : > { %1847 = vmatpush1.msra.mxu1 %v1609_v62  ;;  %1910 = vmatprep.mubr.f32.mxu1 %v10912_v0 }
 0x2cb   : > { %1923 = vmatprep.subr.mxu1 %v1687_v1 }
 0x2d1   : > { %1914 = vmatmul.mubr.f32.vlgmr.msra.gmra.mrb[2].mxu1 %v1676_v7  ;;  %v2621_v7 = vsel %vm1135_vm8, %v10319_v4, 0 }
 0x2d2   : > { %1927 = vmatpush1.msra.mxu1 %v1693_v8  ;;  %1990 = vmatprep.mubr.f32.mxu1 %v10912_v0  ;;  %v2690_v11 = vand.u32 4294901760, %v2621_v7 }
 0x2d3   : > { %1999 = vmatprep.subr.mxu1 %v1607_v52 }
 0x2d4   : > { %v2691_v15 = vsub.f32 %v2621_v7, %v2690_v11 }
 0x2d9   : > { %1992 = vmatmul.mubr.f32.vlgmr.msra.gmra.mrb[2].mxu1 %v1674_v57 }
 0x2da   : > { %2001 = vmatpush1.msra.mxu1 %v1609_v62  ;;  %2064 = vmatprep.mubr.f32.mxu1 %v10912_v0 }
 0x2e1   : > { %2066 = vmatmul.mubr.f32.vlgmr.msra.gmra.mrb[2].mxu1 %v1674_v57  ;;  %v5109_v57 = vrot.slane %v5104_v55, %v11361_v37 }
 0x2e2   : > { %2180 = vmatprep.mubr.f32.mxu1 %v10912_v0 }
 0x2fd   : > { %v2105_v27 = vpop.permute.xlu0 %2104 }
 0x2fe   : > { %v2103_v29 = vpop.permute.xlu1 %2102 }
 0x2ff   : > { %v2108_v30 = vsel %vm2106_vm12, %v2103_v29, %v2105_v27 }
 0x300   : > { %v11496_v32 = vand.u32 4294901760, %v2108_v30 }
 0x302   : > { %v2193_v33 = vsub.f32 %v2108_v30, %v11496_v32  ;;  %v2101_v34 = vpop.permute.xlu1 %2100  ;;  %2115 = vmatprep.subr.mxu1 %v11496_v32 }
 0x303   : > { %v2107_v35 = vsel %vm2106_vm12, %v2101_v34, %v2103_v29  ;;  %v11501_v39 = vpop.permute.xlu0 %2611 }
 0x304   : > { %v11503_v41 = vand.u32 4294901760, %v2107_v35  ;;  %v2194_v16 = vand.u32 4294901760, %v2193_v33 }
 0x306   : > { %v11506_v17 = vsub.f32 %v2107_v35, %v11503_v41  ;;  %v2614_v18 = vpop.permute.xlu1 %2613  ;;  %2117 = vmatpush1.msra.mxu1 %v11503_v41  ;;  %v2195_v22 = vsub.f32 %v2193_v33, %v2194_v16 }
 0x307   : > { %v11509_v23 = vpop.permute.xlu0 %2609  ;;  %2186 = vmatmul.mubr.f32.vlgmr.msra.gmra.mrb[2].mxu1 %v2185_v40  ;;  %v2617_v62 = vsel %vm2615_vm0, %v11501_v39, %v2614_v18 }
 0x308   : > { %v2200_v24 = vand.u32 4294901760, %v11506_v17  ;;  %v2196_v25 = vand.u32 4294901760, %v2195_v22  ;;  %2266 = vmatprep.mubr.f32.mxu1 %v10912_v0  ;;  %v2623_v6 = vand.u32 4294901760, %v2617_v62  ;;  %v2616_v10 = vsel %vm2615_vm0, %v11509_v23, %v11501_v39 }
 0x309   : > { %v2625_v12 = vand.u32 4294901760, %v2616_v10 }
 0x30a   : > { %v2201_v28 = vsub.f32 %v11506_v17, %v2200_v24  ;;  %v3588_v36 = vpop.permute.xlu1 %3587  ;;  %2197 = vmatprep.subr.mxu1 %v2196_v25  ;;  %v2702_v8 = vsub.f32 %v2617_v62, %v2623_v6 }
 0x30b   : > { %v3590_v38 = vpop.permute.xlu0 %3589  ;;  %v3596_v59 = vmul.f32 %v3588_v36, %v11387_v3  ;;  %v2708_v13 = vsub.f32 %v2616_v10, %v2625_v12 }
 0x30c   : > { %v3592_v43 = vsel %vm3591_vm13, %v3588_v36, %v3590_v38  ;;  %v3598_v44 = vmul.f32 %v3590_v38, %v11381_v56  ;;  %v2202_v45 = vand.u32 4294901760, %v2201_v28  ;;  %v2703_v14 = vand.u32 4294901760, %v2702_v8 }
 0x30d   : > { %v3597_v47 = vmul.f32 %v3592_v43, %v11383_v58 }
 0x30e   : > { %3608 = vrot.lane.b32.xlu1 %v3598_v44, %s10923_s25  ;;  %v3098_v48 = vpop.permute.xlu1 %3097  ;;  %2203 = vmatpush1.msra.mxu1 %v2202_v45  ;;  %v2704_v19 = vsub.f32 %v2702_v8, %v2703_v14  ;;  %v3616_v44 = vsel %vm1135_vm8, %v10321_v42, 0 }
 0x30f   : > { %3606 = vrot.lane.b32.xlu0 %v3597_v47, %s10923_s25  ;;  %v3100_v50 = vpop.permute.xlu0 %3099  ;;  %2268 = vmatmul.mubr.f32.vlgmr.msra.gmra.mrb[2].mxu1 %v11486_v20 }
 0x310   : > { %v11522_v51 = vsel %vm3101_vm14, %v3098_v48, %v3100_v50  ;;  %2276 = vmatprep.subr.mxu1 %v2193_v33  ;;  %2342 = vmatprep.mubr.f32.mxu1 %v10912_v0  ;;  %v2705_v27 = vand.u32 4294901760, %v2704_v19 }
 0x311   : > { %2279 = vmatpush1.msra.mxu1 %v11506_v17  ;;  %v3109_v33 = vand.u32 4294901760, %v11522_v51 }
 0x312   : > { %2352 = vmatprep.subr.mxu1 %v11496_v32  ;;  %4605 = vrot.lane.b32.xlu1 %v4600_v49, %s10924_s22  ;;  %v3096_v60 = vpop.permute.xlu1 %3095  ;;  %v11596_v49 = vand.u32 4294901760, %v3616_v44 }
 0x313   : > { %v11530_v63 = vsel %vm3101_vm14, %v3096_v60, %v3098_v48  ;;  %3604 = vrot.lane.b32.xlu0 %v3596_v59, %s10923_s25  ;;  %v4097_v9 = vpop.permute.xlu0 %4096  ;;  %v3188_v35 = vsub.f32 %v11522_v51, %v3109_v33 }
 0x314   : > { %v4105_v1 = vmul.f32 %v4097_v9, %v11387_v3  ;;  %v3111_v40 = vand.u32 4294901760, %v11530_v63 }
 0x316   : > { %v4099_v46 = vpop.permute.xlu1 %4098  ;;  %v3194_v17 = vsub.f32 %v11530_v63, %v3111_v40 }
 0x317   : > { %v4101_v52 = vsel %vm4100_vm15, %v4097_v9, %v4099_v46  ;;  %v4107_v53 = vmul.f32 %v4099_v46, %v11381_v56  ;;  %4607 = vrot.lane.b32.xlu0 %v4604_v2, %s10924_s22  ;;  %2345 = vmatmul.mubr.f32.vlgmr.msra.gmra.mrb[2].mxu1 %v11489_v21  ;;  %v2692_v21 = vand.u32 4294901760, %v2691_v15  ;;  %v3686_v2 = vsub.f32 %v3616_v44, %v11596_v49 }
 0x318   : > { %v4106_v54 = vmul.f32 %v4101_v52, %v11383_v58  ;;  %2354 = vmatpush1.msra.mxu1 %v11503_v41  ;;  %2417 = vmatprep.mubr.f32.mxu1 %v10912_v0  ;;  %v3195_v23 = vand.u32 4294901760, %v3194_v17 }
 0x319   : > { %2430 = vmatprep.subr.mxu1 %v2194_v16  ;;  %v2693_v29 = vsub.f32 %v2691_v15, %v2692_v21  ;;  %v3687_v62 = vand.u32 4294901760, %v3686_v2 }
 0x31a   : > { %4115 = vrot.lane.b32.xlu1 %v4106_v54, %s12025_s15  ;;  %v3196_v28 = vsub.f32 %v3194_v17, %v3195_v23 }
 0x31b   : > { %4117 = vrot.lane.b32.xlu0 %v4107_v53, %s12025_s15  ;;  %v2694_v31 = vand.u32 4294901760, %v2693_v29 }
 0x31c   : > { %v3197_v38 = vand.u32 4294901760, %v3196_v28  ;;  %v10323_v28 = vld [vmem:[%s12008_s4 + $0x1c] sm:$0xf] }
 0x31e   : > { %4113 = vrot.lane.b32.xlu1 %v4105_v1, %s12025_s15  ;;  %s12050_s15 = smov 95  }
 0x31f   : > { %5114 = vrot.lane.b32.xlu0 %v5109_v57, %s12022_s13  ;;  %2421 = vmatmul.mubr.f32.vlgmr.msra.gmra.mrb[2].mxu1 %v2183_v26  ;;  %v2709_v26 = vand.u32 4294901760, %v2708_v13 }
 0x320   : > { %2434 = vmatpush1.msra.mxu1 %v2200_v24  ;;  %2497 = vmatprep.mubr.f32.mxu1 %v10912_v0 }
 0x321   : > { %2506 = vmatprep.subr.mxu1 %v11496_v32  ;;  %v2710_v30 = vsub.f32 %v2708_v13, %v2709_v26 }
 0x322   : > { %5116 = vrot.lane.b32.xlu1 %v5113_v5, %s12022_s13 }
 0x323   : > { %v2711_v32 = vand.u32 4294901760, %v2710_v30 }
 0x327   : > { %2499 = vmatmul.mubr.f32.vlgmr.msra.gmra.mrb[2].mxu1 %v11486_v20 }
 0x328   : > { %2508 = vmatpush1.msra.mxu1 %v11503_v41  ;;  %2571 = vmatprep.mubr.f32.mxu1 %v10912_v0  ;;  %v3189_v41 = vand.u32 4294901760, %v3188_v35 }
 0x329   : > { %2624 = vmatprep.subr.mxu1 %v2623_v6 }
 0x32a   : > { %v3190_v18 = vsub.f32 %v3188_v35, %v3189_v41 }
 0x32c   : > { %v3191_v24 = vand.u32 4294901760, %v3190_v18 }
 0x32f   : > { %2573 = vmatmul.mubr.f32.vlgmr.msra.gmra.mrb[2].mxu1 %v11486_v20  ;;  %v10320_v20 = vld [vmem:[%s12008_s4 + $0x10] sm:$0xf] }
 0x330   : > { %2626 = vmatpush1.msra.mxu1 %v2625_v12  ;;  %2689 = vmatprep.mubr.f32.mxu1 %v10912_v0  ;;  %v3107_v34 = vsel %vm1135_vm8, %v10320_v20, 0 }
 0x331   : > { %2706 = vmatprep.subr.mxu1 %v2705_v27  ;;  %v11577_v39 = vand.u32 4294901760, %v3107_v34 }
 0x333   : > { %v3177_v16 = vsub.f32 %v3107_v34, %v11577_v39 }
 0x335   : > { %v3178_v22 = vand.u32 4294901760, %v3177_v16 }
 0x337   : > { %2695 = vmatmul.mubr.f32.vlgmr.msra.gmra.mrb[2].mxu1 %v2694_v31  ;;  %v3179_v25 = vsub.f32 %v3177_v16, %v3178_v22 }
 0x338   : > { %2712 = vmatpush1.msra.mxu1 %v2711_v32  ;;  %2775 = vmatprep.mubr.f32.mxu1 %v10912_v0 }
 0x339   : > { %2785 = vmatprep.subr.mxu1 %v2702_v8  ;;  %v3180_v36 = vand.u32 4294901760, %v3179_v25  ;;  %v3688_v8 = vsub.f32 %v3686_v2, %v3687_v62  ;;  %v10929_v25 = vmov 0  }
 0x33a   : > { %10740 = vset.pattern.permute.xlu0 %v10929_v25  ;;  %v6636_v25 = vld [vmem:[#allocation9 + $0x4] sm:$0x3] }
 0x33f   : > { %2777 = vmatmul.mubr.f32.vlgmr.msra.gmra.mrb[2].mxu1 %v2690_v11 }
 0x340   : > { %2788 = vmatpush1.msra.mxu1 %v2708_v13  ;;  %2851 = vmatprep.mubr.f32.mxu1 %v10912_v0 }
 0x341   : > { %2861 = vmatprep.subr.mxu1 %v2623_v6 }
 0x347   : > { %2854 = vmatmul.mubr.f32.vlgmr.msra.gmra.mrb[2].mxu1 %v2691_v15 }
 0x348   : > { %2863 = vmatpush1.msra.mxu1 %v2625_v12  ;;  %2926 = vmatprep.mubr.f32.mxu1 %v10912_v0 }
 0x349   : > { %2939 = vmatprep.subr.mxu1 %v2703_v14 }
 0x34f   : > { %2930 = vmatmul.mubr.f32.vlgmr.msra.gmra.mrb[2].mxu1 %v2692_v21 }
 0x350   : > { %2943 = vmatpush1.msra.mxu1 %v2709_v26  ;;  %3006 = vmatprep.mubr.f32.mxu1 %v10912_v0 }
 0x351   : > { %3015 = vmatprep.subr.mxu1 %v2623_v6 }
 0x357   : > { %3008 = vmatmul.mubr.f32.vlgmr.msra.gmra.mrb[2].mxu1 %v2690_v11 }
 0x358   : > { %3017 = vmatpush1.msra.mxu1 %v2625_v12  ;;  %3080 = vmatprep.mubr.f32.mxu1 %v10912_v0  ;;  %v3689_v12 = vand.u32 4294901760, %v3688_v8 }
 0x359   : > { %3110 = vmatprep.subr.mxu1 %v3109_v33 }
 0x35f   : > { %3082 = vmatmul.mubr.f32.vlgmr.msra.gmra.mrb[2].mxu1 %v2690_v11 }
 0x360   : > { %3112 = vmatpush1.msra.mxu1 %v3111_v40  ;;  %3175 = vmatprep.mubr.f32.mxu1 %v10912_v0 }
 0x361   : > { %3192 = vmatprep.subr.mxu1 %v3191_v24  ;;  %v5612_v24 = vld [vmem:[%s12009_s5] sm:$0xf] }
 0x367   : > { %3181 = vmatmul.mubr.f32.vlgmr.msra.gmra.mrb[2].mxu1 %v3180_v36  ;;  %v4634_v36 = vsel %vm1135_vm8, %v10323_v28, 0 }
 0x368   : > { %3198 = vmatpush1.msra.mxu1 %v3197_v38  ;;  %3261 = vmatprep.mubr.f32.mxu1 %v10912_v0  ;;  %v4703_v38 = vand.u32 4294901760, %v4634_v36 }
 0x369   : > { %3271 = vmatprep.subr.mxu1 %v3188_v35 }
 0x36a   : > { %v4704_v42 = vsub.f32 %v4634_v36, %v4703_v38  ;;  %v6641_v36 = vrot.slane %v6636_v25, %v11361_v37 }
 0x36f   : > { %3263 = vmatmul.mubr.f32.vlgmr.msra.gmra.mrb[2].mxu1 %v11577_v39 }
 0x370   : > { %3274 = vmatpush1.msra.mxu1 %v3194_v17  ;;  %3337 = vmatprep.mubr.f32.mxu1 %v10912_v0 }
 0x371   : > { %3347 = vmatprep.subr.mxu1 %v3109_v33 }
 0x377   : > { %3340 = vmatmul.mubr.f32.vlgmr.msra.gmra.mrb[2].mxu1 %v3177_v16 }
 0x378   : > { %3349 = vmatpush1.msra.mxu1 %v3111_v40  ;;  %3412 = vmatprep.mubr.f32.mxu1 %v10912_v0 }
 0x379   : > { %3425 = vmatprep.subr.mxu1 %v3189_v41 }
 0x37f   : > { %3416 = vmatmul.mubr.f32.vlgmr.msra.gmra.mrb[2].mxu1 %v3178_v22 }
 0x380   : > { %v3609_v43 = vpop.permute.xlu1 %3608  ;;  %3429 = vmatpush1.msra.mxu1 %v3195_v23  ;;  %3492 = vmatprep.mubr.f32.mxu1 %v10912_v0 }
 0x381   : > { %3501 = vmatprep.subr.mxu1 %v3109_v33  ;;  %v3607_v45 = vpop.permute.xlu0 %3606 }
 0x382   : > { %v3612_v47 = vsel %vm3610_vm2, %v3607_v45, %v3609_v43  ;;  %v4705_v43 = vand.u32 4294901760, %v4704_v42 }
 0x383   : > { %v11594_v48 = vand.u32 4294901760, %v3612_v47 }
 0x384   : > { %v4606_v9 = vpop.permute.xlu1 %4605 }
 0x385   : > { %v3697_v50 = vsub.f32 %v3612_v47, %v11594_v48  ;;  %v3605_v51 = vpop.permute.xlu0 %3604  ;;  %v4614_v6 = vmul.f32 %v4606_v9, %v11387_v3 }
 0x386   : > { %v3611_v59 = vsel %vm3610_vm2, %v3605_v51, %v3607_v45 }
 0x387   : > { %v11600_v60 = vand.u32 4294901760, %v3611_v59  ;;  %3494 = vmatmul.mubr.f32.vlgmr.msra.gmra.mrb[2].mxu1 %v11577_v39  ;;  %v3698_v63 = vand.u32 4294901760, %v3697_v50 }
 0x388   : > { %3503 = vmatpush1.msra.mxu1 %v3111_v40  ;;  %3566 = vmatprep.mubr.f32.mxu1 %v10912_v0 }
 0x389   : > { %3619 = vmatprep.subr.mxu1 %v11594_v48  ;;  %v4608_v46 = vpop.permute.xlu0 %4607  ;;  %v3703_v52 = vsub.f32 %v3611_v59, %v11600_v60  ;;  %v3699_v57 = vsub.f32 %v3697_v50, %v3698_v63 }
 0x38a   : > { %v4610_v53 = vsel %vm4609_vm5, %v4606_v9, %v4608_v46  ;;  %v4616_v54 = vmul.f32 %v4608_v46, %v11381_v56 }
 0x38b   : > { %v4615_v55 = vmul.f32 %v4610_v53, %v11383_v58  ;;  %v3704_v4 = vand.u32 4294901760, %v3703_v52  ;;  %v3700_v7 = vand.u32 4294901760, %v3699_v57 }
 0x38c   : > { %4626 = vrot.lane.b32.xlu1 %v4616_v54, %s12020_s3  ;;  %v4116_v1 = vpop.permute.xlu1 %4115 }
 0x38d   : > { %4624 = vrot.lane.b32.xlu0 %v4615_v55, %s12020_s3  ;;  %v4118_v5 = vpop.permute.xlu0 %4117  ;;  %v3705_v11 = vsub.f32 %v3703_v52, %v3704_v4 }
 0x38f   : > { %3568 = vmatmul.mubr.f32.vlgmr.msra.gmra.mrb[2].mxu1 %v11577_v39  ;;  %v3706_v26 = vand.u32 4294901760, %v3705_v11 }
 0x390   : > { %3621 = vmatpush1.msra.mxu1 %v11600_v60  ;;  %v4114_v10 = vpop.permute.xlu1 %4113  ;;  %3684 = vmatprep.mubr.f32.mxu1 %v10912_v0 }
 0x391   : > { %3701 = vmatprep.subr.mxu1 %v3700_v7  ;;  %4622 = vrot.lane.b32.xlu0 %v4614_v6, %s12020_s3  ;;  %v5115_v14 = vpop.permute.xlu0 %5114 }
 0x392   : > { %v5123_v27 = vmul.f32 %v5115_v14, %v11387_v3 }
 0x394   : > { %v5117_v15 = vpop.permute.xlu1 %5116 }
 0x395   : > { %v5119_v13 = vsel %vm12019_vm6, %v5115_v14, %v5117_v15  ;;  %v5125_v19 = vmul.f32 %v5117_v15, %v11381_v56  ;;  %vm12027_vm6 = vcmask 785408  }
 0x396   : > { %v5124_v21 = vmul.f32 %v5119_v13, %v11383_v58  ;;  %v4121_v56 = vsel %vm12027_vm6, %v4116_v1, %v4118_v5  ;;  %v10322_v58 = vld [vmem:[%s12008_s4 + $0x18] sm:$0xf]  ;;  %v4120_v31 = vsel %vm12027_vm6, %v4114_v10, %v4116_v1  ;;  %vm12028_vm6 = vcmask 777216  }
 0x397   : > { %3690 = vmatmul.mubr.f32.vlgmr.msra.gmra.mrb[2].mxu1 %v3689_v12  ;;  %5135 = vrot.lane.b32.xlu0 %v5125_v19, %s12023_s10  ;;  %v4127_v3 = vand.u32 4294901760, %v4121_v56  ;;  %v4125_v29 = vsel %vm1135_vm8, %v10322_v58, 0  ;;  %v4129_v20 = vand.u32 4294901760, %v4120_v31 }
 0x398   : > { %3707 = vmatpush1.msra.mxu1 %v3706_v26  ;;  %5133 = vrot.lane.b32.xlu1 %v5124_v21, %s12023_s10  ;;  %v4194_v32 = vand.u32 4294901760, %v4125_v29 }
 0x399   : > { %3780 = vmatprep.subr.mxu1 %v3697_v50  ;;  %3770 = vmatprep.mubr.f32.mxu1 %v10912_v0  ;;  %v4206_v30 = vsub.f32 %v4121_v56, %v4127_v3  ;;  %v4212_v35 = vsub.f32 %v4120_v31, %v4129_v20 }
 0x39a   : > { %v4195_v34 = vsub.f32 %v4125_v29, %v4194_v32 }
 0x39b   : > { %v4207_v33 = vand.u32 4294901760, %v4206_v30  ;;  %v4213_v41 = vand.u32 4294901760, %v4212_v35  ;;  %5615 = vperm.xlu0 %10740, %v5612_v24  }
 0x39c   : > { %5131 = vrot.lane.b32.xlu1 %v5123_v27, %s12023_s10  ;;  %v4196_v40 = vand.u32 4294901760, %v4195_v34  ;;  %s12052_s10 = smov 94  }
 0x39d   : > { %v4208_v39 = vsub.f32 %v4206_v30, %v4207_v33  ;;  %v4214_v18 = vsub.f32 %v4212_v35, %v4213_v41 }
 0x39e   : > { %v4197_v17 = vsub.f32 %v4195_v34, %v4196_v40 }
 0x39f   : > { %3772 = vmatmul.mubr.f32.vlgmr.msra.gmra.mrb[2].mxu1 %v11596_v49  ;;  %v4209_v16 = vand.u32 4294901760, %v4208_v39  ;;  %v4215_v23 = vand.u32 4294901760, %v4214_v18 }
 0x3a0   : > { %3783 = vmatpush1.msra.mxu1 %v3703_v52  ;;  %3846 = vmatprep.mubr.f32.mxu1 %v10912_v0  ;;  %v4198_v22 = vand.u32 4294901760, %v4197_v17 }
 0x3a1   : > { %3856 = vmatprep.subr.mxu1 %v11594_v48 }
 0x3a7   : > { %3849 = vmatmul.mubr.f32.vlgmr.msra.gmra.mrb[2].mxu1 %v3686_v2 }
 0x3a8   : > { %3858 = vmatpush1.msra.mxu1 %v11600_v60  ;;  %3921 = vmatprep.mubr.f32.mxu1 %v10912_v0 }
 0x3a9   : > { %3934 = vmatprep.subr.mxu1 %v3698_v63 }
 0x3af   : > { %3925 = vmatmul.mubr.f32.vlgmr.msra.gmra.mrb[2].mxu1 %v3687_v62 }
 0x3b0   : > { %3938 = vmatpush1.msra.mxu1 %v3704_v4  ;;  %4001 = vmatprep.mubr.f32.mxu1 %v10912_v0  ;;  %v10324_v4 = vld [vmem:[%s12008_s4 + $0x20] sm:$0xf] }
 0x3b1   : > { %4010 = vmatprep.subr.mxu1 %v11594_v48  ;;  %v4706_v48 = vsub.f32 %v4704_v42, %v4705_v43  ;;  %v5143_v7 = vsel %vm1135_vm8, %v10324_v4, 0  ;;  %vm5623_vm8 = vcmask 273544  }
 0x3b2   : > { %v5212_v11 = vand.u32 4294901760, %v5143_v7  ;;  %5624 = vst.msk [vmem:[#allocation3 + $0x8] sm:$0xf] %vm5623_vm8, %v10912_v0 }
 0x3b4   : > { %v5213_v15 = vsub.f32 %v5143_v7, %v5212_v11 }
 0x3b6   : > { %v5214_v21 = vand.u32 4294901760, %v5213_v15 }
 0x3b7   : > { %4003 = vmatmul.mubr.f32.vlgmr.msra.gmra.mrb[2].mxu1 %v11596_v49 }
 0x3b8   : > { %4012 = vmatpush1.msra.mxu1 %v11600_v60  ;;  %4075 = vmatprep.mubr.f32.mxu1 %v10912_v0  ;;  %v4707_v60 = vand.u32 4294901760, %v4706_v48  ;;  %v5215_v56 = vsub.f32 %v5213_v15, %v5214_v21 }
 0x3b9   : > { %4128 = vmatprep.subr.mxu1 %v4127_v3 }
 0x3bf   : > { %4077 = vmatmul.mubr.f32.vlgmr.msra.gmra.mrb[2].mxu1 %v11596_v49 }
 0x3c0   : > { %4130 = vmatpush1.msra.mxu1 %v4129_v20  ;;  %4193 = vmatprep.mubr.f32.mxu1 %v10912_v0 }
 0x3c1   : > { %4210 = vmatprep.subr.mxu1 %v4209_v16 }
 0x3c7   : > { %4199 = vmatmul.mubr.f32.vlgmr.msra.gmra.mrb[2].mxu1 %v4198_v22 }
 0x3c8   : > { %4216 = vmatpush1.msra.mxu1 %v4215_v23  ;;  %4279 = vmatprep.mubr.f32.mxu1 %v10912_v0 }
 0x3c9   : > { %4289 = vmatprep.subr.mxu1 %v4206_v30 }
 0x3cf   : > { %4281 = vmatmul.mubr.f32.vlgmr.msra.gmra.mrb[2].mxu1 %v4194_v32 }
 0x3d0   : > { %4292 = vmatpush1.msra.mxu1 %v4212_v35  ;;  %4355 = vmatprep.mubr.f32.mxu1 %v10912_v0 }
 0x3d1   : > { %4365 = vmatprep.subr.mxu1 %v4127_v3 }
 0x3d7   : > { %4358 = vmatmul.mubr.f32.vlgmr.msra.gmra.mrb[2].mxu1 %v4195_v34 }
 0x3d8   : > { %4367 = vmatpush1.msra.mxu1 %v4129_v20  ;;  %4430 = vmatprep.mubr.f32.mxu1 %v10912_v0 }
 0x3d9   : > { %4443 = vmatprep.subr.mxu1 %v4207_v33  ;;  %v5654_v33 = vld [vmem:[#allocation9 + $0x2] sm:$0x3] }
 0x3df   : > { %4434 = vmatmul.mubr.f32.vlgmr.msra.gmra.mrb[2].mxu1 %v4196_v40  ;;  %v5659_v40 = vrot.slane %v5654_v33, %v11361_v37 }
 0x3e0   : > { %4447 = vmatpush1.msra.mxu1 %v4213_v41  ;;  %4510 = vmatprep.mubr.f32.mxu1 %v10912_v0  ;;  %v5663_v41 = vrot.slane %v5654_v33, %v11374_v61 }
 0x3e1   : > { %4519 = vmatprep.subr.mxu1 %v4127_v3  ;;  %v5216_v3 = vand.u32 4294901760, %v5215_v56 }
 0x3e2   : > { %v5664_v17 = vcombine.low %v5659_v40, %v5663_v41 }
 0x3e7   : > { %4512 = vmatmul.mubr.f32.vlgmr.msra.gmra.mrb[2].mxu1 %v4194_v32 }
 0x3e8   : > { %4521 = vmatpush1.msra.mxu1 %v4129_v20  ;;  %4584 = vmatprep.mubr.f32.mxu1 %v10912_v0 }
 0x3ef   : > { %4586 = vmatmul.mubr.f32.vlgmr.msra.gmra.mrb[2].mxu1 %v4194_v32 }
 0x3f0   : > { %4702 = vmatprep.mubr.f32.mxu1 %v10912_v0 }
 0x3fe   : > { %v4627_v44 = vpop.permute.xlu1 %4626 }
 0x3ff   : > { %v4625_v45 = vpop.permute.xlu0 %4624 }
 0x400   : > { %v4630_v47 = vsel %vm12028_vm6, %v4625_v45, %v4627_v44 }
 0x401   : > { %v4636_v49 = vand.u32 4294901760, %v4630_v47 }
 0x403   : > { %v4715_v50 = vsub.f32 %v4630_v47, %v4636_v49  ;;  %4637 = vmatprep.subr.mxu1 %v4636_v49  ;;  %v4623_v51 = vpop.permute.xlu0 %4622 }
 0x404   : > { %v4629_v59 = vsel %vm12028_vm6, %v4623_v51, %v4625_v45  ;;  %vm12029_vm6 = vcmask 769024  }
 0x405   : > { %v4638_v63 = vand.u32 4294901760, %v4629_v59  ;;  %v4716_v2 = vand.u32 4294901760, %v4715_v50 }
 0x407   : > { %v4721_v9 = vsub.f32 %v4629_v59, %v4638_v63  ;;  %4639 = vmatpush1.msra.mxu1 %v4638_v63  ;;  %v4717_v46 = vsub.f32 %v4715_v50, %v4716_v2 }
 0x408   : > { %4708 = vmatmul.mubr.f32.vlgmr.msra.gmra.mrb[2].mxu1 %v4707_v60 }
 0x409   : > { %v4722_v52 = vand.u32 4294901760, %v4721_v9  ;;  %v4718_v53 = vand.u32 4294901760, %v4717_v46  ;;  %4788 = vmatprep.mubr.f32.mxu1 %v10912_v0  ;;  %v5136_v57 = vpop.permute.xlu0 %5135 }
 0x40a   : > { %v5134_v62 = vpop.permute.xlu1 %5133 }
 0x40b   : > { %v4723_v54 = vsub.f32 %v4721_v9, %v4722_v52  ;;  %4719 = vmatprep.subr.mxu1 %v4718_v53  ;;  %v5139_v1 = vsel %vm12029_vm6, %v5134_v62, %v5136_v57 }
 0x40c   : > { %v5145_v5 = vand.u32 4294901760, %v5139_v1 }
 0x40d   : > { %v4724_v55 = vand.u32 4294901760, %v4723_v54 }
 0x40e   : > { %v5132_v6 = vpop.permute.xlu1 %5131  ;;  %v5224_v8 = vsub.f32 %v5139_v1, %v5145_v5 }
 0x40f   : > { %4725 = vmatpush1.msra.mxu1 %v4724_v55  ;;  %v5138_v10 = vsel %vm12029_vm6, %v5132_v6, %v5134_v62  ;;  %vm5634_vm6 = vcmask 1047556  }
 0x410   : > { %4790 = vmatmul.mubr.f32.vlgmr.msra.gmra.mrb[2].mxu1 %v4703_v38  ;;  %4798 = vmatprep.subr.mxu1 %v4715_v50  ;;  %v5147_v12 = vand.u32 4294901760, %v5138_v10  ;;  %v5225_v14 = vand.u32 4294901760, %v5224_v8  ;;  %vm5635_vm8 = vmor %vm5634_vm6, %vm1056_vm4  ;;  %vm12051_vm4 = vcmask 277504  }
 0x411   : > { %4801 = vmatpush1.msra.mxu1 %v4721_v9  ;;  %4864 = vmatprep.mubr.f32.mxu1 %v10912_v0 }
 0x412   : > { %4874 = vmatprep.subr.mxu1 %v4636_v49  ;;  %v5230_v13 = vsub.f32 %v5138_v10, %v5147_v12  ;;  %v5226_v19 = vsub.f32 %v5224_v8, %v5225_v14 }
 0x414   : > { %v5231_v26 = vand.u32 4294901760, %v5230_v13  ;;  %v5227_v27 = vand.u32 4294901760, %v5226_v19 }
 0x416   : > { %v5232_v58 = vsub.f32 %v5230_v13, %v5231_v26 }
 0x418   : > { %4867 = vmatmul.mubr.f32.vlgmr.msra.gmra.mrb[2].mxu1 %v4704_v42  ;;  %v5233_v29 = vand.u32 4294901760, %v5232_v58 }
 0x419   : > { %4876 = vmatpush1.msra.mxu1 %v4638_v63  ;;  %4939 = vmatprep.mubr.f32.mxu1 %v10912_v0 }
 0x41a   : > { %4952 = vmatprep.subr.mxu1 %v4716_v2  ;;  %v5616_v30 = vpop.permute.xlu0 %5615 }
 0x420   : > { %4943 = vmatmul.mubr.f32.vlgmr.msra.gmra.mrb[2].mxu1 %v4705_v43 }
 0x421   : > { %4956 = vmatpush1.msra.mxu1 %v4722_v52  ;;  %5019 = vmatprep.mubr.f32.mxu1 %v10912_v0 }
 0x422   : > { %5028 = vmatprep.subr.mxu1 %v4636_v49  ;;  %v7144_v49 = vld [vmem:[#allocation9 + $0x6] sm:$0x3] }
 0x423   : > { %v7149_v51 = vrot.slane %v7144_v49, %v11361_v37  ;;  %v7153_v59 = vrot.slane %v7144_v49, %v11374_v61  ;;  %v5652_v49 = vld [vmem:[%s12010_s6] sm:$0xf] }
 0x425   : > { %v7154_v60 = vcombine.low %v7149_v51, %v7153_v59 }
 0x428   : > { %5021 = vmatmul.mubr.f32.vlgmr.msra.gmra.mrb[2].mxu1 %v4703_v38 }
 0x429   : > { %5030 = vmatpush1.msra.mxu1 %v4638_v63  ;;  %5093 = vmatprep.mubr.f32.mxu1 %v10912_v0  ;;  %v10325_v63 = vld [vmem:[%s12010_s6 + $0x4] sm:$0xf] }
 0x42a   : > { %5146 = vmatprep.subr.mxu1 %v5145_v5 }
 0x430   : > { %5095 = vmatmul.mubr.f32.vlgmr.msra.gmra.mrb[2].mxu1 %v4703_v38  ;;  %v6645_v38 = vrot.slane %v6636_v25, %v11374_v61 }
 0x431   : > { %5148 = vmatpush1.msra.mxu1 %v5147_v12  ;;  %5211 = vmatprep.mubr.f32.mxu1 %v10912_v0 }
 0x432   : > { %5228 = vmatprep.subr.mxu1 %v5227_v27  ;;  %v6646_v48 = vcombine.low %v6641_v36, %v6645_v38 }
 0x438   : > { %5217 = vmatmul.mubr.f32.vlgmr.msra.gmra.mrb[2].mxu1 %v5216_v3 }
 0x439   : > { %5234 = vmatpush1.msra.mxu1 %v5233_v29  ;;  %5297 = vmatprep.mubr.f32.mxu1 %v10912_v0  ;;  %v8141_v29 = vld [vmem:[#allocation9 + $0xa] sm:$0x3] }
 0x43a   : > { %5307 = vmatprep.subr.mxu1 %v5224_v8 }
 0x440   : > { %5299 = vmatmul.mubr.f32.vlgmr.msra.gmra.mrb[2].mxu1 %v5212_v11 }
 0x441   : > { %5310 = vmatpush1.msra.mxu1 %v5230_v13  ;;  %5373 = vmatprep.mubr.f32.mxu1 %v10912_v0 }
 0x442   : > { %5383 = vmatprep.subr.mxu1 %v5145_v5 }
 0x448   : > { %5376 = vmatmul.mubr.f32.vlgmr.msra.gmra.mrb[2].mxu1 %v5213_v15 }
 0x449   : > { %5385 = vmatpush1.msra.mxu1 %v5147_v12  ;;  %5448 = vmatprep.mubr.f32.mxu1 %v10912_v0 }
 0x44a   : > { %5461 = vmatprep.subr.mxu1 %v5225_v14 }
 0x450   : > { %5452 = vmatmul.mubr.f32.vlgmr.msra.gmra.mrb[2].mxu1 %v5214_v21 }
 0x451   : > { %5465 = vmatpush1.msra.mxu1 %v5231_v26  ;;  %5528 = vmatprep.mubr.f32.mxu1 %v10912_v0 }
 0x452   : > { %5537 = vmatprep.subr.mxu1 %v5145_v5 }
 0x458   : > { %5530 = vmatmul.mubr.f32.vlgmr.msra.gmra.mrb[2].mxu1 %v5212_v11 }
 0x459   : > { %5539 = vmatpush1.msra.mxu1 %v5147_v12  ;;  %5602 = vmatprep.mubr.f32.mxu1 %v10912_v0 }
 0x460   : > { %5604 = vmatmul.mubr.f32.vlgmr.msra.gmra.mrb[2].mxu1 %v5212_v11 }
 0x533   : > { %v5605_v31 = vpop.f32.mrb[2].mxu1 }
 0x534   : > { %v5618_v32 = vadd.f32 %v5616_v30, %v5605_v31  ;;  %v5607_v20 = vpop.f32.mrb[3].mxu1 }
 0x535   : > { %v5619_v34 = vadd.f32 %v5616_v30, %v5607_v20  ;;  %v5639_v20 = vld [vmem:[#allocation9] sm:$0x3] }
 0x536   : > { %v5620_v35 = vmax.f32 %v5618_v32, 0.0 }
 0x537   : > { %v5621_v39 = vmax.f32 %v5619_v34, 0.0 }
 0x539   : > { %v5627_v16 = vcombine.low %v5620_v35, %v5621_v39  ;;  %v8146_v35 = vrot.slane %v8141_v29, %v11361_v37  ;;  %v8150_v39 = vrot.slane %v8141_v29, %v11374_v61 }
 0x53b   : > { %5628 = vrot.lane.b32.xlu1 %v5627_v16, %s10913_s19  ;;  %v5644_v16 = vrot.slane %v5639_v20, %v11361_v37 }
 0x53f   : > { %5665 = vrot.lane.b32.xlu1 %v5664_v17, %s10914_s18  ;;  %v5648_v17 = vrot.slane %v5639_v20, %v11374_v61 }
 0x541   : > { %v5649_v25 = vcombine.low %v5644_v16, %v5648_v17 }
 0x5ad   : > { %v5629_v18 = vpop.permute.xlu1 %5628 }
 0x5ae   : > { %v5630_v22 = vrot.slane %v5629_v18, 4 }
 0x5b0   : > { %v5631_v23 = vsel %vm1041_vm1, %v5630_v22, %v5629_v18  ;;  %5637 = vst.msk [vmem:[#allocation3 + $0x8] sm:$0xf] %vm1059_vm3, %v5630_v22  ;;  %vm5686_vm1 = vcmask 31744   ;;  %vm5690_vm3 = vcmask 1043456  }
 0x5b1   : > { %5636 = vst.msk [vmem:[#allocation3] sm:$0xff] %vm5635_vm8, %v5631_v23  ;;  %v5666_v24 = vpop.permute.xlu1 %5665  ;;  %v5688_v2 = vsel %vm5686_vm1, %v10325_v63, 0  ;;  %v8151_v23 = vcombine.low %v8146_v35, %v8150_v39  ;;  %v6163_v51 = vsel %vm5686_vm1, %v5652_v49, 0 }
 0x5b2   : > { %v5667_v28 = vrot.slane %v5666_v24, 4  ;;  %v11700_v9 = vand.u32 4294901760, %v5688_v2  ;;  %v6236_v63 = vand.u32 4294901760, %v6163_v51 }
 0x5b4   : > { %v5668_v44 = vsel %vm1111_vm7, %v5667_v28, %v5666_v24  ;;  %v11703_v46 = vsub.f32 %v5688_v2, %v11700_v9  ;;  %v8649_v24 = vld [vmem:[#allocation9 + $0xc] sm:$0x3]  ;;  %vm12053_vm7 = vcmask 785408  }
 0x5b5   : > { %v8658_v36 = vrot.slane %v8649_v24, %v11374_v61 }
 0x5b6   : > { %v5764_v53 = vand.u32 4294901760, %v11703_v46 }
 0x5b7   : > { %v5653_v42 = vld [vmem:[#allocation3 + $0x8] sm:$0xf] }
 0x5b8   : > { %v11685_v43 = vld [vmem:[#allocation3] sm:$0xff]  ;;  %v5672_v45 = vmul.f32 %v5667_v28, %v5653_v42  ;;  %v5765_v4 = vsub.f32 %v11703_v46, %v5764_v53  ;;  %v6635_v6 = vld [vmem:[#allocation3 + $0x8] sm:$0xf]  ;;  %v8654_v28 = vrot.slane %v8649_v24, %v11361_v37 }
 0x5b9   : > { %v5671_v47 = vmul.f32 %v5668_v44, %v11685_v43  ;;  %v7143_v40 = vld [vmem:[#allocation3 + $0x8] sm:$0xf]  ;;  %v7656_v38 = vcombine.high %v11685_v43, %v11685_v43  ;;  %v5651_v42 = vmul.f32 %v5649_v25, %v11685_v43 }
 0x5ba   : > { %5682 = vrot.lane.b32.xlu1 %v5672_v45, %s10915_s20  ;;  %v5766_v13 = vand.u32 4294901760, %v5765_v4  ;;  %v7651_v44 = vld [vmem:[#allocation3 + $0x8] sm:$0xf]  ;;  %v8659_v45 = vcombine.low %v8654_v28, %v8658_v36 }
 0x5bb   : > { %v5677_v50 = vcombine.high %v5671_v47, %v5671_v47  ;;  %v6165_v59 = vsel %vm5690_vm3, %v5651_v42, 0  ;;  %v8648_v49 = vld [vmem:[#allocation3 + $0x8] sm:$0xf] }
 0x5bc   : > { %v6171_v2 = vand.u32 4294901760, %v6165_v59 }
 0x5bd   : > { %5680 = vrot.lane.b32.xlu0 %v5677_v50, %s10915_s20 }
 0x5be   : > { %6647 = vrot.lane.b32.xlu1 %v6646_v48, %s10916_s16 }
 0x5c1   : > { %5678 = vrot.lane.b32.xlu0 %v5671_v47, %s10915_s20  ;;  %v6161_v47 = vcombine.high %v5651_v42, %v5651_v42  ;;  %v9665_v42 = vld [vmem:[#allocation9 + $0x10] sm:$0x3] }
 0x5c3   : > { %v6167_v48 = vsel %vm5690_vm3, %v6161_v47, 0  ;;  %v9670_v47 = vrot.slane %v9665_v42, %v11361_v37 }
 0x5c4   : > { %v6169_v50 = vand.u32 4294901760, %v6167_v48 }
 0x5c5   : > { %7155 = vrot.lane.b32.xlu0 %v7154_v60, %s10917_s21 }
 0x5c6   : > { %v6248_v60 = vsub.f32 %v6167_v48, %v6169_v50  ;;  %v9674_v48 = vrot.slane %v9665_v42, %v11374_v61 }
 0x62c   : > { %v5683_v52 = vpop.permute.xlu1 %5682 }
 0x62f   : > { %v5681_v54 = vpop.permute.xlu0 %5680 }
 0x630   : > { %v5685_v55 = vsel %vm1130_vm9, %v5681_v54, %v5683_v52  ;;  %v6648_v57 = vpop.permute.xlu1 %6647  ;;  %v6249_v52 = vand.u32 4294901760, %v6248_v60 }
 0x631   : > { %v5693_v62 = vsel %vm5690_vm3, %v5685_v55, 0  ;;  %v6649_v1 = vrot.slane %v6648_v57, 4 }
 0x632   : > { %v11711_v5 = vand.u32 4294901760, %v5693_v62 }
 0x633   : > { %v6650_v7 = vsel %vm2087_vm10, %v6649_v1, %v6648_v57  ;;  %v6654_v8 = vmul.f32 %v6649_v1, %v6635_v6  ;;  %v5679_v10 = vpop.permute.xlu0 %5678  ;;  %vm12055_vm10 = vcmask 777216  }
 0x634   : > { %v5774_v11 = vsub.f32 %v5693_v62, %v11711_v5  ;;  %v6653_v12 = vmul.f32 %v6650_v7, %v11685_v43  ;;  %v5684_v14 = vsel %vm1130_vm9, %v5679_v10, %v5681_v54  ;;  %5696 = vmatprep.subr.mxu0 %v11711_v5  ;;  %v6237_v54 = vsub.f32 %v6163_v51, %v6236_v63  ;;  %vm12054_vm9 = vmmov %vm12053_vm7 }
 0x635   : > { %v5691_v15 = vsel %vm5690_vm3, %v5684_v14, 0  ;;  %6664 = vrot.lane.b32.xlu0 %v6654_v8, %s10918_s0 }
 0x636   : > { %v11720_v19 = vand.u32 4294901760, %v5691_v15  ;;  %v6659_v21 = vcombine.high %v6653_v12, %v6653_v12  ;;  %v5775_v26 = vand.u32 4294901760, %v5774_v11  ;;  %v6238_v55 = vand.u32 4294901760, %v6237_v54 }
 0x637   : > { %v7156_v27 = vpop.permute.xlu0 %7155 }
 0x638   : > { %v5780_v56 = vsub.f32 %v5691_v15, %v11720_v19  ;;  %v7157_v58 = vrot.slane %v7156_v27, 4  ;;  %6662 = vrot.lane.b32.xlu1 %v6659_v21, %s10918_s0  ;;  %5698 = vmatpush1.msra.mxu0 %v11720_v19  ;;  %v5776_v3 = vsub.f32 %v5774_v11, %v5775_v26  ;;  %v6239_v1 = vsub.f32 %v6237_v54, %v6238_v55 }
 0x639   : > { %5767 = vmatmul.mubr.f32.vlgmr.msra.gmra.mrb[2].mxu0 %v5766_v13 }
 0x63a   : > { %v5781_v30 = vand.u32 4294901760, %v5780_v56  ;;  %v7158_v31 = vsel %vm2596_vm11, %v7157_v58, %v7156_v27  ;;  %v5777_v32 = vand.u32 4294901760, %v5776_v3  ;;  %5847 = vmatprep.mubr.f32.mxu0 %v10912_v0  ;;  %v7162_v18 = vmul.f32 %v7157_v58, %v7143_v40  ;;  %vm12056_vm11 = vmmov %vm12055_vm10 }
 0x63b   : > { %v7161_v33 = vmul.f32 %v7158_v31, %v11685_v43 }
 0x63c   : > { %6660 = vrot.lane.b32.xlu1 %v6653_v12, %s10918_s0  ;;  %5778 = vmatprep.subr.mxu0 %v5777_v32  ;;  %v5782_v34 = vsub.f32 %v5780_v56, %v5781_v30 }
 0x63d   : > { %v7167_v41 = vcombine.high %v7161_v33, %v7161_v33 }
 0x63e   : > { %v5783_v22 = vand.u32 4294901760, %v5782_v34 }
 0x63f   : > { %7170 = vrot.lane.b32.xlu0 %v7167_v41, %s10919_s23 }
 0x640   : > { %5784 = vmatpush1.msra.mxu0 %v5783_v22  ;;  %7172 = vrot.lane.b32.xlu1 %v7162_v18, %s10919_s23  ;;  %v8140_v18 = vld [vmem:[#allocation3 + $0x8] sm:$0xf] }
 0x641   : > { %5849 = vmatmul.mubr.f32.vlgmr.msra.gmra.mrb[2].mxu0 %v11700_v9  ;;  %5857 = vmatprep.subr.mxu0 %v5774_v11 }
 0x642   : > { %5860 = vmatpush1.msra.mxu0 %v5780_v56  ;;  %5923 = vmatprep.mubr.f32.mxu0 %v10912_v0 }
 0x643   : > { %5933 = vmatprep.subr.mxu0 %v11711_v5  ;;  %7168 = vrot.lane.b32.xlu0 %v7161_v33, %s10919_s23  ;;  %v9157_v33 = vld [vmem:[#allocation9 + $0xe] sm:$0x3]  ;;  %s12048_s23 = smov 96  }
 0x644   : > { %8152 = vrot.lane.b32.xlu1 %v8151_v23, %s10920_s26  ;;  %v9162_v16 = vrot.slane %v9157_v33, %v11361_v37  ;;  %v9166_v17 = vrot.slane %v9157_v33, %v11374_v61  ;;  %s12049_s26 = smov 34  }
 0x646   : > { %v9167_v36 = vcombine.low %v9162_v16, %v9166_v17 }
 0x647   : > { %7659 = vrot.lane.b32.xlu0 %v7656_v38, %s10921_s14 }
 0x648   : > { %7661 = vrot.lane.b32.xlu1 %v7651_v44, %s10921_s14 }
 0x649   : > { %5926 = vmatmul.mubr.f32.vlgmr.msra.gmra.mrb[2].mxu0 %v11703_v46  ;;  %v6254_v46 = vsub.f32 %v6165_v59, %v6171_v2 }
 0x64a   : > { %5935 = vmatpush1.msra.mxu0 %v11720_v19  ;;  %5998 = vmatprep.mubr.f32.mxu0 %v10912_v0 }
 0x64b   : > { %6011 = vmatprep.subr.mxu0 %v5775_v26  ;;  %7657 = vrot.lane.b32.xlu0 %v11685_v43, %s10921_s14  ;;  %v6255_v57 = vand.u32 4294901760, %v6254_v46  ;;  %s10339_s14 = sshll.u32 %s10997_s9, 7  ;;  %s10930_s9 = smov [#allocation10]  }
 0x64c   : > { %8660 = vrot.lane.b32.xlu1 %v8659_v45, %s10922_s11  ;;  %s12059_s11 = sshll.u32 %s11145_s29, 3  ;;  %s10835_s18 = sshll.u32 %s10930_s9, 4  ;;  %s10836_s18 = int_to_ptr.vmem [resolvable:$false] %s10835_s18 }
 0x64d   : > { %v6256_v4 = vsub.f32 %v6254_v46, %v6255_v57  ;;  %s10837_s20 = scalar_lea.vmem %s10836_s18, 256 }
 0x64f   : > { %v6257_v6 = vand.u32 4294901760, %v6256_v4 }
 0x651   : > { %6002 = vmatmul.mubr.f32.vlgmr.msra.gmra.mrb[2].mxu0 %v5764_v53  ;;  %v6250_v53 = vsub.f32 %v6248_v60, %v6249_v52 }
 0x652   : > { %6015 = vmatpush1.msra.mxu0 %v5781_v30  ;;  %6078 = vmatprep.mubr.f32.mxu0 %v10912_v0 }
 0x653   : > { %6087 = vmatprep.subr.mxu0 %v11711_v5  ;;  %v6251_v62 = vand.u32 4294901760, %v6250_v53  ;;  %v6240_v5 = vand.u32 4294901760, %v6239_v1 }
 0x659   : > { %6080 = vmatmul.mubr.f32.vlgmr.msra.gmra.mrb[2].mxu0 %v11700_v9 }
 0x65a   : > { %6089 = vmatpush1.msra.mxu0 %v11720_v19  ;;  %6152 = vmatprep.mubr.f32.mxu0 %v10912_v0 }
 0x65b   : > { %6170 = vmatprep.subr.mxu0 %v6169_v50 }
 0x661   : > { %6154 = vmatmul.mubr.f32.vlgmr.msra.gmra.mrb[2].mxu0 %v11700_v9  ;;  %v10326_v9 = vld [vmem:[%s12010_s6 + $0x8] sm:$0xf] }
 0x662   : > { %6172 = vmatpush1.msra.mxu0 %v6171_v2  ;;  %6235 = vmatprep.mubr.f32.mxu0 %v10912_v0  ;;  %v6669_v7 = vsel %vm5686_vm1, %v10326_v9, 0 }
 0x663   : > { %6252 = vmatprep.subr.mxu0 %v6251_v62  ;;  %v11778_v8 = vand.u32 4294901760, %v6669_v7 }
 0x665   : > { %v11781_v10 = vsub.f32 %v6669_v7, %v11778_v8 }
 0x667   : > { %v6744_v11 = vand.u32 4294901760, %v11781_v10 }
 0x669   : > { %6241 = vmatmul.mubr.f32.vlgmr.msra.gmra.mrb[2].mxu0 %v6240_v5  ;;  %v6745_v19 = vsub.f32 %v11781_v10, %v6744_v11 }
 0x66a   : > { %6258 = vmatpush1.msra.mxu0 %v6257_v6  ;;  %6321 = vmatprep.mubr.f32.mxu0 %v10912_v0 }
 0x66b   : > { %6331 = vmatprep.subr.mxu0 %v6248_v60  ;;  %v6746_v3 = vand.u32 4294901760, %v6745_v19 }
 0x671   : > { %6323 = vmatmul.mubr.f32.vlgmr.msra.gmra.mrb[2].mxu0 %v6236_v63 }
 0x672   : > { %6334 = vmatpush1.msra.mxu0 %v6254_v46  ;;  %6397 = vmatprep.mubr.f32.mxu0 %v10912_v0 }
 0x673   : > { %6407 = vmatprep.subr.mxu0 %v6169_v50 }
 0x679   : > { %6400 = vmatmul.mubr.f32.vlgmr.msra.gmra.mrb[2].mxu0 %v6237_v54  ;;  %v10327_v54 = vld [vmem:[%s12010_s6 + $0xc] sm:$0xf] }
 0x67a   : > { %6409 = vmatpush1.msra.mxu0 %v6171_v2  ;;  %6472 = vmatprep.mubr.f32.mxu0 %v10912_v0 }
 0x67b   : > { %6485 = vmatprep.subr.mxu0 %v6249_v52 }
 0x681   : > { %6476 = vmatmul.mubr.f32.vlgmr.msra.gmra.mrb[2].mxu0 %v6238_v55  ;;  %v7177_v55 = vsel %vm5686_vm1, %v10327_v54, 0 }
 0x682   : > { %6489 = vmatpush1.msra.mxu0 %v6255_v57  ;;  %6552 = vmatprep.mubr.f32.mxu0 %v10912_v0  ;;  %v7250_v1 = vand.u32 4294901760, %v7177_v55 }
 0x683   : > { %6561 = vmatprep.subr.mxu0 %v6169_v50 }
 0x684   : > { %v7251_v6 = vsub.f32 %v7177_v55, %v7250_v1 }
 0x689   : > { %6554 = vmatmul.mubr.f32.vlgmr.msra.gmra.mrb[2].mxu0 %v6236_v63 }
 0x68a   : > { %6563 = vmatpush1.msra.mxu0 %v6171_v2  ;;  %6626 = vmatprep.mubr.f32.mxu0 %v10912_v0 }
 0x691   : > { %6628 = vmatmul.mubr.f32.vlgmr.msra.gmra.mrb[2].mxu0 %v6236_v63  ;;  %v9675_v63 = vcombine.low %v9670_v47, %v9674_v48 }
 0x692   : > { %6741 = vmatprep.mubr.f32.mxu0 %v10912_v0 }
 0x6a7   : > { %v6665_v12 = vpop.permute.xlu0 %6664 }
 0x6aa   : > { %v6663_v14 = vpop.permute.xlu1 %6662 }
 0x6ab   : > { %v6667_v15 = vsel %vm2106_vm12, %v6663_v14, %v6665_v12 }
 0x6ac   : > { %v6673_v13 = vsel %vm5690_vm3, %v6667_v15, 0 }
 0x6ad   : > { %v11789_v21 = vand.u32 4294901760, %v6673_v13 }
 0x6ae   : > { %v6661_v26 = vpop.permute.xlu1 %6660 }
 0x6af   : > { %v6754_v27 = vsub.f32 %v6673_v13, %v11789_v21  ;;  %v6666_v56 = vsel %vm2106_vm12, %v6661_v26, %v6663_v14  ;;  %6676 = vmatprep.subr.mxu0 %v11789_v21  ;;  %vm12057_vm12 = vcmask 769024  }
 0x6b0   : > { %v6671_v58 = vsel %vm5690_vm3, %v6666_v56, 0  ;;  %v10328_v56 = vld [vmem:[%s12010_s6 + $0x10] sm:$0xf] }
 0x6b1   : > { %v11795_v29 = vand.u32 4294901760, %v6671_v58  ;;  %v6755_v30 = vand.u32 4294901760, %v6754_v27  ;;  %v7171_v60 = vpop.permute.xlu0 %7170 }
 0x6b2   : > { %v7173_v31 = vpop.permute.xlu1 %7172 }
 0x6b3   : > { %v6760_v32 = vsub.f32 %v6671_v58, %v11795_v29  ;;  %6678 = vmatpush1.msra.mxu0 %v11795_v29  ;;  %v6756_v20 = vsub.f32 %v6754_v27, %v6755_v30  ;;  %v7175_v37 = vsel %vm2615_vm0, %v7171_v60, %v7173_v31 }
 0x6b4   : > { %6747 = vmatmul.mubr.f32.vlgmr.msra.gmra.mrb[2].mxu0 %v6746_v3  ;;  %v7181_v61 = vsel %vm5690_vm3, %v7175_v37, 0 }
 0x6b5   : > { %v6761_v34 = vand.u32 4294901760, %v6760_v32  ;;  %v6757_v35 = vand.u32 4294901760, %v6756_v20  ;;  %6827 = vmatprep.mubr.f32.mxu0 %v10912_v0  ;;  %v7169_v52 = vpop.permute.xlu0 %7168  ;;  %v7183_v46 = vand.u32 4294901760, %v7181_v61 }
 0x6b6   : > { %v8153_v39 = vpop.permute.xlu1 %8152  ;;  %v7174_v53 = vsel %vm2615_vm0, %v7169_v52, %v7171_v60 }
 0x6b7   : > { %v8154_v40 = vrot.slane %v8153_v39, 4  ;;  %6758 = vmatprep.subr.mxu0 %v6757_v35  ;;  %v6762_v41 = vsub.f32 %v6760_v32, %v6761_v34  ;;  %v7262_v57 = vsub.f32 %v7181_v61, %v7183_v46  ;;  %v7179_v62 = vsel %vm5690_vm3, %v7174_v53, 0 }
 0x6b8   : > { %v7185_v4 = vand.u32 4294901760, %v7179_v62 }
 0x6b9   : > { %v8155_v22 = vsel %vm3591_vm13, %v8154_v40, %v8153_v39  ;;  %v8159_v23 = vmul.f32 %v8154_v40, %v8140_v18  ;;  %v6763_v24 = vand.u32 4294901760, %v6762_v41  ;;  %v7263_v5 = vand.u32 4294901760, %v7262_v57  ;;  %vm12058_vm13 = vmmov %vm12057_vm12 }
 0x6ba   : > { %v8158_v25 = vmul.f32 %v8155_v22, %v11685_v43  ;;  %v11804_v28 = vpop.permute.xlu1 %7661  ;;  %v7268_v9 = vsub.f32 %v7179_v62, %v7185_v4 }
 0x6bb   : > { %8169 = vrot.lane.b32.xlu1 %v8159_v23, %s10923_s25  ;;  %6764 = vmatpush1.msra.mxu0 %v6763_v24  ;;  %v7264_v7 = vsub.f32 %v7262_v57, %v7263_v5  ;;  %v10329_v24 = vld [vmem:[%s12010_s6 + $0x14] sm:$0xf] }
 0x6bc   : > { %6829 = vmatmul.mubr.f32.vlgmr.msra.gmra.mrb[2].mxu0 %v11778_v8  ;;  %6837 = vmatprep.subr.mxu0 %v6754_v27  ;;  %v8164_v38 = vcombine.high %v8158_v25, %v8158_v25 }
 0x6bd   : > { %6840 = vmatpush1.msra.mxu0 %v6760_v32  ;;  %6903 = vmatprep.mubr.f32.mxu0 %v10912_v0  ;;  %v7265_v12 = vand.u32 4294901760, %v7264_v7 }
 0x6be   : > { %v8661_v44 = vpop.permute.xlu1 %8660  ;;  %8167 = vrot.lane.b32.xlu0 %v8164_v38, %s10923_s25  ;;  %6913 = vmatprep.subr.mxu0 %v11789_v21 }
 0x6bf   : > { %v8662_v45 = vrot.slane %v8661_v44, 4  ;;  %9168 = vrot.lane.b32.xlu1 %v9167_v36, %s10924_s22 }
 0x6c1   : > { %v8663_v50 = vsel %vm4100_vm15, %v8662_v45, %v8661_v44  ;;  %v8667_v51 = vmul.f32 %v8662_v45, %v8648_v49  ;;  %v9156_v49 = vld [vmem:[#allocation3 + $0x8] sm:$0xf] }
 0x6c2   : > { %v8666_v59 = vmul.f32 %v8663_v50, %v11685_v43  ;;  %8165 = vrot.lane.b32.xlu0 %v8158_v25, %s10923_s25  ;;  %s372_s25 = scalar_lea.vmem [#allocation10], %s12059_s11 }
 0x6c3   : > { %8677 = vrot.lane.b32.xlu1 %v8667_v51, %s12048_s23  ;;  %s10201_s22 = sshll.u32 %s372_s25, 4  ;;  %s11962_s22 = int_to_ptr.vmem [resolvable:$true] %s10201_s22 }
 0x6c4   : > { %6906 = vmatmul.mubr.f32.vlgmr.msra.gmra.mrb[2].mxu0 %v11781_v10  ;;  %v8672_v2 = vcombine.high %v8666_v59, %v8666_v59  ;;  %v7252_v10 = vand.u32 4294901760, %v7251_v6  ;;  %s10831_s19 = scalar_lea.vmem %s11962_s22, 128  ;;  %p10838_p9 = scmp.lt.s32.totalorder %s11962_s22, %s10836_s18 }
 0x6c5   : > { %6915 = vmatpush1.msra.mxu0 %v11795_v29  ;;  %6978 = vmatprep.mubr.f32.mxu0 %v10912_v0  ;;  %p10832_p10 = scmp.ne.s32.totalorder %s11962_s22, %s10831_s19  ;;  %p10839_p1 = scmp.lt.s32.totalorder %s10837_s20, %s10831_s19 }
 0x6c6   : > { %6991 = vmatprep.subr.mxu0 %v6755_v30  ;;  %8675 = vrot.lane.b32.xlu0 %v8672_v2, %s12048_s23  ;;  %v7253_v14 = vsub.f32 %v7251_v6, %v7252_v10 }
 0x6c7   : > { %9676 = vrot.lane.b32.xlu1 %v9675_v63, %s12049_s26  ;;  %p10833_p3 = pnand %p10832_p10, %p12060_p13  ;;  %p10840_p5 = por %p10839_p1, %p10838_p9 }
 0x6c8   : > { %v7254_v13 = vand.u32 4294901760, %v7253_v14 }
 0x6c9   : > { %p10834_p7 = pneg %p10833_p3 }
 0x6ca   : > { %8673 = vrot.lane.b32.xlu0 %v8666_v59, %s12048_s23 }
 0x6cb   : > { %p10841_p2 = pnand %p10840_p5, %p10834_p7 }
 0x6cc   : > { %6982 = vmatmul.mubr.f32.vlgmr.msra.gmra.mrb[2].mxu0 %v6744_v11  ;;  %v7269_v11 = vand.u32 4294901760, %v7268_v9 }
 0x6cd   : > { %6995 = vmatpush1.msra.mxu0 %v6761_v34  ;;  %7058 = vmatprep.mubr.f32.mxu0 %v10912_v0 }
 0x6ce   : > { %7067 = vmatprep.subr.mxu0 %v11789_v21  ;;  %v7270_v15 = vsub.f32 %v7268_v9, %v7269_v11 }
 0x6d0   : > { %v7271_v19 = vand.u32 4294901760, %v7270_v15 }
 0x6d4   : > { %7060 = vmatmul.mubr.f32.vlgmr.msra.gmra.mrb[2].mxu0 %v11778_v8 }
 0x6d5   : > { %7069 = vmatpush1.msra.mxu0 %v11795_v29  ;;  %7132 = vmatprep.mubr.f32.mxu0 %v10912_v0  ;;  %v7666_v29 = vsel %vm5686_vm1, %v10328_v56, 0  ;;  %v10330_v56 = vld [vmem:[%s12010_s6 + $0x18] sm:$0xf] }
 0x6d6   : > { %7184 = vmatprep.subr.mxu0 %v7183_v46  ;;  %v11854_v32 = vand.u32 4294901760, %v7666_v29 }
 0x6d8   : > { %v7740_v34 = vsub.f32 %v7666_v29, %v11854_v32  ;;  %v8682_v29 = vsel %vm5686_vm1, %v10330_v56, 0 }
 0x6da   : > { %v7741_v40 = vand.u32 4294901760, %v7740_v34 }
 0x6dc   : > { %7134 = vmatmul.mubr.f32.vlgmr.msra.gmra.mrb[2].mxu0 %v11778_v8  ;;  %v7660_v8 = vpop.permute.xlu0 %7659  ;;  %v7742_v17 = vsub.f32 %v7740_v34, %v7741_v40 }
 0x6dd   : > { %7186 = vmatpush1.msra.mxu0 %v7185_v4  ;;  %7249 = vmatprep.mubr.f32.mxu0 %v10912_v0  ;;  %v7664_v21 = vsel %vm3101_vm14, %v7660_v8, %v11804_v28  ;;  %v8174_v28 = vsel %vm5686_vm1, %v10329_v24, 0  ;;  %v10331_v24 = vld [vmem:[%s12010_s6 + $0x1c] sm:$0xf] }
 0x6de   : > { %7266 = vmatprep.subr.mxu0 %v7265_v12  ;;  %v7670_v26 = vsel %vm5690_vm3, %v7664_v21, 0  ;;  %v7743_v22 = vand.u32 4294901760, %v7742_v17  ;;  %v11868_v38 = vand.u32 4294901760, %v8174_v28 }
 0x6df   : > { %v7672_v58 = vand.u32 4294901760, %v7670_v26 }
 0x6e0   : > { %v7658_v27 = vpop.permute.xlu0 %7657  ;;  %v8248_v60 = vsub.f32 %v8174_v28, %v11868_v38 }
 0x6e1   : > { %v7663_v3 = vsel %vm3101_vm14, %v7658_v27, %v7660_v8  ;;  %v7751_v30 = vsub.f32 %v7670_v26, %v7672_v58 }
 0x6e2   : > { %v7668_v31 = vsel %vm5690_vm3, %v7663_v3, 0  ;;  %v8249_v55 = vand.u32 4294901760, %v8248_v60 }
 0x6e3   : > { %v7674_v20 = vand.u32 4294901760, %v7668_v31  ;;  %v7752_v33 = vand.u32 4294901760, %v7751_v30 }
 0x6e4   : > { %7255 = vmatmul.mubr.f32.vlgmr.msra.gmra.mrb[2].mxu0 %v7254_v13  ;;  %v8250_v7 = vsub.f32 %v8248_v60, %v8249_v55 }
 0x6e5   : > { %7272 = vmatpush1.msra.mxu0 %v7271_v19  ;;  %7335 = vmatprep.mubr.f32.mxu0 %v10912_v0  ;;  %v7757_v35 = vsub.f32 %v7668_v31, %v7674_v20  ;;  %v7753_v39 = vsub.f32 %v7751_v30, %v7752_v33 }
 0x6e6   : > { %7345 = vmatprep.subr.mxu0 %v7262_v57  ;;  %v8251_v13 = vand.u32 4294901760, %v8250_v7 }
 0x6e7   : > { %v7758_v41 = vand.u32 4294901760, %v7757_v35  ;;  %v7754_v16 = vand.u32 4294901760, %v7753_v39 }
 0x6e9   : > { %v7759_v18 = vsub.f32 %v7757_v35, %v7758_v41 }
 0x6eb   : > { %v7760_v23 = vand.u32 4294901760, %v7759_v18 }
 0x6ec   : > { %7337 = vmatmul.mubr.f32.vlgmr.msra.gmra.mrb[2].mxu0 %v7250_v1 }
 0x6ed   : > { %7348 = vmatpush1.msra.mxu0 %v7268_v9  ;;  %7411 = vmatprep.mubr.f32.mxu0 %v10912_v0 }
 0x6ee   : > { %7421 = vmatprep.subr.mxu0 %v7183_v46 }
 0x6f4   : > { %7414 = vmatmul.mubr.f32.vlgmr.msra.gmra.mrb[2].mxu0 %v7251_v6 }
 0x6f5   : > { %7423 = vmatpush1.msra.mxu0 %v7185_v4  ;;  %7486 = vmatprep.mubr.f32.mxu0 %v10912_v0 }
 0x6f6   : > { %7499 = vmatprep.subr.mxu0 %v7263_v5 }
 0x6fc   : > { %7490 = vmatmul.mubr.f32.vlgmr.msra.gmra.mrb[2].mxu0 %v7252_v10 }
 0x6fd   : > { %7503 = vmatpush1.msra.mxu0 %v7269_v11  ;;  %7566 = vmatprep.mubr.f32.mxu0 %v10912_v0  ;;  %v9664_v11 = vld [vmem:[#allocation3 + $0x8] sm:$0xf] }
 0x6fe   : > { %7575 = vmatprep.subr.mxu0 %v7183_v46 }
 0x704   : > { %7568 = vmatmul.mubr.f32.vlgmr.msra.gmra.mrb[2].mxu0 %v7250_v1 }
 0x705   : > { %7577 = vmatpush1.msra.mxu0 %v7185_v4  ;;  %7640 = vmatprep.mubr.f32.mxu0 %v10912_v0 }
 0x706   : > { %7673 = vmatprep.subr.mxu0 %v7672_v58 }
 0x70c   : > { %7642 = vmatmul.mubr.f32.vlgmr.msra.gmra.mrb[2].mxu0 %v7250_v1 }
 0x70d   : > { %7675 = vmatpush1.msra.mxu0 %v7674_v20  ;;  %7738 = vmatprep.mubr.f32.mxu0 %v10912_v0 }
 0x70e   : > { %7755 = vmatprep.subr.mxu0 %v7754_v16 }
 0x714   : > { %7744 = vmatmul.mubr.f32.vlgmr.msra.gmra.mrb[2].mxu0 %v7743_v22 }
 0x715   : > { %7761 = vmatpush1.msra.mxu0 %v7760_v23  ;;  %7824 = vmatprep.mubr.f32.mxu0 %v10912_v0 }
 0x716   : > { %7834 = vmatprep.subr.mxu0 %v7751_v30 }
 0x71c   : > { %7826 = vmatmul.mubr.f32.vlgmr.msra.gmra.mrb[2].mxu0 %v11854_v32 }
 0x71d   : > { %7837 = vmatpush1.msra.mxu0 %v7757_v35  ;;  %7900 = vmatprep.mubr.f32.mxu0 %v10912_v0 }
 0x71e   : > { %7910 = vmatprep.subr.mxu0 %v7672_v58 }
 0x724   : > { %7903 = vmatmul.mubr.f32.vlgmr.msra.gmra.mrb[2].mxu0 %v7740_v34 }
 0x725   : > { %7912 = vmatpush1.msra.mxu0 %v7674_v20  ;;  %7975 = vmatprep.mubr.f32.mxu0 %v10912_v0 }
 0x726   : > { %7988 = vmatprep.subr.mxu0 %v7752_v33 }
 0x72c   : > { %7979 = vmatmul.mubr.f32.vlgmr.msra.gmra.mrb[2].mxu0 %v7741_v40 }
 0x72d   : > { %7992 = vmatpush1.msra.mxu0 %v7758_v41  ;;  %v8170_v25 = vpop.permute.xlu1 %8169  ;;  %8055 = vmatprep.mubr.f32.mxu0 %v10912_v0 }
 0x72e   : > { %8064 = vmatprep.subr.mxu0 %v7672_v58 }
 0x730   : > { %v8168_v36 = vpop.permute.xlu0 %8167 }
 0x731   : > { %v8172_v42 = vsel %vm3610_vm2, %v8168_v36, %v8170_v25  ;;  %v9169_v44 = vpop.permute.xlu1 %9168  ;;  %v9190_v25 = vsel %vm5686_vm1, %v10331_v24, 0 }
 0x732   : > { %v8178_v45 = vsel %vm5690_vm3, %v8172_v42, 0  ;;  %v9170_v47 = vrot.slane %v9169_v44, 4  ;;  %v11925_v28 = vand.u32 4294901760, %v9190_v25 }
 0x733   : > { %v11872_v48 = vand.u32 4294901760, %v8178_v45 }
 0x734   : > { %v9171_v50 = vsel %vm4609_vm5, %v9170_v47, %v9169_v44  ;;  %v9175_v51 = vmul.f32 %v9170_v47, %v9156_v49  ;;  %8057 = vmatmul.mubr.f32.vlgmr.msra.gmra.mrb[2].mxu0 %v11854_v32  ;;  %v8166_v59 = vpop.permute.xlu0 %8165 }
 0x735   : > { %v8259_v63 = vsub.f32 %v8178_v45, %v11872_v48  ;;  %v9174_v2 = vmul.f32 %v9171_v50, %v11685_v43  ;;  %8066 = vmatpush1.msra.mxu0 %v7674_v20  ;;  %v8171_v37 = vsel %vm3610_vm2, %v8166_v59, %v8168_v36  ;;  %v8678_v61 = vpop.permute.xlu1 %8677  ;;  %8129 = vmatprep.mubr.f32.mxu0 %v10912_v0 }
 0x736   : > { %v8176_v52 = vsel %vm5690_vm3, %v8171_v37, 0  ;;  %8181 = vmatprep.subr.mxu0 %v11872_v48  ;;  %9185 = vrot.lane.b32.xlu1 %v9175_v51, %s12050_s15  ;;  %v9264_v36 = vsub.f32 %v9190_v25, %v11925_v28 }
 0x737   : > { %v8182_v54 = vand.u32 4294901760, %v8176_v52  ;;  %v9180_v46 = vcombine.high %v9174_v2, %v9174_v2  ;;  %v8260_v53 = vand.u32 4294901760, %v8259_v63 }
 0x738   : > { %v8676_v8 = vpop.permute.xlu0 %8675 }
 0x739   : > { %v8265_v57 = vsub.f32 %v8176_v52, %v8182_v54  ;;  %v9677_v62 = vpop.permute.xlu1 %9676  ;;  %9183 = vrot.lane.b32.xlu0 %v9180_v46, %s12050_s15  ;;  %v8261_v1 = vsub.f32 %v8259_v63, %v8260_v53  ;;  %v8680_v21 = vsel %vm12053_vm7, %v8676_v8, %v8678_v61 }
 0x73a   : > { %v9678_v4 = vrot.slane %v9677_v62, 4  ;;  %v8686_v26 = vsel %vm5690_vm3, %v8680_v21, 0 }
 0x73b   : > { %v8266_v5 = vand.u32 4294901760, %v8265_v57  ;;  %v8262_v6 = vand.u32 4294901760, %v8261_v1  ;;  %v8688_v58 = vand.u32 4294901760, %v8686_v26 }
 0x73c   : > { %v9679_v9 = vsel %vm12051_vm4, %v9678_v4, %v9677_v62  ;;  %8131 = vmatmul.mubr.f32.vlgmr.msra.gmra.mrb[2].mxu0 %v11854_v32  ;;  %v9683_v12 = vmul.f32 %v9678_v4, %v9664_v11  ;;  %v8674_v27 = vpop.permute.xlu0 %8673  ;;  %v8755_v32 = vand.u32 4294901760, %v8682_v29 }
 0x73d   : > { %v9682_v10 = vmul.f32 %v9679_v9, %v11685_v43  ;;  %8183 = vmatpush1.msra.mxu0 %v8182_v54  ;;  %9181 = vrot.lane.b32.xlu0 %v9174_v2, %s12050_s15  ;;  %v8267_v15 = vsub.f32 %v8265_v57, %v8266_v5  ;;  %v10171_v43 = vld [vmem:[%s12011_s7] sm:$0xf]  ;;  %v8679_v3 = vsel %vm12054_vm9, %v8674_v27, %v8676_v8  ;;  %s11960_s15 = scalar_lea.hbm %s12012_s8, %s10339_s14 }
 0x73e   : > { %8263 = vmatprep.subr.mxu0 %v8262_v6  ;;  %8246 = vmatprep.mubr.f32.mxu0 %v10912_v0  ;;  %v8767_v30 = vsub.f32 %v8686_v26, %v8688_v58  ;;  %v8684_v31 = vsel %vm5690_vm3, %v8679_v3, 0  ;;  %v8756_v34 = vsub.f32 %v8682_v29, %v8755_v32  ;;  %v10332_v6 = vld [vmem:[%s12010_s6 + $0x20] sm:$0xf] }
 0x73f   : > { %v9688_v14 = vcombine.high %v9682_v10, %v9682_v10  ;;  %v8268_v19 = vand.u32 4294901760, %v8267_v15  ;;  %v8690_v20 = vand.u32 4294901760, %v8684_v31 }
 0x740   : > { %v8768_v33 = vand.u32 4294901760, %v8767_v30  ;;  %v8757_v40 = vand.u32 4294901760, %v8756_v34 }
 0x741   : > { %9691 = vrot.lane.b32.xlu1 %v9688_v14, %s12052_s10  ;;  %9693 = vrot.lane.b32.xlu0 %v9683_v12, %s12052_s10  ;;  %v8773_v35 = vsub.f32 %v8684_v31, %v8690_v20 }
 0x742   : > { %v8769_v39 = vsub.f32 %v8767_v30, %v8768_v33  ;;  %v8758_v17 = vsub.f32 %v8756_v34, %v8757_v40 }
 0x743   : > { %v8774_v41 = vand.u32 4294901760, %v8773_v35 }
 0x744   : > { %8252 = vmatmul.mubr.f32.vlgmr.msra.gmra.mrb[2].mxu0 %v8251_v13  ;;  %v8770_v16 = vand.u32 4294901760, %v8769_v39  ;;  %v8759_v22 = vand.u32 4294901760, %v8758_v17 }
 0x745   : > { %8269 = vmatpush1.msra.mxu0 %v8268_v19  ;;  %9689 = vrot.lane.b32.xlu1 %v9682_v10, %s12052_s10  ;;  %v8775_v18 = vsub.f32 %v8773_v35, %v8774_v41  ;;  %v9698_v10 = vsel %vm5686_vm1, %v10332_v6, 0  ;;  %s10187_s10 = scalar_lea.sflag [#allocation6], %s11145_s29 }
 0x746   : > { %10174 = vperm.xlu0 %10740, %v10171_v43   ;;  %8342 = vmatprep.subr.mxu0 %v8259_v63  ;;  %v9771_v14 = vand.u32 4294901760, %v9698_v10 }
 0x747   : > { %8332 = vmatprep.mubr.f32.mxu0 %v10912_v0  ;;  %v8776_v23 = vand.u32 4294901760, %v8775_v18 }
 0x748   : > { %v9772_v19 = vsub.f32 %v9698_v10, %v9771_v14 }
 0x74a   : > { %v9773_v21 = vand.u32 4294901760, %v9772_v19 }
 0x74c   : > { %8334 = vmatmul.mubr.f32.vlgmr.msra.gmra.mrb[2].mxu0 %v11868_v38  ;;  %v9774_v56 = vsub.f32 %v9772_v19, %v9773_v21 }
 0x74d   : > { %8345 = vmatpush1.msra.mxu0 %v8265_v57  ;;  %8408 = vmatprep.mubr.f32.mxu0 %v10912_v0 }
 0x74e   : > { %8418 = vmatprep.subr.mxu0 %v11872_v48  ;;  %v9775_v3 = vand.u32 4294901760, %v9774_v56 }
 0x754   : > { %8411 = vmatmul.mubr.f32.vlgmr.msra.gmra.mrb[2].mxu0 %v8248_v60 }
 0x755   : > { %8420 = vmatpush1.msra.mxu0 %v8182_v54  ;;  %8483 = vmatprep.mubr.f32.mxu0 %v10912_v0 }
 0x756   : > { %8496 = vmatprep.subr.mxu0 %v8260_v53 }
 0x75c   : > { %8487 = vmatmul.mubr.f32.vlgmr.msra.gmra.mrb[2].mxu0 %v8249_v55 }
 0x75d   : > { %8500 = vmatpush1.msra.mxu0 %v8266_v5  ;;  %8563 = vmatprep.mubr.f32.mxu0 %v10912_v0 }
 0x75e   : > { %8572 = vmatprep.subr.mxu0 %v11872_v48 }
 0x764   : > { %8565 = vmatmul.mubr.f32.vlgmr.msra.gmra.mrb[2].mxu0 %v11868_v38 }
 0x765   : > { %8574 = vmatpush1.msra.mxu0 %v8182_v54  ;;  %8637 = vmatprep.mubr.f32.mxu0 %v10912_v0 }
 0x766   : > { %8689 = vmatprep.subr.mxu0 %v8688_v58 }
 0x76c   : > { %8639 = vmatmul.mubr.f32.vlgmr.msra.gmra.mrb[2].mxu0 %v11868_v38  ;;  %v9265_v38 = vand.u32 4294901760, %v9264_v36 }
 0x76d   : > { %8691 = vmatpush1.msra.mxu0 %v8690_v20  ;;  %8754 = vmatprep.mubr.f32.mxu0 %v10912_v0 }
 0x76e   : > { %8771 = vmatprep.subr.mxu0 %v8770_v16  ;;  %v9266_v48 = vsub.f32 %v9264_v36, %v9265_v38 }
 0x770   : > { %v9267_v63 = vand.u32 4294901760, %v9266_v48 }
 0x774   : > { %8760 = vmatmul.mubr.f32.vlgmr.msra.gmra.mrb[2].mxu0 %v8759_v22 }
 0x775   : > { %8777 = vmatpush1.msra.mxu0 %v8776_v23  ;;  %8840 = vmatprep.mubr.f32.mxu0 %v10912_v0 }
 0x776   : > { %8850 = vmatprep.subr.mxu0 %v8767_v30 }
 0x77c   : > { %8842 = vmatmul.mubr.f32.vlgmr.msra.gmra.mrb[2].mxu0 %v8755_v32 }
 0x77d   : > { %8853 = vmatpush1.msra.mxu0 %v8773_v35  ;;  %8916 = vmatprep.mubr.f32.mxu0 %v10912_v0 }
 0x77e   : > { %8926 = vmatprep.subr.mxu0 %v8688_v58 }
 0x784   : > { %8919 = vmatmul.mubr.f32.vlgmr.msra.gmra.mrb[2].mxu0 %v8756_v34 }
 0x785   : > { %8928 = vmatpush1.msra.mxu0 %v8690_v20  ;;  %8991 = vmatprep.mubr.f32.mxu0 %v10912_v0 }
 0x786   : > { %9004 = vmatprep.subr.mxu0 %v8768_v33 }
 0x78c   : > { %8995 = vmatmul.mubr.f32.vlgmr.msra.gmra.mrb[2].mxu0 %v8757_v40 }
 0x78d   : > { %9008 = vmatpush1.msra.mxu0 %v8774_v41  ;;  %9071 = vmatprep.mubr.f32.mxu0 %v10912_v0 }
 0x78e   : > { %9080 = vmatprep.subr.mxu0 %v8688_v58 }
 0x794   : > { %9073 = vmatmul.mubr.f32.vlgmr.msra.gmra.mrb[2].mxu0 %v8755_v32 }
 0x795   : > { %9082 = vmatpush1.msra.mxu0 %v8690_v20  ;;  %9145 = vmatprep.mubr.f32.mxu0 %v10912_v0 }
 0x79c   : > { %9147 = vmatmul.mubr.f32.vlgmr.msra.gmra.mrb[2].mxu0 %v8755_v32 }
 0x79d   : > { %9262 = vmatprep.mubr.f32.mxu0 %v10912_v0 }
 0x7a8   : > { %v9186_v42 = vpop.permute.xlu1 %9185 }
 0x7ab   : > { %v9184_v44 = vpop.permute.xlu0 %9183 }
 0x7ac   : > { %v9188_v45 = vsel %vm12055_vm10, %v9184_v44, %v9186_v42 }
 0x7ad   : > { %v9194_v47 = vsel %vm5690_vm3, %v9188_v45, 0 }
 0x7ae   : > { %v9196_v49 = vand.u32 4294901760, %v9194_v47 }
 0x7af   : > { %v9182_v50 = vpop.permute.xlu0 %9181 }
 0x7b0   : > { %v9275_v51 = vsub.f32 %v9194_v47, %v9196_v49  ;;  %v9187_v59 = vsel %vm12056_vm11, %v9182_v50, %v9184_v44  ;;  %9197 = vmatprep.subr.mxu0 %v9196_v49 }
 0x7b1   : > { %v9192_v60 = vsel %vm5690_vm3, %v9187_v59, 0 }
 0x7b2   : > { %v9198_v2 = vand.u32 4294901760, %v9192_v60  ;;  %v9276_v37 = vand.u32 4294901760, %v9275_v51 }
 0x7b3   : > { %v9692_v57 = vpop.permute.xlu1 %9691  ;;  %v9694_v62 = vpop.permute.xlu0 %9693 }
 0x7b4   : > { %v9281_v61 = vsub.f32 %v9192_v60, %v9198_v2  ;;  %9199 = vmatpush1.msra.mxu0 %v9198_v2  ;;  %v9277_v52 = vsub.f32 %v9275_v51, %v9276_v37  ;;  %v9696_v1 = vsel %vm12057_vm12, %v9692_v57, %v9694_v62 }
 0x7b5   : > { %9268 = vmatmul.mubr.f32.vlgmr.msra.gmra.mrb[2].mxu0 %v9267_v63  ;;  %v9702_v4 = vsel %vm5690_vm3, %v9696_v1, 0 }
 0x7b6   : > { %v9282_v54 = vand.u32 4294901760, %v9281_v61  ;;  %v9278_v46 = vand.u32 4294901760, %v9277_v52  ;;  %9348 = vmatprep.mubr.f32.mxu0 %v10912_v0  ;;  %v9704_v9 = vand.u32 4294901760, %v9702_v4 }
 0x7b7   : > { %v9690_v5 = vpop.permute.xlu1 %9689 }
 0x7b8   : > { %9279 = vmatprep.subr.mxu0 %v9278_v46  ;;  %v9283_v53 = vsub.f32 %v9281_v61, %v9282_v54  ;;  %v9695_v7 = vsel %vm12058_vm13, %v9690_v5, %v9692_v57  ;;  %v9783_v11 = vsub.f32 %v9702_v4, %v9704_v9 }
 0x7b9   : > { %v9700_v12 = vsel %vm5690_vm3, %v9695_v7, 0 }
 0x7ba   : > { %v9284_v55 = vand.u32 4294901760, %v9283_v53  ;;  %v9706_v15 = vand.u32 4294901760, %v9700_v12  ;;  %v9784_v13 = vand.u32 4294901760, %v9783_v11 }
 0x7bc   : > { %9285 = vmatpush1.msra.mxu0 %v9284_v55  ;;  %v9789_v43 = vsub.f32 %v9700_v12, %v9706_v15  ;;  %v9785_v8 = vsub.f32 %v9783_v11, %v9784_v13 }
 0x7bd   : > { %9350 = vmatmul.mubr.f32.vlgmr.msra.gmra.mrb[2].mxu0 %v11925_v28  ;;  %9358 = vmatprep.subr.mxu0 %v9275_v51 }
 0x7be   : > { %9361 = vmatpush1.msra.mxu0 %v9281_v61  ;;  %9424 = vmatprep.mubr.f32.mxu0 %v10912_v0  ;;  %v9790_v26 = vand.u32 4294901760, %v9789_v43  ;;  %v9786_v27 = vand.u32 4294901760, %v9785_v8 }
 0x7bf   : > { %9434 = vmatprep.subr.mxu0 %v9196_v49 }
 0x7c0   : > { %v9791_v58 = vsub.f32 %v9789_v43, %v9790_v26 }
 0x7c2   : > { %v9792_v29 = vand.u32 4294901760, %v9791_v58 }
 0x7c5   : > { %9427 = vmatmul.mubr.f32.vlgmr.msra.gmra.mrb[2].mxu0 %v9264_v36  ;;  %v10175_v30 = vpop.permute.xlu0 %10174 }
 0x7c6   : > { %9436 = vmatpush1.msra.mxu0 %v9198_v2  ;;  %9499 = vmatprep.mubr.f32.mxu0 %v10912_v0 }
 0x7c7   : > { %9512 = vmatprep.subr.mxu0 %v9276_v37 }
 0x7cd   : > { %9503 = vmatmul.mubr.f32.vlgmr.msra.gmra.mrb[2].mxu0 %v9265_v38 }
 0x7ce   : > { %9516 = vmatpush1.msra.mxu0 %v9282_v54  ;;  %9579 = vmatprep.mubr.f32.mxu0 %v10912_v0 }
 0x7cf   : > { %9588 = vmatprep.subr.mxu0 %v9196_v49 }
 0x7d5   : > { %9581 = vmatmul.mubr.f32.vlgmr.msra.gmra.mrb[2].mxu0 %v11925_v28 }
 0x7d6   : > { %9590 = vmatpush1.msra.mxu0 %v9198_v2  ;;  %9653 = vmatprep.mubr.f32.mxu0 %v10912_v0 }
 0x7d7   : > { %9705 = vmatprep.subr.mxu0 %v9704_v9 }
 0x7dd   : > { %9655 = vmatmul.mubr.f32.vlgmr.msra.gmra.mrb[2].mxu0 %v11925_v28 }
 0x7de   : > { %9707 = vmatpush1.msra.mxu0 %v9706_v15  ;;  %9770 = vmatprep.mubr.f32.mxu0 %v10912_v0 }
 0x7df   : > { %9787 = vmatprep.subr.mxu0 %v9786_v27 }
 0x7e5   : > { %9776 = vmatmul.mubr.f32.vlgmr.msra.gmra.mrb[2].mxu0 %v9775_v3 }
 0x7e6   : > { %9793 = vmatpush1.msra.mxu0 %v9792_v29  ;;  %9856 = vmatprep.mubr.f32.mxu0 %v10912_v0 }
 0x7e7   : > { %9866 = vmatprep.subr.mxu0 %v9783_v11 }
 0x7ed   : > { %9858 = vmatmul.mubr.f32.vlgmr.msra.gmra.mrb[2].mxu0 %v9771_v14 }
 0x7ee   : > { %9869 = vmatpush1.msra.mxu0 %v9789_v43  ;;  %9932 = vmatprep.mubr.f32.mxu0 %v10912_v0 }
 0x7ef   : > { %9942 = vmatprep.subr.mxu0 %v9704_v9 }
 0x7f5   : > { %9935 = vmatmul.mubr.f32.vlgmr.msra.gmra.mrb[2].mxu0 %v9772_v19 }
 0x7f6   : > { %9944 = vmatpush1.msra.mxu0 %v9706_v15  ;;  %10007 = vmatprep.mubr.f32.mxu0 %v10912_v0 }
 0x7f7   : > { %10020 = vmatprep.subr.mxu0 %v9784_v13 }
 0x7fd   : > { %10011 = vmatmul.mubr.f32.vlgmr.msra.gmra.mrb[2].mxu0 %v9773_v21 }
 0x7fe   : > { %10024 = vmatpush1.msra.mxu0 %v9790_v26  ;;  %10087 = vmatprep.mubr.f32.mxu0 %v10912_v0 }
 0x7ff   : > { %10096 = vmatprep.subr.mxu0 %v9704_v9 }
 0x805   : > { %10089 = vmatmul.mubr.f32.vlgmr.msra.gmra.mrb[2].mxu0 %v9771_v14 }
 0x806   : > { %10098 = vmatpush1.msra.mxu0 %v9706_v15  ;;  %10161 = vmatprep.mubr.f32.mxu0 %v10912_v0 }
 0x80d   : > { %10163 = vmatmul.mubr.f32.vlgmr.msra.gmra.mrb[2].mxu0 %v9771_v14 }
 0x8e0   : > { %v10164_v31 = vpop.f32.mrb[2].mxu0 }
 0x8e1   : > { %v10177_v32 = vadd.f32 %v10175_v30, %v10164_v31  ;;  %v10166_v20 = vpop.f32.mrb[3].mxu0 }
 0x8e2   : > { %v10178_v33 = vadd.f32 %v10175_v30, %v10166_v20 }
 0x8e3   : > { %v10179_v34 = vmax.f32 %v10177_v32, 0.0 }
 0x8e4   : > { %v10180_v35 = vmax.f32 %v10178_v33, 0.0 }
 0x8e6   : > { %v10183_v39 = vcombine.low %v10179_v34, %v10180_v35 }
 0x8e8   : > { %10185 = vst [vmem:[%s372_s25] sm:$0xff] %v10183_v39 }
 0x8e9   : > { %10844 = shalt.err (!%p10841_p2)
}
 0x8ea   : > { %s10845_s29 = scalar_lea.hbm %s11960_s15, 128  ;;  %s10849_s0 = scalar_lea.hbm %s12012_s8, 256 }
 0x8eb   : > { %p10846_p6 = scmp.ne.s32.totalorder %s11960_s15, %s10845_s29  ;;  %p10850_p12 = scmp.lt.u32.totalorder %s11960_s15, %s12012_s8 }
 0x8ec   : > { %p10851_p11 = scmp.lt.u32.totalorder %s10849_s0, %s10845_s29  ;;  %p10853_p10 = scmp.lt.u32.totalorder %s10845_s29, %s11960_s15 }
 0x8ed   : > { %p10847_p8 = pnand %p10846_p6, %p12060_p13 }
 0x8ee   : > { %p10852_p0 = por %p10851_p11, %p10850_p12 }
 0x8ef   : > { %p10848_p4 = pneg %p10847_p8 }
 0x8f0   : > { %p10854_p3 = por %p10853_p10, %p10852_p0 }
 0x8f2   : > { %p10855_p7 = pnand %p10854_p3, %p10848_p4 }
 0x8f4   : > { %10858 = shalt.err (!%p10855_p7)
}
 0x8f5   : > { %10666 = dma.vmem_to_hbm [thread:$0]  (%p12060_p13), %s11962_s22, 128, %s11960_s15, %s10187_s10  }
 0x8f6 PF: > { %s10213_s14 = sand.u32 1, %s10893_s27   ;;  %p12061_p9 = scmp.ne.s32.totalorder %s12034_s12, 0 }
 0x8f7   : > { %p12062_p1 = scmp.ge.s32.totalorder %s10905_s30, 2  ;;  %s10214_s11 = scalar_lea.sflag [#allocation6], %s10213_s14 }
 0x8f9   : > { %p10680_p5 = pnand %p12062_p1, %p12061_p9 }
 0x8fb   : > { %10888 = dma.done.wait (!%p10680_p5), %s10214_s11, 128  }
 0x8fc   : > { %10890 = vsyncadd (!%p10680_p5), %s10214_s11, 4294967168  ;;  %s12063_s25 = sld [smem:[#allocation15_spill]]  ;;  %s12064_s29 = sld [smem:[#allocation16_spill]] }
 0x8fd   : > { %p24_p2 = scmp.ge.s32.totalorder %s11032_s17, 4   ;;  %s12065_s27 = smov %s10897_s28 }
 0x8fe   : > { %s12067_s30 = smov %s11032_s17 }
 0x8ff   :  { %26 = sbr.rel (!%p24_p2) target bundleno = 10 (0xa), region = 137 }
 0x902   : > { %s12066_s28 = smov %s12063_s25 }
 0x906   :  { %10219 = vsyncpa [#allocation5], 1 }
 0x907   :  { %10221 = vsyncpa [#allocation5 + $0x1], 1 }
 0x908   :  { %10222 = vsyncpa [#allocation8], 1 }
 0x909   :  { %10224 = vsyncpa [#allocation8 + $0x1], 1 }
 0x90a   :  { %10225 = vsyncpa [#allocation6], 1 }
 0x90b   :  { %10227 = vsyncpa [#allocation6 + $0x1], 1 }

</bundles_post_ra>
